<compile_context>
chip_gen: v5e
topology: v5e:2x2
jax: 0.10.0
libtpu: 0.0.40
codegen_flags: <defaults>
</compile_context>

<pallas_src>
import jax
import jax.numpy as jnp
from jax.experimental import pallas as pl

# ----------------------------- config (small, synthetic) --------------------
B = 2            # batch
S = 8            # sequence length
VOCAB = 100      # synthetic vocab
H_BERT = 128     # synthetic bert.config.hidden_size
N_HEADS = 2
D_HEAD = H_BERT // N_HEADS
FFN = 4 * H_BERT
N_LAYERS = 2
HIDDEN = 128     # RuBERTTextTags hidden_size
NUM_CLASSES = 8
OUT_PAD = 128    # lane-dense padded logits width
SUB_PAD = 8      # sublane-dense padded logits rows
LN_EPS = 1e-12   # BERT layernorm eps

G = 2 * B        # fused sequence count (text batch + tags batch)
R = G * S        # fused token rows
GH = G * N_HEADS # head-batched attention batch size


# ----------------------------- in-kernel helpers -----------------------------
def _layer_norm(x, g, b):
    # two independent lane reductions; var = E[x^2] - mu^2
    inv_n = 1.0 / x.shape[-1]
    mu = jnp.sum(x, axis=-1, keepdims=True) * inv_n
    ex2 = jnp.sum(x * x, axis=-1, keepdims=True) * inv_n
    var = ex2 - mu * mu
    return (x - mu) * jax.lax.rsqrt(var + LN_EPS) * g + b


# ----------------------------- fully fused forward kernel --------------------
def fused_forward_kernel(x_ref, mask_ref,
                         wqkv_ref, bqkv_ref, wo_ref, bo_ref, g1_ref, be1_ref,
                         w1_ref, b1_ref, w2_ref, b2_ref, g2_ref, be2_ref,
                         wA_ref, wB_ref, c_ref, w2p_ref, b2p_ref,
                         o_ref):
    x = x_ref[...]                                   # (R, H) f32 token slab

    # hoisted additive-mask broadcast, head-batched layout: (GH, S, S)
    m3 = jnp.broadcast_to(mask_ref[...][:, None, :], (G, S, S))
    m_b = jnp.concatenate([m3] * N_HEADS, axis=0)

    for l in range(N_LAYERS):                        # static unroll; weights VMEM-resident
        xb = x.astype(jnp.bfloat16)
        # fused QKV projection (1/sqrt(d_head) folded into Q); single bf16 cast
        qkv = (jnp.dot(xb, wqkv_ref[l], preferred_element_type=jnp.float32)
               + bqkv_ref[l]).astype(jnp.bfloat16)   # (R, 3H) bf16

        def head_batch(base):
            # stack both heads of one (R, H) block on the batch axis: (GH, S, D)
            return jnp.concatenate(
                [qkv[:, base + h * D_HEAD: base + (h + 1) * D_HEAD
                     ].reshape(G, S, D_HEAD) for h in range(N_HEADS)],
                axis=0)

        qh = head_batch(0)
        kh = head_batch(H_BERT)
        vh = head_batch(2 * H_BERT)

        # single batched attention over all sequences x heads
        s = jnp.einsum('bqd,bkd->bqk', qh, kh,
                       preferred_element_type=jnp.float32) + m_b
        s = s - jnp.max(s, axis=-1, keepdims=True)
        p = jnp.exp(s)
        p = p * pl.reciprocal(jnp.sum(p, axis=-1, keepdims=True), approx=True)
        ctx = jnp.einsum('bqk,bkd->bqd', p.astype(jnp.bfloat16), vh,
                         preferred_element_type=jnp.float32)     # (GH, S, D)
        # un-batch heads (lane concat) and flatten sequences -> (R, H)
        ctx = jnp.concatenate([ctx[h * G:(h + 1) * G] for h in range(N_HEADS)],
                              axis=-1).reshape(R, H_BERT)
        attn = jnp.dot(ctx.astype(jnp.bfloat16), wo_ref[l],
                       preferred_element_type=jnp.float32) + bo_ref[l]

        h1 = _layer_norm(x + attn, g1_ref[l], be1_ref[l])

        f = jnp.dot(h1.astype(jnp.bfloat16), w1_ref[l],
                    preferred_element_type=jnp.float32) + b1_ref[l]
        f = jax.nn.gelu(f, approximate=True)   # TODO(synk): BERT uses exact (erf) GELU
        f = jnp.dot(f.astype(jnp.bfloat16), w2_ref[l],
                    preferred_element_type=jnp.float32) + b2_ref[l]
        x = _layer_norm(h1 + f, g2_ref[l], be2_ref[l])

    # CLS tokens (row 0 of every sequence), padded to 8 sublanes so the head
    # matmuls and the final store are full (8,128) tiles
    cls = x.reshape(G, S, H_BERT)[:, 0, :]                 # (G, H)
    pad = jnp.zeros((SUB_PAD - B, H_BERT), jnp.float32)
    text8 = jnp.concatenate([cls[0:B], pad], axis=0).astype(jnp.bfloat16)
    tags8 = jnp.concatenate([cls[B:G], pad], axis=0).astype(jnp.bfloat16)

    # text_proj/tags_proj folded into the MLP first linear:
    #   hh = text_cls @ (wt@w1a) + tags_cls @ (wg@w1b) + (bt@w1a + bg@w1b + b1)
    hh = (jnp.dot(text8, wA_ref[...], preferred_element_type=jnp.float32)
          + jnp.dot(tags8, wB_ref[...], preferred_element_type=jnp.float32)
          + c_ref[...])
    hh = jnp.maximum(hh, 0.0)                              # ReLU
    # full-tile (8, 128) unmasked store; rows/lanes sliced outside
    o_ref[...] = jnp.dot(hh.astype(jnp.bfloat16), w2p_ref[...],
                         preferred_element_type=jnp.float32) + b2p_ref[...]


# ----------------------------- plain-JAX glue ---------------------------------
def _ln_jax(x, g, b):
    mu = x.mean(-1, keepdims=True)
    var = ((x - mu) ** 2).mean(-1, keepdims=True)
    return (x - mu) / jnp.sqrt(var + LN_EPS) * g + b


def rubert_text_tags_forward(prep, text_ids, text_mask, tags_ids, tags_mask):
    ids = jnp.concatenate([text_ids, tags_ids], axis=0)        # (2B, S)
    amask = jnp.concatenate([text_mask, tags_mask], axis=0)    # (2B, S)
    seq = ids.shape[1]

    # embeddings (gather + layernorm): glue, stays in plain JAX
    x = prep["word_emb"][ids] + prep["pos_emb"][None, :seq, :]
    x = _ln_jax(x, prep["emb_g"], prep["emb_b"]).astype(jnp.float32)
    x_slab = x.reshape(-1, H_BERT)                             # (2B*S, H)
    add_mask = (1.0 - amask.astype(jnp.float32)) * -1e9        # (2B, S)

    logits_pad = pl.pallas_call(
        fused_forward_kernel,
        out_shape=jax.ShapeDtypeStruct((SUB_PAD, OUT_PAD), jnp.float32),
    )(x_slab, add_mask, *prep["weights"])
    return logits_pad[:B, :NUM_CLASSES]


# ----------------------------- deterministic parameter init -------------------
def init_params(key):
    keys = iter(jax.random.split(key, 128))

    def dense(shape):
        return jax.random.normal(next(keys), shape, jnp.float32) * 0.02

    p = {
        "word_emb": dense((VOCAB, H_BERT)),
        "pos_emb": dense((S, H_BERT)),
        "emb_g": jnp.ones((1, H_BERT), jnp.float32),
        "emb_b": jnp.zeros((1, H_BERT), jnp.float32),
        "layers": [],
    }
    for _ in range(N_LAYERS):
        p["layers"].append(dict(
            wq=dense((H_BERT, H_BERT)), bq=jnp.zeros((1, H_BERT), jnp.float32),
            wk=dense((H_BERT, H_BERT)), bk=jnp.zeros((1, H_BERT), jnp.float32),
            wv=dense((H_BERT, H_BERT)), bv=jnp.zeros((1, H_BERT), jnp.float32),
            wo=dense((H_BERT, H_BERT)), bo=jnp.zeros((1, H_BERT), jnp.float32),
            g1=jnp.ones((1, H_BERT), jnp.float32), be1=jnp.zeros((1, H_BERT), jnp.float32),
            w1=dense((H_BERT, FFN)), b1=jnp.zeros((1, FFN), jnp.float32),
            w2=dense((FFN, H_BERT)), b2=jnp.zeros((1, H_BERT), jnp.float32),
            g2=jnp.ones((1, H_BERT), jnp.float32), be2=jnp.zeros((1, H_BERT), jnp.float32),
        ))
    # text_proj / tags_proj
    p["wt"] = dense((H_BERT, HIDDEN)); p["bt"] = jnp.zeros((1, HIDDEN), jnp.float32)
    p["wg"] = dense((H_BERT, HIDDEN)); p["bg"] = jnp.zeros((1, HIDDEN), jnp.float32)
    # mlp: Linear(2*HIDDEN, HIDDEN) split into the two concat halves, then Linear(HIDDEN, C)
    p["w1a"] = dense((HIDDEN, HIDDEN))
    p["w1b"] = dense((HIDDEN, HIDDEN))
    p["b1"] = jnp.zeros((1, HIDDEN), jnp.float32)
    p["w2"] = dense((HIDDEN, NUM_CLASSES))
    p["b2"] = jnp.zeros((1, NUM_CLASSES), jnp.float32)
    return p


def prepare_params(p):
    """Re-pack module parameters into the fused-kernel layout:
    QKV concatenated (1/sqrt(d_head) folded into Q), per-layer weights stacked
    on a leading layer axis, text_proj/tags_proj folded into the MLP first
    linear, matmul weights cast to bf16 (f32 accum in-kernel), head output
    padded to a full (8,128) tile."""
    scale = 1.0 / (D_HEAD ** 0.5)
    bf = jnp.bfloat16

    def stack(fn):
        return jnp.stack([fn(lw) for lw in p["layers"]], axis=0)

    wqkv = stack(lambda lw: jnp.concatenate(
        [lw["wq"] * scale, lw["wk"], lw["wv"]], axis=1)).astype(bf)     # (L,H,3H)
    bqkv = stack(lambda lw: jnp.concatenate(
        [lw["bq"] * scale, lw["bk"], lw["bv"]], axis=1))                # (L,1,3H)
    wo = stack(lambda lw: lw["wo"]).astype(bf)
    bo = stack(lambda lw: lw["bo"])
    g1 = stack(lambda lw: lw["g1"]); be1 = stack(lambda lw: lw["be1"])
    w1 = stack(lambda lw: lw["w1"]).astype(bf); b1 = stack(lambda lw: lw["b1"])
    w2 = stack(lambda lw: lw["w2"]).astype(bf); b2 = stack(lambda lw: lw["b2"])
    g2 = stack(lambda lw: lw["g2"]); be2 = stack(lambda lw: lw["be2"])

    # fold text_proj/tags_proj into the MLP first linear (no nonlinearity between)
    wA = (p["wt"] @ p["w1a"]).astype(bf)                        # (H, HIDDEN)
    wB = (p["wg"] @ p["w1b"]).astype(bf)                        # (H, HIDDEN)
    cb = p["bt"] @ p["w1a"] + p["bg"] @ p["w1b"] + p["b1"]      # (1, HIDDEN) f32

    # pad classifier output to a lane-dense 128 columns
    w2p = jnp.zeros((HIDDEN, OUT_PAD), jnp.float32).at[:, :NUM_CLASSES].set(p["w2"]).astype(bf)
    b2p = jnp.zeros((1, OUT_PAD), jnp.float32).at[:, :NUM_CLASSES].set(p["b2"])

    weights = (wqkv, bqkv, wo, bo, g1, be1, w1, b1, w2, b2, g2, be2,
               wA, wB, cb, w2p, b2p)
    return {"word_emb": p["word_emb"], "pos_emb": p["pos_emb"],
            "emb_g": p["emb_g"], "emb_b": p["emb_b"], "weights": weights}


# ----------------------------- main --------------------------------------------
if __name__ == "__main__":
    key = jax.random.PRNGKey(0)
    k_param, k_tid, k_gid = jax.random.split(key, 3)
    prep = prepare_params(init_params(k_param))

    text_input_ids = jax.random.randint(k_tid, (B, S), 0, VOCAB, dtype=jnp.int32)
    tags_input_ids = jax.random.randint(k_gid, (B, S), 0, VOCAB, dtype=jnp.int32)
    text_attention_mask = jnp.ones((B, S), jnp.int32).at[:, S - 2:].set(0)
    tags_attention_mask = jnp.ones((B, S), jnp.int32).at[:, S - 3:].set(0)

    fwd = jax.jit(rubert_text_tags_forward)
    logits = fwd(prep, text_input_ids, text_attention_mask,
                 tags_input_ids, tags_attention_mask)
    jax.block_until_ready(logits)
    assert logits.shape == (B, NUM_CLASSES) and logits.dtype == jnp.float32
    assert bool(jnp.all(jnp.isfinite(logits)))
    print("KERNEL_OK")
</pallas_src>

<mosaic_0001>
module attributes {stable_mosaic.version = 11 : i64} {
  func.func @fused_forward_kernel(%arg0: memref<32x128xf32, #tpu.memory_space<vmem>>, %arg1: memref<4x8xf32, #tpu.memory_space<vmem>>, %arg2: memref<2x128x384xbf16, #tpu.memory_space<vmem>>, %arg3: memref<2x1x384xf32, #tpu.memory_space<vmem>>, %arg4: memref<2x128x128xbf16, #tpu.memory_space<vmem>>, %arg5: memref<2x1x128xf32, #tpu.memory_space<vmem>>, %arg6: memref<2x1x128xf32, #tpu.memory_space<vmem>>, %arg7: memref<2x1x128xf32, #tpu.memory_space<vmem>>, %arg8: memref<2x128x512xbf16, #tpu.memory_space<vmem>>, %arg9: memref<2x1x512xf32, #tpu.memory_space<vmem>>, %arg10: memref<2x512x128xbf16, #tpu.memory_space<vmem>>, %arg11: memref<2x1x128xf32, #tpu.memory_space<vmem>>, %arg12: memref<2x1x128xf32, #tpu.memory_space<vmem>>, %arg13: memref<2x1x128xf32, #tpu.memory_space<vmem>>, %arg14: memref<128x128xbf16, #tpu.memory_space<vmem>>, %arg15: memref<128x128xbf16, #tpu.memory_space<vmem>>, %arg16: memref<1x128xf32, #tpu.memory_space<vmem>>, %arg17: memref<128x128xbf16, #tpu.memory_space<vmem>>, %arg18: memref<1x128xf32, #tpu.memory_space<vmem>>, %arg19: memref<8x128xf32, #tpu.memory_space<vmem>>) attributes {dimension_semantics = [], scalar_prefetch = 0 : i64, scratch_operands = 0 : i64, tpu.core_type = #tpu.core_type<tc>} {
    %c0 = arith.constant 0 : index
    %c0_0 = arith.constant 0 : index
    %0 = vector.load %arg0[%c0, %c0_0] : memref<32x128xf32, #tpu.memory_space<vmem>>, vector<32x128xf32>
    %c0_1 = arith.constant 0 : index
    %c0_2 = arith.constant 0 : index
    %1 = vector.load %arg1[%c0_1, %c0_2] : memref<4x8xf32, #tpu.memory_space<vmem>>, vector<4x8xf32>
    %2 = vector.shape_cast %1 : vector<4x8xf32> to vector<4x1x8xf32>
    %3 = vector.shape_cast %2 : vector<4x1x8xf32> to vector<4x1x8xf32>
    %4 = vector.broadcast %3 : vector<4x1x8xf32> to vector<4x8x8xf32>
    %5 = tpu.concatenate %4, %4 in 0 : vector<4x8x8xf32>, vector<4x8x8xf32> -> vector<8x8x8xf32>
    %6 = arith.truncf %0 : vector<32x128xf32> to vector<32x128xbf16>
    %c0_3 = arith.constant 0 : index
    %c0_4 = arith.constant 0 : index
    %c0_5 = arith.constant 0 : index
    %7 = vector.load %arg2[%c0_3, %c0_4, %c0_5] : memref<2x128x384xbf16, #tpu.memory_space<vmem>>, vector<1x128x384xbf16>
    %8 = vector.shape_cast %7 : vector<1x128x384xbf16> to vector<128x384xbf16>
    %cst = arith.constant dense<0.000000e+00> : vector<32x384xf32>
    %9 = tpu.matmul %6, %8, %cst {dimension_numbers = #tpu.dot_dimension_numbers<[1], [0], [0], [1], [0, 0, 1, 1], [], []>} : vector<32x128xbf16>, vector<128x384xbf16>, vector<32x384xf32> -> vector<32x384xf32>
    %c0_6 = arith.constant 0 : index
    %c0_7 = arith.constant 0 : index
    %c0_8 = arith.constant 0 : index
    %10 = vector.load %arg3[%c0_6, %c0_7, %c0_8] : memref<2x1x384xf32, #tpu.memory_space<vmem>>, vector<1x1x384xf32>
    %11 = vector.shape_cast %10 : vector<1x1x384xf32> to vector<1x384xf32>
    %12 = vector.broadcast %11 : vector<1x384xf32> to vector<32x384xf32>
    %13 = arith.addf %9, %12 : vector<32x384xf32>
    %14 = arith.truncf %13 : vector<32x384xf32> to vector<32x384xbf16>
    %15 = vector.extract_strided_slice %14 {offsets = [0, 0], sizes = [32, 64], strides = [1, 1]} : vector<32x384xbf16> to vector<32x64xbf16>
    %16 = vector.shape_cast %15 : vector<32x64xbf16> to vector<4x8x64xbf16>
    %17 = vector.extract_strided_slice %14 {offsets = [0, 64], sizes = [32, 64], strides = [1, 1]} : vector<32x384xbf16> to vector<32x64xbf16>
    %18 = vector.shape_cast %17 : vector<32x64xbf16> to vector<4x8x64xbf16>
    %19 = tpu.concatenate %16, %18 in 0 : vector<4x8x64xbf16>, vector<4x8x64xbf16> -> vector<8x8x64xbf16>
    %20 = vector.extract_strided_slice %14 {offsets = [0, 128], sizes = [32, 64], strides = [1, 1]} : vector<32x384xbf16> to vector<32x64xbf16>
    %21 = vector.shape_cast %20 : vector<32x64xbf16> to vector<4x8x64xbf16>
    %22 = vector.extract_strided_slice %14 {offsets = [0, 192], sizes = [32, 64], strides = [1, 1]} : vector<32x384xbf16> to vector<32x64xbf16>
    %23 = vector.shape_cast %22 : vector<32x64xbf16> to vector<4x8x64xbf16>
    %24 = tpu.concatenate %21, %23 in 0 : vector<4x8x64xbf16>, vector<4x8x64xbf16> -> vector<8x8x64xbf16>
    %25 = vector.extract_strided_slice %14 {offsets = [0, 256], sizes = [32, 64], strides = [1, 1]} : vector<32x384xbf16> to vector<32x64xbf16>
    %26 = vector.shape_cast %25 : vector<32x64xbf16> to vector<4x8x64xbf16>
    %27 = vector.extract_strided_slice %14 {offsets = [0, 320], sizes = [32, 64], strides = [1, 1]} : vector<32x384xbf16> to vector<32x64xbf16>
    %28 = vector.shape_cast %27 : vector<32x64xbf16> to vector<4x8x64xbf16>
    %29 = tpu.concatenate %26, %28 in 0 : vector<4x8x64xbf16>, vector<4x8x64xbf16> -> vector<8x8x64xbf16>
    "tpu.trace_start"() <{level = 10 : i32, message = "bqd,bkd->bqk"}> : () -> ()
    %cst_9 = arith.constant dense<0.000000e+00> : vector<8x8x8xf32>
    %30 = tpu.matmul %19, %24, %cst_9 {dimension_numbers = #tpu.dot_dimension_numbers<[2], [2], [1], [1], [0, 0, 0, 1, 1, 1], [0], [0]>} : vector<8x8x64xbf16>, vector<8x8x64xbf16>, vector<8x8x8xf32> -> vector<8x8x8xf32>
    "tpu.trace_stop"() : () -> ()
    %31 = arith.addf %30, %5 : vector<8x8x8xf32>
    %cst_10 = arith.constant dense<0xFF800000> : vector<8x8xf32>
    %32 = vector.multi_reduction <maximumf>, %31, %cst_10 [2] : vector<8x8x8xf32> to vector<8x8xf32>
    %33 = vector.shape_cast %32 : vector<8x8xf32> to vector<8x8x1xf32>
    %34 = vector.broadcast %33 : vector<8x8x1xf32> to vector<8x8x8xf32>
    %35 = arith.subf %31, %34 : vector<8x8x8xf32>
    %36 = math.exp %35 : vector<8x8x8xf32>
    %cst_11 = arith.constant dense<0.000000e+00> : vector<8x8xf32>
    %37 = vector.multi_reduction <add>, %36, %cst_11 [2] : vector<8x8x8xf32> to vector<8x8xf32>
    %38 = vector.shape_cast %37 : vector<8x8xf32> to vector<8x8x1xf32>
    %39 = tpu.reciprocal %38 {approx = true} : vector<8x8x1xf32> -> vector<8x8x1xf32>
    %40 = vector.broadcast %39 : vector<8x8x1xf32> to vector<8x8x8xf32>
    %41 = arith.mulf %36, %40 : vector<8x8x8xf32>
    %42 = arith.truncf %41 : vector<8x8x8xf32> to vector<8x8x8xbf16>
    "tpu.trace_start"() <{level = 10 : i32, message = "bqk,bkd->bqd"}> : () -> ()
    %cst_12 = arith.constant dense<0.000000e+00> : vector<8x8x64xf32>
    %43 = tpu.matmul %42, %29, %cst_12 {dimension_numbers = #tpu.dot_dimension_numbers<[2], [1], [1], [2], [0, 0, 0, 1, 1, 2], [0], [0]>} : vector<8x8x8xbf16>, vector<8x8x64xbf16>, vector<8x8x64xf32> -> vector<8x8x64xf32>
    "tpu.trace_stop"() : () -> ()
    %44 = vector.extract_strided_slice %43 {offsets = [0, 0, 0], sizes = [4, 8, 64], strides = [1, 1, 1]} : vector<8x8x64xf32> to vector<4x8x64xf32>
    %45 = vector.extract_strided_slice %43 {offsets = [4, 0, 0], sizes = [4, 8, 64], strides = [1, 1, 1]} : vector<8x8x64xf32> to vector<4x8x64xf32>
    %46 = tpu.concatenate %44, %45 in 2 : vector<4x8x64xf32>, vector<4x8x64xf32> -> vector<4x8x128xf32>
    %47 = vector.shape_cast %46 : vector<4x8x128xf32> to vector<32x128xf32>
    %48 = arith.truncf %47 : vector<32x128xf32> to vector<32x128xbf16>
    %c0_13 = arith.constant 0 : index
    %c0_14 = arith.constant 0 : index
    %c0_15 = arith.constant 0 : index
    %49 = vector.load %arg4[%c0_13, %c0_14, %c0_15] : memref<2x128x128xbf16, #tpu.memory_space<vmem>>, vector<1x128x128xbf16>
    %50 = vector.shape_cast %49 : vector<1x128x128xbf16> to vector<128x128xbf16>
    %cst_16 = arith.constant dense<0.000000e+00> : vector<32x128xf32>
    %51 = tpu.matmul %48, %50, %cst_16 {dimension_numbers = #tpu.dot_dimension_numbers<[1], [0], [0], [1], [0, 0, 1, 1], [], []>} : vector<32x128xbf16>, vector<128x128xbf16>, vector<32x128xf32> -> vector<32x128xf32>
    %c0_17 = arith.constant 0 : index
    %c0_18 = arith.constant 0 : index
    %c0_19 = arith.constant 0 : index
    %52 = vector.load %arg5[%c0_17, %c0_18, %c0_19] : memref<2x1x128xf32, #tpu.memory_space<vmem>>, vector<1x1x128xf32>
    %53 = vector.shape_cast %52 : vector<1x1x128xf32> to vector<1x128xf32>
    %54 = vector.broadcast %53 : vector<1x128xf32> to vector<32x128xf32>
    %55 = arith.addf %51, %54 : vector<32x128xf32>
    %56 = arith.addf %0, %55 : vector<32x128xf32>
    %c0_20 = arith.constant 0 : index
    %c0_21 = arith.constant 0 : index
    %c0_22 = arith.constant 0 : index
    %57 = vector.load %arg6[%c0_20, %c0_21, %c0_22] : memref<2x1x128xf32, #tpu.memory_space<vmem>>, vector<1x1x128xf32>
    %58 = vector.shape_cast %57 : vector<1x1x128xf32> to vector<1x128xf32>
    %c0_23 = arith.constant 0 : index
    %c0_24 = arith.constant 0 : index
    %c0_25 = arith.constant 0 : index
    %59 = vector.load %arg7[%c0_23, %c0_24, %c0_25] : memref<2x1x128xf32, #tpu.memory_space<vmem>>, vector<1x1x128xf32>
    %60 = vector.shape_cast %59 : vector<1x1x128xf32> to vector<1x128xf32>
    %cst_26 = arith.constant dense<0.000000e+00> : vector<32xf32>
    %61 = vector.multi_reduction <add>, %56, %cst_26 [1] : vector<32x128xf32> to vector<32xf32>
    %62 = vector.shape_cast %61 : vector<32xf32> to vector<32x1xf32>
    %cst_27 = arith.constant 7.812500e-03 : f32
    %63 = vector.broadcast %cst_27 : f32 to vector<32x1xf32>
    %64 = arith.mulf %62, %63 : vector<32x1xf32>
    %65 = arith.mulf %56, %56 : vector<32x128xf32>
    %cst_28 = arith.constant dense<0.000000e+00> : vector<32xf32>
    %66 = vector.multi_reduction <add>, %65, %cst_28 [1] : vector<32x128xf32> to vector<32xf32>
    %67 = vector.shape_cast %66 : vector<32xf32> to vector<32x1xf32>
    %cst_29 = arith.constant 7.812500e-03 : f32
    %68 = vector.broadcast %cst_29 : f32 to vector<32x1xf32>
    %69 = arith.mulf %67, %68 : vector<32x1xf32>
    %70 = arith.mulf %64, %64 : vector<32x1xf32>
    %71 = arith.subf %69, %70 : vector<32x1xf32>
    %72 = vector.broadcast %64 : vector<32x1xf32> to vector<32x128xf32>
    %73 = arith.subf %56, %72 : vector<32x128xf32>
    %cst_30 = arith.constant 9.99999996E-13 : f32
    %74 = vector.broadcast %cst_30 : f32 to vector<32x1xf32>
    %75 = arith.addf %71, %74 : vector<32x1xf32>
    %76 = math.rsqrt %75 : vector<32x1xf32>
    %77 = vector.broadcast %76 : vector<32x1xf32> to vector<32x128xf32>
    %78 = arith.mulf %73, %77 : vector<32x128xf32>
    %79 = vector.broadcast %58 : vector<1x128xf32> to vector<32x128xf32>
    %80 = arith.mulf %78, %79 : vector<32x128xf32>
    %81 = vector.broadcast %60 : vector<1x128xf32> to vector<32x128xf32>
    %82 = arith.addf %80, %81 : vector<32x128xf32>
    %83 = arith.truncf %82 : vector<32x128xf32> to vector<32x128xbf16>
    %c0_31 = arith.constant 0 : index
    %c0_32 = arith.constant 0 : index
    %c0_33 = arith.constant 0 : index
    %84 = vector.load %arg8[%c0_31, %c0_32, %c0_33] : memref<2x128x512xbf16, #tpu.memory_space<vmem>>, vector<1x128x512xbf16>
    %85 = vector.shape_cast %84 : vector<1x128x512xbf16> to vector<128x512xbf16>
    %cst_34 = arith.constant dense<0.000000e+00> : vector<32x512xf32>
    %86 = tpu.matmul %83, %85, %cst_34 {dimension_numbers = #tpu.dot_dimension_numbers<[1], [0], [0], [1], [0, 0, 1, 1], [], []>} : vector<32x128xbf16>, vector<128x512xbf16>, vector<32x512xf32> -> vector<32x512xf32>
    %c0_35 = arith.constant 0 : index
    %c0_36 = arith.constant 0 : index
    %c0_37 = arith.constant 0 : index
    %87 = vector.load %arg9[%c0_35, %c0_36, %c0_37] : memref<2x1x512xf32, #tpu.memory_space<vmem>>, vector<1x1x512xf32>
    %88 = vector.shape_cast %87 : vector<1x1x512xf32> to vector<1x512xf32>
    %89 = vector.broadcast %88 : vector<1x512xf32> to vector<32x512xf32>
    %90 = arith.addf %86, %89 : vector<32x512xf32>
    %91 = arith.mulf %90, %90 : vector<32x512xf32>
    %92 = arith.mulf %90, %91 : vector<32x512xf32>
    %cst_38 = arith.constant 4.471500e-02 : f32
    %93 = vector.broadcast %cst_38 : f32 to vector<32x512xf32>
    %94 = arith.mulf %93, %92 : vector<32x512xf32>
    %95 = arith.addf %90, %94 : vector<32x512xf32>
    %cst_39 = arith.constant 0.797884583 : f32
    %96 = vector.broadcast %cst_39 : f32 to vector<32x512xf32>
    %97 = arith.mulf %96, %95 : vector<32x512xf32>
    %98 = math.tanh %97 : vector<32x512xf32>
    %cst_40 = arith.constant 1.000000e+00 : f32
    %99 = vector.broadcast %cst_40 : f32 to vector<32x512xf32>
    %100 = arith.addf %99, %98 : vector<32x512xf32>
    %cst_41 = arith.constant 5.000000e-01 : f32
    %101 = vector.broadcast %cst_41 : f32 to vector<32x512xf32>
    %102 = arith.mulf %101, %100 : vector<32x512xf32>
    %103 = arith.mulf %90, %102 : vector<32x512xf32>
    %104 = arith.truncf %103 : vector<32x512xf32> to vector<32x512xbf16>
    %c0_42 = arith.constant 0 : index
    %c0_43 = arith.constant 0 : index
    %c0_44 = arith.constant 0 : index
    %105 = vector.load %arg10[%c0_42, %c0_43, %c0_44] : memref<2x512x128xbf16, #tpu.memory_space<vmem>>, vector<1x512x128xbf16>
    %106 = vector.shape_cast %105 : vector<1x512x128xbf16> to vector<512x128xbf16>
    %cst_45 = arith.constant dense<0.000000e+00> : vector<32x128xf32>
    %107 = tpu.matmul %104, %106, %cst_45 {dimension_numbers = #tpu.dot_dimension_numbers<[1], [0], [0], [1], [0, 0, 1, 1], [], []>} : vector<32x512xbf16>, vector<512x128xbf16>, vector<32x128xf32> -> vector<32x128xf32>
    %c0_46 = arith.constant 0 : index
    %c0_47 = arith.constant 0 : index
    %c0_48 = arith.constant 0 : index
    %108 = vector.load %arg11[%c0_46, %c0_47, %c0_48] : memref<2x1x128xf32, #tpu.memory_space<vmem>>, vector<1x1x128xf32>
    %109 = vector.shape_cast %108 : vector<1x1x128xf32> to vector<1x128xf32>
    %110 = vector.broadcast %109 : vector<1x128xf32> to vector<32x128xf32>
    %111 = arith.addf %107, %110 : vector<32x128xf32>
    %112 = arith.addf %82, %111 : vector<32x128xf32>
    %c0_49 = arith.constant 0 : index
    %c0_50 = arith.constant 0 : index
    %c0_51 = arith.constant 0 : index
    %113 = vector.load %arg12[%c0_49, %c0_50, %c0_51] : memref<2x1x128xf32, #tpu.memory_space<vmem>>, vector<1x1x128xf32>
    %114 = vector.shape_cast %113 : vector<1x1x128xf32> to vector<1x128xf32>
    %c0_52 = arith.constant 0 : index
    %c0_53 = arith.constant 0 : index
    %c0_54 = arith.constant 0 : index
    %115 = vector.load %arg13[%c0_52, %c0_53, %c0_54] : memref<2x1x128xf32, #tpu.memory_space<vmem>>, vector<1x1x128xf32>
    %116 = vector.shape_cast %115 : vector<1x1x128xf32> to vector<1x128xf32>
    %cst_55 = arith.constant dense<0.000000e+00> : vector<32xf32>
    %117 = vector.multi_reduction <add>, %112, %cst_55 [1] : vector<32x128xf32> to vector<32xf32>
    %118 = vector.shape_cast %117 : vector<32xf32> to vector<32x1xf32>
    %cst_56 = arith.constant 7.812500e-03 : f32
    %119 = vector.broadcast %cst_56 : f32 to vector<32x1xf32>
    %120 = arith.mulf %118, %119 : vector<32x1xf32>
    %121 = arith.mulf %112, %112 : vector<32x128xf32>
    %cst_57 = arith.constant dense<0.000000e+00> : vector<32xf32>
    %122 = vector.multi_reduction <add>, %121, %cst_57 [1] : vector<32x128xf32> to vector<32xf32>
    %123 = vector.shape_cast %122 : vector<32xf32> to vector<32x1xf32>
    %cst_58 = arith.constant 7.812500e-03 : f32
    %124 = vector.broadcast %cst_58 : f32 to vector<32x1xf32>
    %125 = arith.mulf %123, %124 : vector<32x1xf32>
    %126 = arith.mulf %120, %120 : vector<32x1xf32>
    %127 = arith.subf %125, %126 : vector<32x1xf32>
    %128 = vector.broadcast %120 : vector<32x1xf32> to vector<32x128xf32>
    %129 = arith.subf %112, %128 : vector<32x128xf32>
    %cst_59 = arith.constant 9.99999996E-13 : f32
    %130 = vector.broadcast %cst_59 : f32 to vector<32x1xf32>
    %131 = arith.addf %127, %130 : vector<32x1xf32>
    %132 = math.rsqrt %131 : vector<32x1xf32>
    %133 = vector.broadcast %132 : vector<32x1xf32> to vector<32x128xf32>
    %134 = arith.mulf %129, %133 : vector<32x128xf32>
    %135 = vector.broadcast %114 : vector<1x128xf32> to vector<32x128xf32>
    %136 = arith.mulf %134, %135 : vector<32x128xf32>
    %137 = vector.broadcast %116 : vector<1x128xf32> to vector<32x128xf32>
    %138 = arith.addf %136, %137 : vector<32x128xf32>
    %139 = arith.truncf %138 : vector<32x128xf32> to vector<32x128xbf16>
    %c1 = arith.constant 1 : index
    %c0_60 = arith.constant 0 : index
    %c0_61 = arith.constant 0 : index
    %140 = vector.load %arg2[%c1, %c0_60, %c0_61] : memref<2x128x384xbf16, #tpu.memory_space<vmem>>, vector<1x128x384xbf16>
    %141 = vector.shape_cast %140 : vector<1x128x384xbf16> to vector<128x384xbf16>
    %cst_62 = arith.constant dense<0.000000e+00> : vector<32x384xf32>
    %142 = tpu.matmul %139, %141, %cst_62 {dimension_numbers = #tpu.dot_dimension_numbers<[1], [0], [0], [1], [0, 0, 1, 1], [], []>} : vector<32x128xbf16>, vector<128x384xbf16>, vector<32x384xf32> -> vector<32x384xf32>
    %c1_63 = arith.constant 1 : index
    %c0_64 = arith.constant 0 : index
    %c0_65 = arith.constant 0 : index
    %143 = vector.load %arg3[%c1_63, %c0_64, %c0_65] : memref<2x1x384xf32, #tpu.memory_space<vmem>>, vector<1x1x384xf32>
    %144 = vector.shape_cast %143 : vector<1x1x384xf32> to vector<1x384xf32>
    %145 = vector.broadcast %144 : vector<1x384xf32> to vector<32x384xf32>
    %146 = arith.addf %142, %145 : vector<32x384xf32>
    %147 = arith.truncf %146 : vector<32x384xf32> to vector<32x384xbf16>
    %148 = vector.extract_strided_slice %147 {offsets = [0, 0], sizes = [32, 64], strides = [1, 1]} : vector<32x384xbf16> to vector<32x64xbf16>
    %149 = vector.shape_cast %148 : vector<32x64xbf16> to vector<4x8x64xbf16>
    %150 = vector.extract_strided_slice %147 {offsets = [0, 64], sizes = [32, 64], strides = [1, 1]} : vector<32x384xbf16> to vector<32x64xbf16>
    %151 = vector.shape_cast %150 : vector<32x64xbf16> to vector<4x8x64xbf16>
    %152 = tpu.concatenate %149, %151 in 0 : vector<4x8x64xbf16>, vector<4x8x64xbf16> -> vector<8x8x64xbf16>
    %153 = vector.extract_strided_slice %147 {offsets = [0, 128], sizes = [32, 64], strides = [1, 1]} : vector<32x384xbf16> to vector<32x64xbf16>
    %154 = vector.shape_cast %153 : vector<32x64xbf16> to vector<4x8x64xbf16>
    %155 = vector.extract_strided_slice %147 {offsets = [0, 192], sizes = [32, 64], strides = [1, 1]} : vector<32x384xbf16> to vector<32x64xbf16>
    %156 = vector.shape_cast %155 : vector<32x64xbf16> to vector<4x8x64xbf16>
    %157 = tpu.concatenate %154, %156 in 0 : vector<4x8x64xbf16>, vector<4x8x64xbf16> -> vector<8x8x64xbf16>
    %158 = vector.extract_strided_slice %147 {offsets = [0, 256], sizes = [32, 64], strides = [1, 1]} : vector<32x384xbf16> to vector<32x64xbf16>
    %159 = vector.shape_cast %158 : vector<32x64xbf16> to vector<4x8x64xbf16>
    %160 = vector.extract_strided_slice %147 {offsets = [0, 320], sizes = [32, 64], strides = [1, 1]} : vector<32x384xbf16> to vector<32x64xbf16>
    %161 = vector.shape_cast %160 : vector<32x64xbf16> to vector<4x8x64xbf16>
    %162 = tpu.concatenate %159, %161 in 0 : vector<4x8x64xbf16>, vector<4x8x64xbf16> -> vector<8x8x64xbf16>
    "tpu.trace_start"() <{level = 10 : i32, message = "bqd,bkd->bqk"}> : () -> ()
    %cst_66 = arith.constant dense<0.000000e+00> : vector<8x8x8xf32>
    %163 = tpu.matmul %152, %157, %cst_66 {dimension_numbers = #tpu.dot_dimension_numbers<[2], [2], [1], [1], [0, 0, 0, 1, 1, 1], [0], [0]>} : vector<8x8x64xbf16>, vector<8x8x64xbf16>, vector<8x8x8xf32> -> vector<8x8x8xf32>
    "tpu.trace_stop"() : () -> ()
    %164 = arith.addf %163, %5 : vector<8x8x8xf32>
    %cst_67 = arith.constant dense<0xFF800000> : vector<8x8xf32>
    %165 = vector.multi_reduction <maximumf>, %164, %cst_67 [2] : vector<8x8x8xf32> to vector<8x8xf32>
    %166 = vector.shape_cast %165 : vector<8x8xf32> to vector<8x8x1xf32>
    %167 = vector.broadcast %166 : vector<8x8x1xf32> to vector<8x8x8xf32>
    %168 = arith.subf %164, %167 : vector<8x8x8xf32>
    %169 = math.exp %168 : vector<8x8x8xf32>
    %cst_68 = arith.constant dense<0.000000e+00> : vector<8x8xf32>
    %170 = vector.multi_reduction <add>, %169, %cst_68 [2] : vector<8x8x8xf32> to vector<8x8xf32>
    %171 = vector.shape_cast %170 : vector<8x8xf32> to vector<8x8x1xf32>
    %172 = tpu.reciprocal %171 {approx = true} : vector<8x8x1xf32> -> vector<8x8x1xf32>
    %173 = vector.broadcast %172 : vector<8x8x1xf32> to vector<8x8x8xf32>
    %174 = arith.mulf %169, %173 : vector<8x8x8xf32>
    %175 = arith.truncf %174 : vector<8x8x8xf32> to vector<8x8x8xbf16>
    "tpu.trace_start"() <{level = 10 : i32, message = "bqk,bkd->bqd"}> : () -> ()
    %cst_69 = arith.constant dense<0.000000e+00> : vector<8x8x64xf32>
    %176 = tpu.matmul %175, %162, %cst_69 {dimension_numbers = #tpu.dot_dimension_numbers<[2], [1], [1], [2], [0, 0, 0, 1, 1, 2], [0], [0]>} : vector<8x8x8xbf16>, vector<8x8x64xbf16>, vector<8x8x64xf32> -> vector<8x8x64xf32>
    "tpu.trace_stop"() : () -> ()
    %177 = vector.extract_strided_slice %176 {offsets = [0, 0, 0], sizes = [4, 8, 64], strides = [1, 1, 1]} : vector<8x8x64xf32> to vector<4x8x64xf32>
    %178 = vector.extract_strided_slice %176 {offsets = [4, 0, 0], sizes = [4, 8, 64], strides = [1, 1, 1]} : vector<8x8x64xf32> to vector<4x8x64xf32>
    %179 = tpu.concatenate %177, %178 in 2 : vector<4x8x64xf32>, vector<4x8x64xf32> -> vector<4x8x128xf32>
    %180 = vector.shape_cast %179 : vector<4x8x128xf32> to vector<32x128xf32>
    %181 = arith.truncf %180 : vector<32x128xf32> to vector<32x128xbf16>
    %c1_70 = arith.constant 1 : index
    %c0_71 = arith.constant 0 : index
    %c0_72 = arith.constant 0 : index
    %182 = vector.load %arg4[%c1_70, %c0_71, %c0_72] : memref<2x128x128xbf16, #tpu.memory_space<vmem>>, vector<1x128x128xbf16>
    %183 = vector.shape_cast %182 : vector<1x128x128xbf16> to vector<128x128xbf16>
    %cst_73 = arith.constant dense<0.000000e+00> : vector<32x128xf32>
    %184 = tpu.matmul %181, %183, %cst_73 {dimension_numbers = #tpu.dot_dimension_numbers<[1], [0], [0], [1], [0, 0, 1, 1], [], []>} : vector<32x128xbf16>, vector<128x128xbf16>, vector<32x128xf32> -> vector<32x128xf32>
    %c1_74 = arith.constant 1 : index
    %c0_75 = arith.constant 0 : index
    %c0_76 = arith.constant 0 : index
    %185 = vector.load %arg5[%c1_74, %c0_75, %c0_76] : memref<2x1x128xf32, #tpu.memory_space<vmem>>, vector<1x1x128xf32>
    %186 = vector.shape_cast %185 : vector<1x1x128xf32> to vector<1x128xf32>
    %187 = vector.broadcast %186 : vector<1x128xf32> to vector<32x128xf32>
    %188 = arith.addf %184, %187 : vector<32x128xf32>
    %189 = arith.addf %138, %188 : vector<32x128xf32>
    %c1_77 = arith.constant 1 : index
    %c0_78 = arith.constant 0 : index
    %c0_79 = arith.constant 0 : index
    %190 = vector.load %arg6[%c1_77, %c0_78, %c0_79] : memref<2x1x128xf32, #tpu.memory_space<vmem>>, vector<1x1x128xf32>
    %191 = vector.shape_cast %190 : vector<1x1x128xf32> to vector<1x128xf32>
    %c1_80 = arith.constant 1 : index
    %c0_81 = arith.constant 0 : index
    %c0_82 = arith.constant 0 : index
    %192 = vector.load %arg7[%c1_80, %c0_81, %c0_82] : memref<2x1x128xf32, #tpu.memory_space<vmem>>, vector<1x1x128xf32>
    %193 = vector.shape_cast %192 : vector<1x1x128xf32> to vector<1x128xf32>
    %cst_83 = arith.constant dense<0.000000e+00> : vector<32xf32>
    %194 = vector.multi_reduction <add>, %189, %cst_83 [1] : vector<32x128xf32> to vector<32xf32>
    %195 = vector.shape_cast %194 : vector<32xf32> to vector<32x1xf32>
    %cst_84 = arith.constant 7.812500e-03 : f32
    %196 = vector.broadcast %cst_84 : f32 to vector<32x1xf32>
    %197 = arith.mulf %195, %196 : vector<32x1xf32>
    %198 = arith.mulf %189, %189 : vector<32x128xf32>
    %cst_85 = arith.constant dense<0.000000e+00> : vector<32xf32>
    %199 = vector.multi_reduction <add>, %198, %cst_85 [1] : vector<32x128xf32> to vector<32xf32>
    %200 = vector.shape_cast %199 : vector<32xf32> to vector<32x1xf32>
    %cst_86 = arith.constant 7.812500e-03 : f32
    %201 = vector.broadcast %cst_86 : f32 to vector<32x1xf32>
    %202 = arith.mulf %200, %201 : vector<32x1xf32>
    %203 = arith.mulf %197, %197 : vector<32x1xf32>
    %204 = arith.subf %202, %203 : vector<32x1xf32>
    %205 = vector.broadcast %197 : vector<32x1xf32> to vector<32x128xf32>
    %206 = arith.subf %189, %205 : vector<32x128xf32>
    %cst_87 = arith.constant 9.99999996E-13 : f32
    %207 = vector.broadcast %cst_87 : f32 to vector<32x1xf32>
    %208 = arith.addf %204, %207 : vector<32x1xf32>
    %209 = math.rsqrt %208 : vector<32x1xf32>
    %210 = vector.broadcast %209 : vector<32x1xf32> to vector<32x128xf32>
    %211 = arith.mulf %206, %210 : vector<32x128xf32>
    %212 = vector.broadcast %191 : vector<1x128xf32> to vector<32x128xf32>
    %213 = arith.mulf %211, %212 : vector<32x128xf32>
    %214 = vector.broadcast %193 : vector<1x128xf32> to vector<32x128xf32>
    %215 = arith.addf %213, %214 : vector<32x128xf32>
    %216 = arith.truncf %215 : vector<32x128xf32> to vector<32x128xbf16>
    %c1_88 = arith.constant 1 : index
    %c0_89 = arith.constant 0 : index
    %c0_90 = arith.constant 0 : index
    %217 = vector.load %arg8[%c1_88, %c0_89, %c0_90] : memref<2x128x512xbf16, #tpu.memory_space<vmem>>, vector<1x128x512xbf16>
    %218 = vector.shape_cast %217 : vector<1x128x512xbf16> to vector<128x512xbf16>
    %cst_91 = arith.constant dense<0.000000e+00> : vector<32x512xf32>
    %219 = tpu.matmul %216, %218, %cst_91 {dimension_numbers = #tpu.dot_dimension_numbers<[1], [0], [0], [1], [0, 0, 1, 1], [], []>} : vector<32x128xbf16>, vector<128x512xbf16>, vector<32x512xf32> -> vector<32x512xf32>
    %c1_92 = arith.constant 1 : index
    %c0_93 = arith.constant 0 : index
    %c0_94 = arith.constant 0 : index
    %220 = vector.load %arg9[%c1_92, %c0_93, %c0_94] : memref<2x1x512xf32, #tpu.memory_space<vmem>>, vector<1x1x512xf32>
    %221 = vector.shape_cast %220 : vector<1x1x512xf32> to vector<1x512xf32>
    %222 = vector.broadcast %221 : vector<1x512xf32> to vector<32x512xf32>
    %223 = arith.addf %219, %222 : vector<32x512xf32>
    %224 = arith.mulf %223, %223 : vector<32x512xf32>
    %225 = arith.mulf %223, %224 : vector<32x512xf32>
    %cst_95 = arith.constant 4.471500e-02 : f32
    %226 = vector.broadcast %cst_95 : f32 to vector<32x512xf32>
    %227 = arith.mulf %226, %225 : vector<32x512xf32>
    %228 = arith.addf %223, %227 : vector<32x512xf32>
    %cst_96 = arith.constant 0.797884583 : f32
    %229 = vector.broadcast %cst_96 : f32 to vector<32x512xf32>
    %230 = arith.mulf %229, %228 : vector<32x512xf32>
    %231 = math.tanh %230 : vector<32x512xf32>
    %cst_97 = arith.constant 1.000000e+00 : f32
    %232 = vector.broadcast %cst_97 : f32 to vector<32x512xf32>
    %233 = arith.addf %232, %231 : vector<32x512xf32>
    %cst_98 = arith.constant 5.000000e-01 : f32
    %234 = vector.broadcast %cst_98 : f32 to vector<32x512xf32>
    %235 = arith.mulf %234, %233 : vector<32x512xf32>
    %236 = arith.mulf %223, %235 : vector<32x512xf32>
    %237 = arith.truncf %236 : vector<32x512xf32> to vector<32x512xbf16>
    %c1_99 = arith.constant 1 : index
    %c0_100 = arith.constant 0 : index
    %c0_101 = arith.constant 0 : index
    %238 = vector.load %arg10[%c1_99, %c0_100, %c0_101] : memref<2x512x128xbf16, #tpu.memory_space<vmem>>, vector<1x512x128xbf16>
    %239 = vector.shape_cast %238 : vector<1x512x128xbf16> to vector<512x128xbf16>
    %cst_102 = arith.constant dense<0.000000e+00> : vector<32x128xf32>
    %240 = tpu.matmul %237, %239, %cst_102 {dimension_numbers = #tpu.dot_dimension_numbers<[1], [0], [0], [1], [0, 0, 1, 1], [], []>} : vector<32x512xbf16>, vector<512x128xbf16>, vector<32x128xf32> -> vector<32x128xf32>
    %c1_103 = arith.constant 1 : index
    %c0_104 = arith.constant 0 : index
    %c0_105 = arith.constant 0 : index
    %241 = vector.load %arg11[%c1_103, %c0_104, %c0_105] : memref<2x1x128xf32, #tpu.memory_space<vmem>>, vector<1x1x128xf32>
    %242 = vector.shape_cast %241 : vector<1x1x128xf32> to vector<1x128xf32>
    %243 = vector.broadcast %242 : vector<1x128xf32> to vector<32x128xf32>
    %244 = arith.addf %240, %243 : vector<32x128xf32>
    %245 = arith.addf %215, %244 : vector<32x128xf32>
    %c1_106 = arith.constant 1 : index
    %c0_107 = arith.constant 0 : index
    %c0_108 = arith.constant 0 : index
    %246 = vector.load %arg12[%c1_106, %c0_107, %c0_108] : memref<2x1x128xf32, #tpu.memory_space<vmem>>, vector<1x1x128xf32>
    %247 = vector.shape_cast %246 : vector<1x1x128xf32> to vector<1x128xf32>
    %c1_109 = arith.constant 1 : index
    %c0_110 = arith.constant 0 : index
    %c0_111 = arith.constant 0 : index
    %248 = vector.load %arg13[%c1_109, %c0_110, %c0_111] : memref<2x1x128xf32, #tpu.memory_space<vmem>>, vector<1x1x128xf32>
    %249 = vector.shape_cast %248 : vector<1x1x128xf32> to vector<1x128xf32>
    %cst_112 = arith.constant dense<0.000000e+00> : vector<32xf32>
    %250 = vector.multi_reduction <add>, %245, %cst_112 [1] : vector<32x128xf32> to vector<32xf32>
    %251 = vector.shape_cast %250 : vector<32xf32> to vector<32x1xf32>
    %cst_113 = arith.constant 7.812500e-03 : f32
    %252 = vector.broadcast %cst_113 : f32 to vector<32x1xf32>
    %253 = arith.mulf %251, %252 : vector<32x1xf32>
    %254 = arith.mulf %245, %245 : vector<32x128xf32>
    %cst_114 = arith.constant dense<0.000000e+00> : vector<32xf32>
    %255 = vector.multi_reduction <add>, %254, %cst_114 [1] : vector<32x128xf32> to vector<32xf32>
    %256 = vector.shape_cast %255 : vector<32xf32> to vector<32x1xf32>
    %cst_115 = arith.constant 7.812500e-03 : f32
    %257 = vector.broadcast %cst_115 : f32 to vector<32x1xf32>
    %258 = arith.mulf %256, %257 : vector<32x1xf32>
    %259 = arith.mulf %253, %253 : vector<32x1xf32>
    %260 = arith.subf %258, %259 : vector<32x1xf32>
    %261 = vector.broadcast %253 : vector<32x1xf32> to vector<32x128xf32>
    %262 = arith.subf %245, %261 : vector<32x128xf32>
    %cst_116 = arith.constant 9.99999996E-13 : f32
    %263 = vector.broadcast %cst_116 : f32 to vector<32x1xf32>
    %264 = arith.addf %260, %263 : vector<32x1xf32>
    %265 = math.rsqrt %264 : vector<32x1xf32>
    %266 = vector.broadcast %265 : vector<32x1xf32> to vector<32x128xf32>
    %267 = arith.mulf %262, %266 : vector<32x128xf32>
    %268 = vector.broadcast %247 : vector<1x128xf32> to vector<32x128xf32>
    %269 = arith.mulf %267, %268 : vector<32x128xf32>
    %270 = vector.broadcast %249 : vector<1x128xf32> to vector<32x128xf32>
    %271 = arith.addf %269, %270 : vector<32x128xf32>
    %272 = vector.shape_cast %271 : vector<32x128xf32> to vector<4x8x128xf32>
    %273 = vector.extract_strided_slice %272 {offsets = [0, 0, 0], sizes = [4, 1, 128], strides = [1, 1, 1]} : vector<4x8x128xf32> to vector<4x1x128xf32>
    %274 = vector.shape_cast %273 : vector<4x1x128xf32> to vector<4x128xf32>
    %cst_117 = arith.constant 0.000000e+00 : f32
    %275 = vector.broadcast %cst_117 : f32 to vector<6x128xf32>
    %276 = vector.extract_strided_slice %274 {offsets = [0, 0], sizes = [2, 128], strides = [1, 1]} : vector<4x128xf32> to vector<2x128xf32>
    %277 = tpu.concatenate %276, %275 in 0 : vector<2x128xf32>, vector<6x128xf32> -> vector<8x128xf32>
    %278 = arith.truncf %277 : vector<8x128xf32> to vector<8x128xbf16>
    %279 = vector.extract_strided_slice %274 {offsets = [2, 0], sizes = [2, 128], strides = [1, 1]} : vector<4x128xf32> to vector<2x128xf32>
    %280 = tpu.concatenate %279, %275 in 0 : vector<2x128xf32>, vector<6x128xf32> -> vector<8x128xf32>
    %281 = arith.truncf %280 : vector<8x128xf32> to vector<8x128xbf16>
    %c0_118 = arith.constant 0 : index
    %c0_119 = arith.constant 0 : index
    %282 = vector.load %arg14[%c0_118, %c0_119] : memref<128x128xbf16, #tpu.memory_space<vmem>>, vector<128x128xbf16>
    %cst_120 = arith.constant dense<0.000000e+00> : vector<8x128xf32>
    %283 = tpu.matmul %278, %282, %cst_120 {dimension_numbers = #tpu.dot_dimension_numbers<[1], [0], [0], [1], [0, 0, 1, 1], [], []>} : vector<8x128xbf16>, vector<128x128xbf16>, vector<8x128xf32> -> vector<8x128xf32>
    %c0_121 = arith.constant 0 : index
    %c0_122 = arith.constant 0 : index
    %284 = vector.load %arg15[%c0_121, %c0_122] : memref<128x128xbf16, #tpu.memory_space<vmem>>, vector<128x128xbf16>
    %cst_123 = arith.constant dense<0.000000e+00> : vector<8x128xf32>
    %285 = tpu.matmul %281, %284, %cst_123 {dimension_numbers = #tpu.dot_dimension_numbers<[1], [0], [0], [1], [0, 0, 1, 1], [], []>} : vector<8x128xbf16>, vector<128x128xbf16>, vector<8x128xf32> -> vector<8x128xf32>
    %286 = arith.addf %283, %285 : vector<8x128xf32>
    %c0_124 = arith.constant 0 : index
    %c0_125 = arith.constant 0 : index
    %287 = vector.load %arg16[%c0_124, %c0_125] : memref<1x128xf32, #tpu.memory_space<vmem>>, vector<1x128xf32>
    %288 = vector.broadcast %287 : vector<1x128xf32> to vector<8x128xf32>
    %289 = arith.addf %286, %288 : vector<8x128xf32>
    %cst_126 = arith.constant 0.000000e+00 : f32
    %290 = vector.broadcast %cst_126 : f32 to vector<8x128xf32>
    %291 = arith.maximumf %289, %290 : vector<8x128xf32>
    %292 = arith.truncf %291 : vector<8x128xf32> to vector<8x128xbf16>
    %c0_127 = arith.constant 0 : index
    %c0_128 = arith.constant 0 : index
    %293 = vector.load %arg17[%c0_127, %c0_128] : memref<128x128xbf16, #tpu.memory_space<vmem>>, vector<128x128xbf16>
    %cst_129 = arith.constant dense<0.000000e+00> : vector<8x128xf32>
    %294 = tpu.matmul %292, %293, %cst_129 {dimension_numbers = #tpu.dot_dimension_numbers<[1], [0], [0], [1], [0, 0, 1, 1], [], []>} : vector<8x128xbf16>, vector<128x128xbf16>, vector<8x128xf32> -> vector<8x128xf32>
    %c0_130 = arith.constant 0 : index
    %c0_131 = arith.constant 0 : index
    %295 = vector.load %arg18[%c0_130, %c0_131] : memref<1x128xf32, #tpu.memory_space<vmem>>, vector<1x128xf32>
    %296 = vector.broadcast %295 : vector<1x128xf32> to vector<8x128xf32>
    %297 = arith.addf %294, %296 : vector<8x128xf32>
    %c0_132 = arith.constant 0 : index
    %c0_133 = arith.constant 0 : index
    %298 = vector.load %arg19[%c0_132, %c0_133] : memref<8x128xf32, #tpu.memory_space<vmem>>, vector<8x128xf32>
    tpu.vector_store %arg19[%c0_132, %c0_133], %297 {strides = array<i32>} : memref<8x128xf32, #tpu.memory_space<vmem>>, vector<8x128xf32>,
    return
  }
}

</mosaic_0001>

<bundles_post_ra>
// kernel: rubert_text_tags_forward.1
= control target key start
LH: loop header
LB: loop body
LE: loop exit
PB: predicated region body
PF: predicated region fallthrough
CT: control target
= control target key end

     0   :  { %s6573_s0 = inlined_call_operand.vmem [shape: f32[32,128], index: 0, kind: input, shape index: {}]   ;;  %s6574_s1 = inlined_call_operand.vmem [shape: f32[4,8], index: 1, kind: input, shape index: {}]   ;;  %s6575_s2 = inlined_call_operand.vmem [shape: bf16[2,128,384], index: 2, kind: input, shape index: {}]   ;;  %s6576_s3 = inlined_call_operand.vmem [shape: f32[2,1,384], index: 3, kind: input, shape index: {}]   ;;  %s6577_s4 = inlined_call_operand.hbm [shape: bf16[2,128,128], index: 4, kind: input, shape index: {}]   ;;  %s6578_s5 = inlined_call_operand.vmem [shape: f32[2,1,128], index: 5, kind: input, shape index: {}]   ;;  %s6579_s6 = inlined_call_operand.vmem [shape: f32[2,1,128], index: 6, kind: input, shape index: {}]   ;;  %s6580_s7 = inlined_call_operand.vmem [shape: f32[2,1,128], index: 7, kind: input, shape index: {}]   ;;  %s6581_s8 = inlined_call_operand.hbm [shape: bf16[2,128,512], index: 8, kind: input, shape index: {}]   ;;  %s6582_s9 = inlined_call_operand.vmem [shape: f32[2,1,512], index: 9, kind: input, shape index: {}]   ;;  %s6583_s10 = inlined_call_operand.hbm [shape: bf16[2,512,128], index: 10, kind: input, shape index: {}]   ;;  %s6584_s11 = inlined_call_operand.vmem [shape: f32[2,1,128], index: 11, kind: input, shape index: {}]   ;;  %s6585_s12 = inlined_call_operand.vmem [shape: f32[2,1,128], index: 12, kind: input, shape index: {}]   ;;  %s6586_s13 = inlined_call_operand.vmem [shape: f32[2,1,128], index: 13, kind: input, shape index: {}]   ;;  %s6587_s14 = inlined_call_operand.vmem [shape: bf16[128,128], index: 14, kind: input, shape index: {}]   ;;  %s6588_s15 = inlined_call_operand.hbm [shape: bf16[128,128], index: 15, kind: input, shape index: {}]   ;;  %s6589_s16 = inlined_call_operand.vmem [shape: f32[1,128], index: 16, kind: input, shape index: {}]   ;;  %s6590_s17 = inlined_call_operand.hbm [shape: bf16[128,128], index: 17, kind: input, shape index: {}]   ;;  %s6591_s18 = inlined_call_operand.vmem [shape: f32[1,128], index: 18, kind: input, shape index: {}]   ;;  %s6592_s19 = inlined_call_operand.vmem [shape: f32[8,128], index: 19, kind: output, shape index: {}]  }
   0x1   :  { %6596 = sst [smem:[#allocation13_spill]] %s6573_s0 }
   0x2   :  { %6597 = sst [smem:[#allocation14_spill]] %s6574_s1 }
   0x3   :  { %6598 = sst [smem:[#allocation15_spill]] %s6575_s2 }
   0x4   :  { %6599 = sst [smem:[#allocation16_spill]] %s6576_s3 }
   0x5   :  { %24 = vsyncpa [#allocation3], 0 }
   0x6   :  { %25 = vsyncpa [#allocation5], 0  ;;  %s58_s20 = sshll.u32 %s6581_s8, 4  ;;  %s59_s20 = int_to_ptr.hbm [resolvable:$true] %s58_s20 }
   0x7   :  { %26 = vsyncpa [#allocation8], 0  ;;  %s5446_s21 = smov [#allocation4]   ;;  %s5447_s22 = smov 256  }
   0x8   :  { %s60_s1 = sshll.u32 %s5446_s21, 4  ;;  %s5448_s2 = smov 16   ;;  %s61_s1 = int_to_ptr.vmem [resolvable:$true] %s60_s1 }
   0x9   :  { %66 = dma.hbm_to_vmem [thread:$0]  %s59_s20, 8192, %s61_s1, [#allocation5], %s5447_s22, %s5447_s22, %s5448_s2  }
   0xa   :  { %s94_s25 = sshll.u32 %s6588_s15, 4  ;;  %s5449_s3 = smov [#allocation7]   ;;  %s95_s25 = int_to_ptr.hbm [resolvable:$true] %s94_s25 }
   0xb   :  { %s96_s26 = sshll.u32 %s5449_s3, 4  ;;  %s39_s29 = sshll.u32 %s6577_s4, 4  ;;  %s97_s26 = int_to_ptr.vmem [resolvable:$true] %s96_s26  ;;  %s40_s29 = int_to_ptr.hbm [resolvable:$true] %s39_s29 }
   0xc   :  { %s5450_s8 = smov 64   ;;  %s5451_s0 = smov 4  }
   0xd   :  { %102 = dma.hbm_to_vmem [thread:$0]  %s95_s25, 1024, %s97_s26, [#allocation8], %s5450_s8, %s5450_s8, %s5451_s0  }
   0xe   :  { %s73_s21 = sshll.u32 %s6583_s10, 4  ;;  %s5452_s1 = smov [#allocation2]   ;;  %s74_s21 = int_to_ptr.hbm [resolvable:$true] %s73_s21 }
   0xf   :  { %s41_s15 = sshll.u32 %s5452_s1, 4  ;;  %s5453_s22 = smov [#allocation6]   ;;  %s42_s15 = int_to_ptr.vmem [resolvable:$true] %s41_s15 }
  0x10   :  { %47 = dma.hbm_to_vmem [thread:$0]  %s40_s29, 2048, %s42_s15, [#allocation3], %s5450_s8, %s5450_s8, %s5451_s0  }
  0x11   :  { %s75_s4 = sshll.u32 %s5453_s22, 4  ;;  %s109_s24 = sshll.u32 %s6590_s17, 4  ;;  %s76_s4 = int_to_ptr.vmem [resolvable:$true] %s75_s4  ;;  %s110_s24 = int_to_ptr.hbm [resolvable:$true] %s109_s24 }
  0x12   :  { %81 = dma.hbm_to_vmem [thread:$0]  %s74_s21, 8192, %s76_s4, [#allocation5], %s5450_s8, %s5450_s8, %s5451_s0  }
  0x13   :  { %s5454_s25 = smov [#allocation9]  }
  0x14   :  { %s111_s10 = sshll.u32 %s5454_s25, 4  ;;  %s112_s10 = int_to_ptr.vmem [resolvable:$true] %s111_s10 }
  0x15   :  { %117 = dma.hbm_to_vmem [thread:$0]  %s110_s24, 1024, %s112_s10, [#allocation8], %s5450_s8, %s5450_s8, %s5451_s0  }
  0x16   :  { %5440 = dma.done.wait [#allocation3], 2048  }
  0x17   :  { %5441 = vsyncadd [#allocation3], 4294965248 }
  0x18   :  { %5442 = dma.done.wait [#allocation5], 16384  }
  0x19   :  { %5443 = vsyncadd [#allocation5], 4294950912 }
  0x1a   :  { %5444 = dma.done.wait [#allocation8], 2048  }
  0x1b   :  { %5445 = vsyncadd [#allocation8], 4294965248  ;;  %s6600_s17 = sld [smem:[#allocation15_spill]]  ;;  %vm425_vm0 = vcmask 523264   ;;  %vm578_vm1 = vcmask 64512   ;;  %vm678_vm2 = vcmask 1043456  }
  0x1c   :  { %s6601_s4 = sld [smem:[#allocation13_spill]] }
  0x1d   :  { %s6602_s28 = sld [smem:[#allocation16_spill]] }
  0x1e   :  { %s6603_s29 = sld [smem:[#allocation14_spill]] }
  0x21   :  { %v4045_v0 = vld [vmem:[%s6600_s17 + $0xa8] sm:$0xf]  ;;  %v4923_v1 = vld [vmem:[%s6600_s17 + $0xb0] sm:$0xf0]  ;;  %v4922_v2 = vld [vmem:[%s6600_s17 + $0xac] sm:$0xf] }
  0x22   :  { %v4046_v3 = vor.u32 %v4923_v1, %v4045_v0  ;;  %v4047_v4 = vld [vmem:[%s6600_s17 + $0xb4] sm:$0xf0]  ;;  %v4033_v5 = vld [vmem:[%s6600_s17 + $0x90] sm:$0xf]  ;;  %v4920_v6 = vld [vmem:[%s6600_s17 + $0x98] sm:$0xf0] }
  0x23   :  { %v4050_v7 = vor.u32 %v4922_v2, %v4047_v4  ;;  %v4919_v8 = vld [vmem:[%s6600_s17 + $0x94] sm:$0xf]  ;;  %v4035_v9 = vld [vmem:[%s6600_s17 + $0x9c] sm:$0xf0]  ;;  %v4034_v10 = vor.u32 %v4920_v6, %v4033_v5  ;;  %v4021_v12 = vld [vmem:[%s6600_s17 + $0x78] sm:$0xf] }
  0x24   :  { %328 = vmatpush.bf16.msra.mxu0 %v4046_v3  ;;  %v4038_v11 = vor.u32 %v4919_v8, %v4035_v9  ;;  %v4917_v13 = vld [vmem:[%s6600_s17 + $0x80] sm:$0xf0]  ;;  %v4916_v14 = vld [vmem:[%s6600_s17 + $0x7c] sm:$0xf]  ;;  %v4023_v15 = vld [vmem:[%s6600_s17 + $0x84] sm:$0xf0] }
  0x25   :  { %347 = vmatpush.bf16.msra.mxu1 %v4050_v7  ;;  %v4022_v16 = vor.u32 %v4917_v13, %v4021_v12  ;;  %v4026_v17 = vor.u32 %v4916_v14, %v4023_v15  ;;  %v4009_v18 = vld [vmem:[%s6600_s17 + $0x60] sm:$0xf]  ;;  %v4914_v19 = vld [vmem:[%s6600_s17 + $0x68] sm:$0xf0]  ;;  %v4913_v20 = vld [vmem:[%s6600_s17 + $0x64] sm:$0xf] }
  0x26   :  { %v4011_v21 = vld [vmem:[%s6600_s17 + $0x6c] sm:$0xf0]  ;;  %v3997_v22 = vld [vmem:[%s6600_s17 + $0x48] sm:$0xf]  ;;  %v4010_v23 = vor.u32 %v4914_v19, %v4009_v18  ;;  %v4911_v24 = vld [vmem:[%s6600_s17 + $0x50] sm:$0xf0] }
  0x27   :  { %v4910_v25 = vld [vmem:[%s6600_s17 + $0x4c] sm:$0xf]  ;;  %v3999_v26 = vld [vmem:[%s6600_s17 + $0x54] sm:$0xf0]  ;;  %v4014_v27 = vor.u32 %v4913_v20, %v4011_v21  ;;  %v3985_v28 = vld [vmem:[%s6600_s17 + $0x30] sm:$0xf]  ;;  %v3998_v29 = vor.u32 %v4911_v24, %v3997_v22 }
  0x28   :  { %329 = vmatpush.bf16.msra.mxu0 %v4034_v10  ;;  %v4002_v30 = vor.u32 %v4910_v25, %v3999_v26  ;;  %v4908_v31 = vld [vmem:[%s6600_s17 + $0x38] sm:$0xf0]  ;;  %v4907_v32 = vld [vmem:[%s6600_s17 + $0x34] sm:$0xf]  ;;  %v3987_v33 = vld [vmem:[%s6600_s17 + $0x3c] sm:$0xf0] }
  0x29   :  { %348 = vmatpush.bf16.msra.mxu1 %v4038_v11  ;;  %v3986_v34 = vor.u32 %v4908_v31, %v3985_v28  ;;  %v3990_v35 = vor.u32 %v4907_v32, %v3987_v33  ;;  %v3973_v36 = vld [vmem:[%s6600_s17 + $0x18] sm:$0xf]  ;;  %v4905_v37 = vld [vmem:[%s6600_s17 + $0x20] sm:$0xf0]  ;;  %v4904_v38 = vld [vmem:[%s6600_s17 + $0x1c] sm:$0xf] }
  0x2a   :  { %v3975_v39 = vld [vmem:[%s6600_s17 + $0x24] sm:$0xf0]  ;;  %v3974_v40 = vor.u32 %v4905_v37, %v3973_v36  ;;  %v3961_v42 = vld [vmem:[%s6600_s17] sm:$0xf]  ;;  %v4902_v43 = vld [vmem:[%s6600_s17 + $0x8] sm:$0xf0] }
  0x2b   :  { %v3978_v41 = vor.u32 %v4904_v38, %v3975_v39  ;;  %v4901_v44 = vld [vmem:[%s6600_s17 + $0x4] sm:$0xf]  ;;  %v3963_v45 = vld [vmem:[%s6600_s17 + $0xc] sm:$0xf0]  ;;  %v3962_v46 = vor.u32 %v4902_v43, %v3961_v42  ;;  %v5682_v48 = vld [vmem:[%s6601_s4 + $0x8] sm:$0xff] }
  0x2c   :  { %330 = vmatpush.bf16.msra.mxu0 %v4022_v16  ;;  %v5677_v47 = vld [vmem:[%s6601_s4] sm:$0xff]  ;;  %v3966_v49 = vor.u32 %v4901_v44, %v3963_v45  ;;  %v5693_v51 = vld [vmem:[%s6601_s4 + $0x10] sm:$0xff]  ;;  %v5698_v52 = vld [vmem:[%s6601_s4 + $0x18] sm:$0xff] }
  0x2d   :  { %349 = vmatpush.bf16.msra.mxu1 %v4026_v17  ;;  %v5686_v50 = vpack.c.bf16 %v5682_v48, %v5677_v47  ;;  %v5702_v53 = vpack.c.bf16 %v5698_v52, %v5693_v51  ;;  %v5709_v54 = vld [vmem:[%s6602_s28] sm:$0x7]  ;;  %v4053_v21 = vld [vmem:[%s6600_s17 + $0xb0] sm:$0xf]  ;;  %v4924_v22 = vld [vmem:[%s6600_s17 + $0xb8] sm:$0xf0] }
  0x2e   :  { %v194_v55 = vperm.slane %v5709_v54, 0  ;;  %v195_v56 = vperm.slane %v5709_v54, 1  ;;  %v4041_v24 = vld [vmem:[%s6600_s17 + $0x98] sm:$0xf]  ;;  %v4921_v25 = vld [vmem:[%s6600_s17 + $0xa0] sm:$0xf0] }
  0x2f   :  { %v4042_v26 = vor.u32 %v4921_v25, %v4041_v24  ;;  %v4918_v28 = vld [vmem:[%s6600_s17 + $0x88] sm:$0xf0]  ;;  %v4915_v31 = vld [vmem:[%s6600_s17 + $0x70] sm:$0xf0]  ;;  %v4005_v33 = vld [vmem:[%s6600_s17 + $0x50] sm:$0xf] }
  0x30   :  { %331 = vmatpush.bf16.msra.mxu0 %v4010_v23  ;;  %v4054_v23 = vor.u32 %v4924_v22, %v4053_v21  ;;  %v3993_v36 = vld [vmem:[%s6600_s17 + $0x38] sm:$0xf]  ;;  %v4909_v37 = vld [vmem:[%s6600_s17 + $0x40] sm:$0xf0]  ;;  %v3981_v39 = vld [vmem:[%s6600_s17 + $0x20] sm:$0xf] }
  0x31   :  { %350 = vmatpush.bf16.msra.mxu1 %v4014_v27  ;;  %v4029_v27 = vld [vmem:[%s6600_s17 + $0x80] sm:$0xf]  ;;  %v3994_v38 = vor.u32 %v4909_v37, %v3993_v36  ;;  %v3969_v42 = vld [vmem:[%s6600_s17 + $0x8] sm:$0xf]  ;;  %v4903_v43 = vld [vmem:[%s6600_s17 + $0x10] sm:$0xf0] }
  0x32   :  { %366 = vmatpush.bf16.msra.mxu2 %v4054_v23  ;;  %v3970_v44 = vor.u32 %v4903_v43, %v3969_v42 }
  0x34   :  { %332 = vmatpush.bf16.msra.mxu0 %v3998_v29  ;;  %v4030_v29 = vor.u32 %v4918_v28, %v4029_v27 }
  0x35   :  { %351 = vmatpush.bf16.msra.mxu1 %v4002_v30  ;;  %v4017_v30 = vld [vmem:[%s6600_s17 + $0x68] sm:$0xf] }
  0x36   :  { %367 = vmatpush.bf16.msra.mxu2 %v4042_v26  ;;  %v4018_v32 = vor.u32 %v4915_v31, %v4017_v30 }
  0x38   :  { %333 = vmatpush.bf16.msra.mxu0 %v3986_v34  ;;  %v4912_v34 = vld [vmem:[%s6600_s17 + $0x58] sm:$0xf0] }
  0x39   :  { %352 = vmatpush.bf16.msra.mxu1 %v3990_v35  ;;  %v4006_v35 = vor.u32 %v4912_v34, %v4005_v33 }
  0x3a   :  { %368 = vmatpush.bf16.msra.mxu2 %v4030_v29 }
  0x3c   :  { %334 = vmatpush.bf16.msra.mxu0 %v3974_v40  ;;  %v4906_v40 = vld [vmem:[%s6600_s17 + $0x28] sm:$0xf0] }
  0x3d   :  { %353 = vmatpush.bf16.msra.mxu1 %v3978_v41  ;;  %v3982_v41 = vor.u32 %v4906_v40, %v3981_v39 }
  0x3e   :  { %369 = vmatpush.bf16.msra.mxu2 %v4018_v32 }
  0x40   :  { %335 = vmatpush.bf16.msra.mxu0 %v3962_v46 }
  0x41   :  { %354 = vmatpush.bf16.msra.mxu1 %v3966_v49 }
  0x42   :  { %370 = vmatpush.bf16.msra.mxu2 %v4006_v35 }
  0x43   :  { %336 = vmatmul.bf16.vlgmr.msra.gmra.mxu0 %v5686_v50 }
  0x44   :  { %355 = vmatmul.bf16.vlgmr.msra.gmra.mxu1 %v5686_v50 }
  0x46   :  { %371 = vmatpush.bf16.msra.mxu2 %v3994_v38 }
  0x4a   :  { %372 = vmatpush.bf16.msra.mxu2 %v3982_v41 }
  0x4e   :  { %373 = vmatpush.bf16.msra.mxu2 %v3970_v44 }
  0x51   :  { %374 = vmatmul.bf16.vlgmr.msra.gmra.mxu2 %v5686_v50 }
  0x53   :  { %341 = vmatmul.bf16.gmra.mxu0 %v5702_v53 }
  0x54   :  { %360 = vmatmul.bf16.gmra.mxu1 %v5702_v53 }
  0x61   :  { %379 = vmatmul.bf16.gmra.mxu2 %v5702_v53  ;;  %v145_v53 = vld [vmem:[%s6603_s29] sm:$0xf] }
  0xc0   :  { %v337_v57 = vpop.f32.mrf.mxu0 }
  0xc1   :  { %v338_v58 = vadd.f32 %v337_v57, %v194_v55  ;;  %v356_v59 = vpop.f32.mrf.mxu1 }
  0xc2   :  { %v357_v60 = vadd.f32 %v356_v59, %v195_v56 }
  0xc4   :  { %v385_v61 = vpack.c.bf16 %v357_v60, %v338_v58 }
  0xc6   :  { %397 = vrot.lane.b32.xlu0 %v385_v61, %s5450_s8  ;;  %v405_v62 = vrot.slane %v385_v61, 4 }
  0xc8   :  { %v339_v63 = vpop.f32.mrf.mxu0  ;;  %v430_v0 = vsel %vm425_vm0, %v405_v62, 0 }
  0xc9   :  { %v340_v1 = vadd.f32 %v339_v63, %v194_v55  ;;  %v358_v2 = vpop.f32.mrf.mxu1  ;;  %439 = vmatpush.bf16.xpose.msra.mxu3 %v430_v0 }
  0xca   :  { %v359_v3 = vadd.f32 %v358_v2, %v195_v56 }
  0xcc   :  { %v387_v4 = vpack.c.bf16 %v359_v3, %v340_v1 }
  0xce   :  { %399 = vrot.lane.b32.xlu0 %v387_v4, %s5450_s8  ;;  %v406_v5 = vrot.slane %v387_v4, 4 }
  0xd0   :  { %4055 = vmatmul.msk.bf16.vlgmr.msra.gmra.mxu3 %vm425_vm0, %v385_v61  ;;  %v342_v6 = vpop.f32.mrf.mxu0  ;;  %v449_v7 = vsel %vm425_vm0, %v406_v5, 0  ;;  %v5783_v61 = vperm.slane %v145_v53, 0 }
  0xd1   :  { %v343_v8 = vadd.f32 %v342_v6, %v194_v55  ;;  %v361_v9 = vpop.f32.mrf.mxu1  ;;  %458 = vmatpush.bf16.xpose.msrb.mxu3 %v449_v7 }
  0xd2   :  { %v362_v10 = vadd.f32 %v361_v9, %v195_v56 }
  0xd4   :  { %v389_v11 = vpack.c.bf16 %v362_v10, %v343_v8  ;;  %v148_v10 = vrot.slane %v145_v53, 2  ;;  %v375_v21 = vpop.f32.mrf.mxu2 }
  0xd6   :  { %401 = vrot.lane.b32.xlu1 %v389_v11, %s5450_s8  ;;  %v407_v12 = vrot.slane %v389_v11, 4 }
  0xd8   :  { %v344_v13 = vpop.f32.mrf.mxu0  ;;  %v468_v14 = vsel %vm425_vm0, %v407_v12, 0 }
  0xd9   :  { %v345_v15 = vadd.f32 %v344_v13, %v194_v55  ;;  %v363_v16 = vpop.f32.mrf.mxu1  ;;  %477 = vmatpush.bf16.xpose.msra.mxu3 %v468_v14 }
  0xda   :  { %v364_v17 = vadd.f32 %v363_v16, %v195_v56  ;;  %v149_v16 = vrot.slane %v145_v53, 3 }
  0xdc   :  { %v391_v18 = vpack.c.bf16 %v364_v17, %v345_v15  ;;  %v5804_v17 = vperm.slane %v149_v16, 0  ;;  %v377_v27 = vpop.f32.mrf.mxu2 }
  0xde   :  { %403 = vrot.lane.b32.xlu1 %v391_v18, %s5450_s8  ;;  %v408_v19 = vrot.slane %v391_v18, 4 }
  0xe0   :  { %4056 = vmatmul.msk.bf16.vlgmr.msrb.gmra.mxu3 %vm425_vm0, %v387_v4  ;;  %v487_v20 = vsel %vm425_vm0, %v408_v19, 0  ;;  %v147_v4 = vrot.slane %v145_v53, 1 }
  0xe1   :  { %496 = vmatpush.bf16.xpose.msrb.mxu3 %v487_v20 }
  0xe2   :  { %v5790_v5 = vperm.slane %v147_v4, 0 }
  0xe4   :  { %v380_v30 = vpop.f32.mrf.mxu2 }
  0xec   :  { %v382_v34 = vpop.f32.mrf.mxu2 }
  0xf0   :  { %4057 = vmatmul.msk.bf16.vlgmr.msra.gmra.mxu3 %vm425_vm0, %v389_v11  ;;  %v5797_v11 = vperm.slane %v148_v10, 0 }
 0x100   :  { %4058 = vmatmul.msk.bf16.vlgmr.msrb.gmra.mxu3 %vm425_vm0, %v391_v18  ;;  %v196_v18 = vperm.slane %v5709_v54, 2 }
 0x102   :  { %v376_v23 = vadd.f32 %v375_v21, %v196_v18  ;;  %v378_v28 = vadd.f32 %v377_v27, %v196_v18  ;;  %v381_v31 = vadd.f32 %v380_v30, %v196_v18  ;;  %v383_v35 = vadd.f32 %v382_v34, %v196_v18 }
 0x104   :  { %v386_v24 = vpack.c.bf16 %v376_v23, %v376_v23  ;;  %v5813_v29 = vpack.c.bf16 %v378_v28, %v378_v28  ;;  %v5818_v32 = vpack.c.bf16 %v381_v31, %v381_v31  ;;  %v392_v36 = vpack.c.bf16 %v383_v35, %v383_v35 }
 0x106   :  { %v680_v25 = vsel %vm678_vm2, %v386_v24, 0  ;;  %v699_v54 = vsel %vm678_vm2, %v5813_v29, 0  ;;  %v718_v33 = vsel %vm678_vm2, %v5818_v32, 0  ;;  %v737_v37 = vsel %vm678_vm2, %v392_v36, 0 }
 0x138   :  { %v398_v45 = vpop.permute.xlu0 %397 }
 0x139   :  { %v409_v46 = vrot.slane %v398_v45, 4 }
 0x13b   :  { %v506_v49 = vsel %vm425_vm0, %v409_v46, 0 }
 0x13c   :  { %515 = vmatpush.bf16.xpose.msrb.mxu0 %v506_v49 }
 0x140   :  { %v400_v55 = vpop.permute.xlu0 %399 }
 0x141   :  { %v410_v56 = vrot.slane %v400_v55, 4 }
 0x143   :  { %4059 = vmatmul.msk.bf16.vlgmr.msrb.gmra.mxu0 %vm425_vm0, %v398_v45  ;;  %v525_v57 = vsel %vm425_vm0, %v410_v56, 0 }
 0x144   :  { %534 = vmatpush.bf16.xpose.msrb.mxu1 %v525_v57  ;;  %689 = vmatpush.bf16.msra.mxu0 %v680_v25 }
 0x148   :  { %v402_v58 = vpop.permute.xlu1 %401 }
 0x149   :  { %v411_v59 = vrot.slane %v402_v58, 4 }
 0x14b   :  { %4060 = vmatmul.msk.bf16.vlgmr.msrb.gmra.mxu1 %vm425_vm0, %v400_v55  ;;  %v544_v50 = vsel %vm425_vm0, %v411_v59, 0 }
 0x14c   :  { %553 = vmatpush.bf16.xpose.msrb.mxu2 %v544_v50  ;;  %708 = vmatpush.bf16.msra.mxu1 %v699_v54 }
 0x150   :  { %v404_v60 = vpop.permute.xlu1 %403 }
 0x151   :  { %v412_v62 = vrot.slane %v404_v60, 4 }
 0x153   :  { %v441_v63 = vpop.f32.mrf.mxu3  ;;  %4061 = vmatmul.msk.bf16.vlgmr.msrb.gmra.mxu2 %vm425_vm0, %v402_v58  ;;  %v563_v0 = vsel %vm425_vm0, %v412_v62, 0 }
 0x154   :  { %v442_v1 = vadd.f32 %v441_v63, %v5783_v61  ;;  %572 = vmatpush.bf16.xpose.msra.mxu3 %v563_v0  ;;  %727 = vmatpush.bf16.msra.mxu2 %v718_v33 }
 0x156   :  { %v579_v2 = vsel %vm578_vm1, %v442_v1, -inf }
 0x157   :  { %580 = vmax.xlane.f32.xlu2 %v579_v2 }
 0x15b   :  { %v443_v3 = vpop.f32.mrf.mxu3  ;;  %4062 = vmatmul.msk.bf16.vlgmr.msra.gmra.mxu3 %vm425_vm0, %v404_v60 }
 0x15c   :  { %746 = vmatpush.bf16.msrb.mxu3 %v737_v37 }
 0x163   :  { %v460_v6 = vpop.f32.mrf.mxu3 }
 0x164   :  { %v5793_v7 = vadd.f32 %v460_v6, %v5790_v5 }
 0x166   :  { %v582_v8 = vsel %vm578_vm1, %v5793_v7, -inf }
 0x167   :  { %583 = vmax.xlane.f32.xlu2 %v582_v8 }
 0x16b   :  { %v462_v9 = vpop.f32.mrf.mxu3 }
 0x173   :  { %v479_v12 = vpop.f32.mrf.mxu3 }
 0x174   :  { %v5800_v13 = vadd.f32 %v479_v12, %v5797_v11 }
 0x176   :  { %v585_v14 = vsel %vm578_vm1, %v5800_v13, -inf }
 0x177   :  { %586 = vmax.xlane.f32.xlu0 %v585_v14 }
 0x17b   :  { %v481_v15 = vpop.f32.mrf.mxu3 }
 0x183   :  { %v498_v19 = vpop.f32.mrf.mxu3 }
 0x184   :  { %v5808_v20 = vadd.f32 %v498_v19, %v5804_v17 }
 0x186   :  { %v588_v22 = vsel %vm578_vm1, %v5808_v20, -inf }
 0x187   :  { %589 = vmax.xlane.f32.xlu1 %v588_v22 }
 0x18b   :  { %v500_v26 = vpop.f32.mrf.mxu3 }
 0x1a0   :  { %417 = vrot.lane.b32.xlu1 %v386_v24, %s5450_s8 }
 0x1c0   :  { %v517_v38 = vpop.f32.mrf.mxu0 }
 0x1c1   :  { %v518_v39 = vadd.f32 %v517_v38, %v5783_v61 }
 0x1c3   :  { %v591_v40 = vsel %vm578_vm1, %v518_v39, -inf }
 0x1c4   :  { %592 = vmax.xlane.f32.xlu2 %v591_v40 }
 0x1c8   :  { %v519_v41 = vpop.f32.mrf.mxu0  ;;  %v536_v42 = vpop.f32.mrf.mxu1 }
 0x1c9   :  { %v537_v43 = vadd.f32 %v536_v42, %v5790_v5 }
 0x1ca   :  { %v581_v44 = vpop.xlane.xlu2 %580 }
 0x1cb   :  { %v603_v45 = vsub.f32 %v442_v1, %v581_v44  ;;  %v594_v46 = vsel %vm578_vm1, %v537_v43, -inf }
 0x1cc   :  { %595 = vmax.xlane.f32.xlu2 %v594_v46 }
 0x1cd   :  { %v611_v49 = vmul.f32 1.442695, %v603_v45 }
 0x1cf   :  { %5160 = vpow2.f32 %v611_v49 }
 0x1d0   :  { %v538_v55 = vpop.f32.mrf.mxu1 }
 0x1d5   :  { %v5161_v56 = vpop.eup %5160 }
 0x1d6   :  { %v555_v57 = vpop.f32.mrf.mxu2  ;;  %v627_v58 = vsel %vm578_vm1, %v5161_v56, 0.0 }
 0x1d7   :  { %628 = vadd.xlane.f32.xlu2 %v627_v58  ;;  %v556_v59 = vadd.f32 %v555_v57, %v5797_v11 }
 0x1d9   :  { %v597_v63 = vsel %vm578_vm1, %v556_v59, -inf }
 0x1da   :  { %v584_v50 = vpop.xlane.xlu2 %583 }
 0x1db   :  { %v604_v53 = vsub.f32 %v5793_v7, %v584_v50 }
 0x1dd   :  { %v613_v0 = vmul.f32 1.442695, %v604_v53 }
 0x1de   :  { %v557_v60 = vpop.f32.mrf.mxu2  ;;  %v574_v62 = vpop.f32.mrf.mxu3 }
 0x1df   :  { %598 = vmax.xlane.f32.xlu2 %v597_v63  ;;  %v575_v1 = vadd.f32 %v574_v62, %v5804_v17  ;;  %5162 = vpow2.f32 %v613_v0 }
 0x1e1   :  { %v600_v3 = vsel %vm578_vm1, %v575_v1, -inf }
 0x1e5   :  { %v5163_v6 = vpop.eup %5162 }
 0x1e6   :  { %v576_v2 = vpop.f32.mrf.mxu3  ;;  %v630_v7 = vsel %vm578_vm1, %v5163_v6, 0.0 }
 0x1e7   :  { %601 = vmax.xlane.f32.xlu2 %v600_v3 }
 0x1ea   :  { %v587_v4 = vpop.xlane.xlu0 %586 }
 0x1eb   :  { %v605_v8 = vsub.f32 %v5800_v13, %v587_v4 }
 0x1ed   :  { %v615_v9 = vmul.f32 1.442695, %v605_v8 }
 0x1ef   :  { %5164 = vpow2.f32 %v615_v9  ;;  %631 = vadd.xlane.f32.xlu2 %v630_v7 }
 0x1f5   :  { %v5165_v10 = vpop.eup %5164 }
 0x1f6   :  { %v633_v12 = vsel %vm578_vm1, %v5165_v10, 0.0 }
 0x1f7   :  { %634 = vadd.xlane.f32.xlu0 %v633_v12 }
 0x1fa   :  { %v590_v14 = vpop.xlane.xlu1 %589 }
 0x1fb   :  { %v606_v15 = vsub.f32 %v5808_v20, %v590_v14 }
 0x1fd   :  { %v617_v16 = vmul.f32 1.442695, %v606_v15 }
 0x1ff   :  { %5166 = vpow2.f32 %v617_v16 }
 0x205   :  { %v5167_v18 = vpop.eup %5166 }
 0x206   :  { %v636_v19 = vsel %vm578_vm1, %v5167_v18, 0.0 }
 0x207   :  { %637 = vadd.xlane.f32.xlu1 %v636_v19 }
 0x212   :  { %v418_v21 = vpop.permute.xlu1 %417 }
 0x213   :  { %v756_v13 = vsel %vm678_vm2, %v418_v21, 0 }
 0x214   :  { %765 = vmatpush.bf16.msrb.mxu0 %v756_v13 }
 0x220   :  { %423 = vrot.lane.b32.xlu1 %v392_v36, %s5450_s8 }
 0x237   :  { %v593_v22 = vpop.xlane.xlu2 %592 }
 0x238   :  { %v607_v23 = vsub.f32 %v518_v39, %v593_v22 }
 0x23a   :  { %v619_v24 = vmul.f32 1.442695, %v607_v23 }
 0x23c   :  { %5168 = vpow2.f32 %v619_v24 }
 0x23f   :  { %v596_v25 = vpop.xlane.xlu2 %595 }
 0x240   :  { %v608_v26 = vsub.f32 %v537_v43, %v596_v25 }
 0x242   :  { %v5169_v27 = vpop.eup %5168  ;;  %v621_v20 = vmul.f32 1.442695, %v608_v26 }
 0x243   :  { %v639_v28 = vsel %vm578_vm1, %v5169_v27, 0.0 }
 0x244   :  { %5170 = vpow2.f32 %v621_v20  ;;  %640 = vadd.xlane.f32.xlu2 %v639_v28 }
 0x24a   :  { %v5171_v54 = vpop.eup %5170  ;;  %v629_v30 = vpop.xlane.xlu2 %628 }
 0x24b   :  { %5172 = vrcp.f32 %v629_v30  ;;  %v642_v31 = vsel %vm578_vm1, %v5171_v54, 0.0 }
 0x24c   :  { %643 = vadd.xlane.f32.xlu0 %v642_v31 }
 0x251   :  { %v5173_v33 = vpop.eup %5172 }
 0x252   :  { %v659_v34 = vmul.f32 %v5173_v33, %v5161_v56  ;;  %v599_v35 = vpop.xlane.xlu2 %598 }
 0x253   :  { %v609_v36 = vsub.f32 %v556_v59, %v599_v35 }
 0x254   :  { %v667_v37 = vpack.c.bf16 %v659_v34, %v659_v34 }
 0x255   :  { %v623_v38 = vmul.f32 1.442695, %v609_v36 }
 0x256   :  { %4063 = vmatmul.msk.bf16.vlgmr.msra.gmra.mxu0 %vm578_vm1, %v667_v37  ;;  %v4932_v37 = vld [vmem:[#allocation2 + $0x38] sm:$0xff] }
 0x257   :  { %5174 = vpow2.f32 %v623_v38  ;;  %918 = vmatpush.bf16.msra.mxu0 %v4932_v37  ;;  %v4931_v38 = vld [vmem:[#allocation2 + $0x30] sm:$0xff]  ;;  %v4960_v37 = vld [vmem:[#allocation4 + $0xd4] sm:$0xf0] }
 0x25a   :  { %v602_v39 = vpop.xlane.xlu2 %601 }
 0x25b   :  { %v610_v40 = vsub.f32 %v575_v1, %v602_v39  ;;  %919 = vmatpush.bf16.msra.mxu0 %v4931_v38  ;;  %v4930_v39 = vld [vmem:[#allocation2 + $0x28] sm:$0xff] }
 0x25c   :  { %419 = vrot.lane.b32.xlu2 %v5813_v29, %s5450_s8 }
 0x25d   :  { %v5175_v41 = vpop.eup %5174  ;;  %v625_v42 = vmul.f32 1.442695, %v610_v40  ;;  %v4929_v40 = vld [vmem:[#allocation2 + $0x20] sm:$0xff] }
 0x25e   :  { %v645_v43 = vsel %vm578_vm1, %v5175_v41, 0.0 }
 0x25f   :  { %5176 = vpow2.f32 %v625_v42  ;;  %646 = vadd.xlane.f32.xlu0 %v645_v43  ;;  %920 = vmatpush.bf16.msra.mxu0 %v4930_v39  ;;  %v4928_v42 = vld [vmem:[#allocation2 + $0x18] sm:$0xff]  ;;  %v4927_v43 = vld [vmem:[#allocation2 + $0x10] sm:$0xff] }
 0x262   :  { %v632_v44 = vpop.xlane.xlu2 %631 }
 0x263   :  { %5178 = vrcp.f32 %v632_v44  ;;  %921 = vmatpush.bf16.msra.mxu0 %v4929_v40  ;;  %v4958_v40 = vld [vmem:[#allocation4 + $0xcc] sm:$0xf] }
 0x265   :  { %v5177_v45 = vpop.eup %5176 }
 0x266   :  { %v648_v46 = vsel %vm578_vm1, %v5177_v45, 0.0 }
 0x267   :  { %649 = vadd.xlane.f32.xlu0 %v648_v46  ;;  %922 = vmatpush.bf16.msra.mxu0 %v4928_v42 }
 0x269   :  { %v5179_v49 = vpop.eup %5178 }
 0x26a   :  { %v660_v55 = vmul.f32 %v5179_v49, %v5163_v6  ;;  %v635_v56 = vpop.xlane.xlu0 %634 }
 0x26b   :  { %5180 = vrcp.f32 %v635_v56  ;;  %923 = vmatpush.bf16.msra.mxu0 %v4927_v43  ;;  %v4925_v56 = vld [vmem:[#allocation2] sm:$0xff] }
 0x26c   :  { %v668_v57 = vpack.c.bf16 %v660_v55, %v660_v55  ;;  %v4185_v43 = vld [vmem:[#allocation4 + $0xa0] sm:$0xf] }
 0x26e   :  { %4064 = vmatmul.msk.bf16.vlgmr.msra.gmra.mxu1 %vm578_vm1, %v668_v57 }
 0x271   :  { %v5181_v29 = vpop.eup %5180 }
 0x272   :  { %v661_v58 = vmul.f32 %v5181_v29, %v5165_v10 }
 0x274   :  { %v669_v59 = vpack.c.bf16 %v661_v58, %v661_v58 }
 0x276   :  { %4065 = vmatmul.msk.bf16.vlgmr.msra.gmra.mxu2 %vm578_vm1, %v669_v59 }
 0x27a   :  { %v638_v50 = vpop.xlane.xlu1 %637 }
 0x27b   :  { %5182 = vrcp.f32 %v638_v50  ;;  %421 = vrot.lane.b32.xlu0 %v5818_v32, %s5450_s8 }
 0x281   :  { %v5183_v53 = vpop.eup %5182 }
 0x282   :  { %v662_v60 = vmul.f32 %v5183_v53, %v5167_v18 }
 0x284   :  { %v670_v62 = vpack.c.bf16 %v662_v60, %v662_v60 }
 0x286   :  { %4066 = vmatmul.msk.bf16.vlgmr.msrb.gmra.mxu3 %vm578_vm1, %v670_v62 }
 0x292   :  { %v424_v63 = vpop.permute.xlu1 %423 }
 0x293   :  { %v813_v0 = vsel %vm678_vm2, %v424_v63, 0 }
 0x294   :  { %822 = vmatpush.bf16.msra.mxu3 %v813_v0 }
 0x2b7   :  { %v641_v1 = vpop.xlane.xlu2 %640 }
 0x2b8   :  { %5184 = vrcp.f32 %v641_v1 }
 0x2be   :  { %v5185_v2 = vpop.eup %5184 }
 0x2bf   :  { %v663_v3 = vmul.f32 %v5185_v2, %v5169_v27  ;;  %v644_v4 = vpop.xlane.xlu0 %643  ;;  %v420_v6 = vpop.permute.xlu2 %419 }
 0x2c0   :  { %5186 = vrcp.f32 %v644_v4  ;;  %v775_v8 = vsel %vm678_vm2, %v420_v6, 0 }
 0x2c1   :  { %v671_v9 = vpack.c.bf16 %v663_v3, %v663_v3  ;;  %784 = vmatpush.bf16.msrb.mxu1 %v775_v8  ;;  %v5146_v3 = vld [vmem:[%s6578_s5] ss:$0 sm:$0xff] }
 0x2c3   :  { %4067 = vmatmul.msk.bf16.vlgmr.msrb.gmra.mxu0 %vm578_vm1, %v671_v9 }
 0x2c6   :  { %v5187_v32 = vpop.eup %5186 }
 0x2c7   :  { %v664_v7 = vmul.f32 %v5187_v32, %v5171_v54 }
 0x2c9   :  { %v672_v10 = vpack.c.bf16 %v664_v7, %v664_v7 }
 0x2cb   :  { %4068 = vmatmul.msk.bf16.vlgmr.msrb.gmra.mxu1 %vm578_vm1, %v672_v10 }
 0x2d2   :  { %v647_v12 = vpop.xlane.xlu0 %646 }
 0x2d3   :  { %v691_v14 = vpop.f32.mrf.mxu0 }
 0x2da   :  { %v650_v15 = vpop.xlane.xlu0 %649 }
 0x2db   :  { %5188 = vrcp.f32 %v650_v15  ;;  %v693_v16 = vpop.f32.mrf.mxu0 }
 0x2dc   :  { %5190 = vrcp.f32 %v647_v12 }
 0x2e1   :  { %v5189_v18 = vpop.eup %5188 }
 0x2e2   :  { %v666_v19 = vmul.f32 %v5189_v18, %v5177_v45  ;;  %v5191_v13 = vpop.eup %5190  ;;  %v4926_v45 = vld [vmem:[#allocation2 + $0x8] sm:$0xff] }
 0x2e3   :  { %v665_v23 = vmul.f32 %v5191_v13, %v5175_v41  ;;  %924 = vmatpush.bf16.msra.mxu0 %v4926_v45  ;;  %v4217_v13 = vld [vmem:[#allocation4 + $0xe0] sm:$0xf]  ;;  %v4953_v45 = vld [vmem:[#allocation4 + $0xa4] sm:$0xf] }
 0x2e4   :  { %v674_v21 = vpack.c.bf16 %v666_v19, %v666_v19 }
 0x2e5   :  { %v673_v26 = vpack.c.bf16 %v665_v23, %v665_v23 }
 0x2e6   :  { %4070 = vmatmul.msk.bf16.vlgmr.msra.gmra.mxu3 %vm578_vm1, %v674_v21 }
 0x2e7   :  { %925 = vmatpush.bf16.msra.mxu0 %v4925_v56  ;;  %v4956_v56 = vld [vmem:[#allocation4 + $0xb4] sm:$0xf0] }
 0x2eb   :  { %v710_v22 = vpop.f32.mrf.mxu1 }
 0x2ed   :  { %v422_v24 = vpop.permute.xlu0 %421 }
 0x2ee   :  { %v794_v25 = vsel %vm678_vm2, %v422_v24, 0  ;;  %v4219_v24 = vld [vmem:[#allocation4 + $0xf0] sm:$0xf0] }
 0x2ef   :  { %803 = vmatpush.bf16.msrb.mxu2 %v794_v25  ;;  %v4225_v25 = vld [vmem:[#allocation4 + $0xe8] sm:$0xf] }
 0x2f2   :  { %4069 = vmatmul.msk.bf16.vlgmr.msrb.gmra.mxu2 %vm578_vm1, %v673_v26  ;;  %v4964_v26 = vld [vmem:[#allocation4 + $0xf4] sm:$0xf0] }
 0x2f3   :  { %v712_v27 = vpop.f32.mrf.mxu1 }
 0x2f9   :  { %v729_v20 = vpop.f32.mrf.mxu2 }
 0x301   :  { %v731_v28 = vpop.f32.mrf.mxu2 }
 0x302   :  { %v4962_v28 = vld [vmem:[#allocation4 + $0xec] sm:$0xf] }
 0x309   :  { %v748_v54 = vpop.f32.mrf.mxu3 }
 0x311   :  { %v750_v30 = vpop.f32.mrf.mxu3 }
 0x312   :  { %v4201_v30 = vld [vmem:[#allocation4 + $0xc0] sm:$0xf] }
 0x340   :  { %v767_v31 = vpop.f32.mrf.mxu0 }
 0x348   :  { %v769_v33 = vpop.f32.mrf.mxu0  ;;  %v786_v34 = vpop.f32.mrf.mxu1 }
 0x349   :  { %v5126_v35 = vpack.i.bf16 %v786_v34, %v767_v31  ;;  %v4959_v31 = vld [vmem:[#allocation4 + $0xcc] sm:$0xf0]  ;;  %v4957_v33 = vld [vmem:[#allocation4 + $0xc4] sm:$0xf] }
 0x34a   :  { %v4202_v34 = vor.u32 %v4959_v31, %v4201_v30  ;;  %v4942_v31 = vld [vmem:[#allocation4 + $0x4c] sm:$0xf] }
 0x34b   :  { %5127 = vrot.lane.b32.xlu2 %v5126_v35, %s5450_s8  ;;  %v4203_v35 = vld [vmem:[#allocation4 + $0xd0] sm:$0xf0] }
 0x34c   :  { %v4206_v38 = vor.u32 %v4957_v33, %v4203_v35  ;;  %v4147_v33 = vld [vmem:[#allocation4 + $0x58] sm:$0xf0] }
 0x34d   :  { %v4150_v35 = vor.u32 %v4942_v31, %v4147_v33 }
 0x350   :  { %v788_v36 = vpop.f32.mrf.mxu1 }
 0x351   :  { %v4209_v36 = vld [vmem:[#allocation4 + $0xc8] sm:$0xf] }
 0x352   :  { %v4210_v39 = vor.u32 %v4960_v37, %v4209_v36  ;;  %v4121_v37 = vld [vmem:[#allocation4 + $0x20] sm:$0xf] }
 0x369   :  { %v824_v41 = vpop.f32.mrf.mxu3 }
 0x371   :  { %v826_v44 = vpop.f32.mrf.mxu3 }
 0x372   :  { %v4955_v44 = vld [vmem:[#allocation4 + $0xac] sm:$0xf0] }
 0x375   :  { %v805_v46 = vpop.f32.mrf.mxu2 }
 0x376   :  { %v5131_v49 = vpack.i.bf16 %v824_v41, %v805_v46  ;;  %v4211_v41 = vld [vmem:[#allocation4 + $0xd8] sm:$0xf0]  ;;  %v4186_v46 = vor.u32 %v4955_v44, %v4185_v43  ;;  %v4129_v43 = vld [vmem:[#allocation4 + $0x28] sm:$0xf] }
 0x377   :  { %v4214_v42 = vor.u32 %v4958_v40, %v4211_v41  ;;  %v4937_v41 = vld [vmem:[#allocation4 + $0x24] sm:$0xf] }
 0x378   :  { %5132 = vrot.lane.b32.xlu1 %v5131_v49, %s5450_s8  ;;  %v4187_v49 = vld [vmem:[#allocation4 + $0xb0] sm:$0xf0] }
 0x37d   :  { %v807_v55 = vpop.f32.mrf.mxu2 }
 0x37e   :  { %v4193_v55 = vld [vmem:[#allocation4 + $0xa8] sm:$0xf] }
 0x3a5   :  { %v5128_v57 = vpop.permute.xlu2 %5127 }
 0x3a6   :  { %v5130_v29 = vunpack.i.h.bf16 %v5128_v57  ;;  %v5129_v58 = vunpack.i.l.bf16 %v5128_v57  ;;  %v4190_v57 = vor.u32 %v4953_v45, %v4187_v49  ;;  %v4940_v49 = vld [vmem:[#allocation4 + $0x34] sm:$0xf0] }
 0x3a8   :  { %v845_v59 = vsel %vm425_vm0, %v710_v22, %v5130_v29  ;;  %v844_v50 = vsel %vm425_vm0, %v691_v14, %v5129_v58  ;;  %v4961_v22 = vld [vmem:[#allocation4 + $0xe4] sm:$0xf]  ;;  %v4194_v29 = vor.u32 %v4956_v56, %v4193_v55  ;;  %v4954_v58 = vld [vmem:[#allocation4 + $0xac] sm:$0xf]  ;;  %v4130_v56 = vor.u32 %v4940_v49, %v4129_v43 }
 0x3a9   :  { %v848_v53 = vpack.c.bf16 %v845_v59, %v844_v50  ;;  %v4222_v27 = vor.u32 %v4961_v22, %v4219_v24  ;;  %v4195_v59 = vld [vmem:[#allocation4 + $0xb8] sm:$0xf0]  ;;  %v4137_v24 = vld [vmem:[#allocation4 + $0x40] sm:$0xf]  ;;  %v4938_v55 = vld [vmem:[#allocation4 + $0x2c] sm:$0xf] }
 0x3aa   :  { %v4198_v50 = vor.u32 %v4954_v58, %v4195_v59  ;;  %v4163_v22 = vld [vmem:[#allocation4 + $0x78] sm:$0xf0]  ;;  %v4935_v58 = vld [vmem:[#allocation4 + $0xc] sm:$0xf0] }
 0x3ab   :  { %926 = vmatmul.bf16.vlgmr.msra.gmra.mxu0 %v848_v53  ;;  %1268 = vmatpush.bf16.msra.mxu2 %v4222_v27  ;;  %v4169_v53 = vld [vmem:[#allocation4 + $0x80] sm:$0xf] }
 0x3af   :  { %1269 = vmatpush.bf16.msra.mxu2 %v4206_v38  ;;  %v4939_v38 = vld [vmem:[#allocation4 + $0x2c] sm:$0xf0] }
 0x3b0   :  { %v4122_v40 = vor.u32 %v4939_v38, %v4121_v37  ;;  %v5148_v38 = vld [vmem:[%s6580_s7] ss:$0 sm:$0xff] }
 0x3b3   :  { %1270 = vmatpush.bf16.msra.mxu2 %v4190_v57  ;;  %v4131_v57 = vld [vmem:[#allocation4 + $0x38] sm:$0xf0] }
 0x3ea   :  { %v5133_v60 = vpop.permute.xlu1 %5132 }
 0x3eb   :  { %v5135_v62 = vunpack.i.h.bf16 %v5133_v60  ;;  %v5134_v63 = vunpack.i.l.bf16 %v5133_v60  ;;  %v4951_v60 = vld [vmem:[#allocation4 + $0x8c] sm:$0xf0] }
 0x3ed   :  { %v846_v0 = vsel %vm425_vm0, %v729_v20, %v5134_v63  ;;  %v847_v1 = vsel %vm425_vm0, %v748_v54, %v5135_v62  ;;  %v4226_v20 = vor.u32 %v4964_v26, %v4225_v25  ;;  %v4227_v54 = vld [vmem:[#allocation4 + $0xf8] sm:$0xf0]  ;;  %v4949_v62 = vld [vmem:[#allocation4 + $0x84] sm:$0xf]  ;;  %v4170_v63 = vor.u32 %v4951_v60, %v4169_v53  ;;  %v4943_v25 = vld [vmem:[#allocation4 + $0x4c] sm:$0xf0] }
 0x3ee   :  { %v849_v2 = vpack.c.bf16 %v847_v1, %v846_v0  ;;  %v4171_v0 = vld [vmem:[#allocation4 + $0x90] sm:$0xf0]  ;;  %v4177_v1 = vld [vmem:[#allocation4 + $0x88] sm:$0xf]  ;;  %v4941_v26 = vld [vmem:[#allocation4 + $0x44] sm:$0xf]  ;;  %v4138_v27 = vor.u32 %v4943_v25, %v4137_v24 }
 0x3ef   :  { %1287 = vmatpush.bf16.msrb.mxu3 %v4226_v20  ;;  %v4139_v20 = vld [vmem:[#allocation4 + $0x50] sm:$0xf0]  ;;  %v4933_v60 = vld [vmem:[#allocation4 + $0x4] sm:$0xf] }
 0x3f0   :  { %931 = vmatmul.bf16.gmra.mxu0 %v849_v2  ;;  %v4952_v2 = vld [vmem:[#allocation4 + $0x94] sm:$0xf0] }
 0x3f3   :  { %1288 = vmatpush.bf16.msrb.mxu3 %v4210_v39 }
 0x3f7   :  { %1289 = vmatpush.bf16.msrb.mxu3 %v4194_v29  ;;  %v4105_v29 = vld [vmem:[#allocation4] sm:$0xf] }
 0x3f8   :  { %v4106_v53 = vor.u32 %v4935_v58, %v4105_v29 }
 0x428   :  { %v927_v4 = vpop.f32.mrf.mxu0 }
 0x429   :  { %v928_v6 = vadd.f32 %v5146_v3, %v927_v4  ;;  %v4178_v4 = vor.u32 %v4952_v2, %v4177_v1  ;;  %v4936_v1 = vld [vmem:[#allocation4 + $0x14] sm:$0xf0]  ;;  %v4934_v2 = vld [vmem:[#allocation4 + $0xc] sm:$0xf] }
 0x42b   :  { %v5869_v8 = vadd.f32 %v928_v6, %v5677_v47  ;;  %v4950_v6 = vld [vmem:[#allocation4 + $0x8c] sm:$0xf]  ;;  %1290 = vmatpush.bf16.msrb.mxu3 %v4178_v4 }
 0x42d   :  { %943 = vadd.xlane.f32.xlu2 %v5869_v8  ;;  %v955_v9 = vmul.f32 %v5869_v8, %v5869_v8 }
 0x42f   :  { %959 = vadd.xlane.f32.xlu0 %v955_v9  ;;  %v4179_v9 = vld [vmem:[#allocation4 + $0x98] sm:$0xf0] }
 0x430   :  { %v929_v32 = vpop.f32.mrf.mxu0 }
 0x431   :  { %v930_v7 = vadd.f32 %v5146_v3, %v929_v32  ;;  %v4182_v32 = vor.u32 %v4950_v6, %v4179_v9 }
 0x433   :  { %v5875_v10 = vadd.f32 %v930_v7, %v5682_v48  ;;  %v4153_v7 = vld [vmem:[#allocation4 + $0x60] sm:$0xf] }
 0x435   :  { %945 = vadd.xlane.f32.xlu1 %v5875_v10  ;;  %v956_v12 = vmul.f32 %v5875_v10, %v5875_v10 }
 0x437   :  { %961 = vadd.xlane.f32.xlu2 %v956_v12  ;;  %v4947_v12 = vld [vmem:[#allocation4 + $0x6c] sm:$0xf0] }
 0x46d   :  { %v932_v14 = vpop.f32.mrf.mxu0 }
 0x46e   :  { %v933_v47 = vadd.f32 %v5146_v3, %v932_v14  ;;  %v4945_v14 = vld [vmem:[#allocation4 + $0x64] sm:$0xf] }
 0x470   :  { %v5881_v15 = vadd.f32 %v933_v47, %v5693_v51  ;;  %v4963_v51 = vld [vmem:[#allocation4 + $0xec] sm:$0xf0]  ;;  %v4154_v47 = vor.u32 %v4947_v12, %v4153_v7 }
 0x471   :  { %v4218_v23 = vor.u32 %v4963_v51, %v4217_v13  ;;  %v4946_v51 = vld [vmem:[#allocation4 + $0x6c] sm:$0xf] }
 0x472   :  { %947 = vadd.xlane.f32.xlu1 %v5881_v15  ;;  %v957_v16 = vmul.f32 %v5881_v15, %v5881_v15 }
 0x473   :  { %1249 = vmatpush.bf16.msra.mxu1 %v4218_v23  ;;  %v4166_v23 = vor.u32 %v4946_v51, %v4163_v22 }
 0x474   :  { %963 = vadd.xlane.f32.xlu2 %v957_v16  ;;  %v4155_v16 = vld [vmem:[#allocation4 + $0x70] sm:$0xf0] }
 0x475   :  { %v934_v18 = vpop.f32.mrf.mxu0 }
 0x476   :  { %v935_v48 = vadd.f32 %v5146_v3, %v934_v18  ;;  %v4174_v3 = vor.u32 %v4949_v62, %v4171_v0  ;;  %v4161_v18 = vld [vmem:[#allocation4 + $0x68] sm:$0xf]  ;;  %v4107_v62 = vld [vmem:[#allocation4 + $0x10] sm:$0xf0] }
 0x477   :  { %1250 = vmatpush.bf16.msra.mxu1 %v4202_v34  ;;  %v4110_v0 = vor.u32 %v4933_v60, %v4107_v62 }
 0x478   :  { %v5887_v19 = vadd.f32 %v935_v48, %v5698_v52  ;;  %v4230_v52 = vor.u32 %v4962_v28, %v4227_v54  ;;  %1271 = vmatpush.bf16.msra.mxu2 %v4174_v3  ;;  %v4948_v48 = vld [vmem:[#allocation4 + $0x74] sm:$0xf0]  ;;  %v4145_v28 = vld [vmem:[#allocation4 + $0x48] sm:$0xf]  ;;  %v4115_v3 = vld [vmem:[#allocation4 + $0x18] sm:$0xf0] }
 0x479   :  { %v4162_v13 = vor.u32 %v4948_v48, %v4161_v18  ;;  %v4944_v54 = vld [vmem:[#allocation4 + $0x54] sm:$0xf0]  ;;  %v4118_v9 = vor.u32 %v4934_v2, %v4115_v3 }
 0x47a   :  { %949 = vadd.xlane.f32.xlu0 %v5887_v19  ;;  %v958_v21 = vmul.f32 %v5887_v19, %v5887_v19  ;;  %1306 = vmatpush.bf16.msrb.mxu0 %v4230_v52  ;;  %v4142_v52 = vor.u32 %v4941_v26, %v4139_v20  ;;  %v4146_v30 = vor.u32 %v4944_v54, %v4145_v28 }
 0x47b   :  { %1251 = vmatpush.bf16.msra.mxu1 %v4186_v46  ;;  %1291 = vmatpush.bf16.msrb.mxu3 %v4162_v13 }
 0x47c   :  { %965 = vadd.xlane.f32.xlu1 %v958_v21  ;;  %v4158_v21 = vor.u32 %v4945_v14, %v4155_v16 }
 0x47e   :  { %1307 = vmatpush.bf16.msrb.mxu0 %v4214_v42  ;;  %1272 = vmatpush.bf16.msra.mxu2 %v4158_v21  ;;  %v4123_v42 = vld [vmem:[#allocation4 + $0x30] sm:$0xf0] }
 0x47f   :  { %1252 = vmatpush.bf16.msra.mxu1 %v4170_v63  ;;  %1292 = vmatpush.bf16.msrb.mxu3 %v4146_v30  ;;  %v4126_v46 = vor.u32 %v4937_v41, %v4123_v42  ;;  %v4113_v63 = vld [vmem:[#allocation4 + $0x8] sm:$0xf]  ;;  %v5147_v30 = vld [vmem:[%s6579_s6] ss:$0 sm:$0xff] }
 0x480   :  { %v4114_v6 = vor.u32 %v4936_v1, %v4113_v63 }
 0x482   :  { %1308 = vmatpush.bf16.msrb.mxu0 %v4198_v50  ;;  %1273 = vmatpush.bf16.msra.mxu2 %v4142_v52  ;;  %v4134_v50 = vor.u32 %v4938_v55, %v4131_v57 }
 0x483   :  { %1253 = vmatpush.bf16.msra.mxu1 %v4154_v47  ;;  %1293 = vmatpush.bf16.msrb.mxu3 %v4130_v56 }
 0x486   :  { %1309 = vmatpush.bf16.msrb.mxu0 %v4182_v32  ;;  %1274 = vmatpush.bf16.msra.mxu2 %v4126_v46 }
 0x487   :  { %1254 = vmatpush.bf16.msra.mxu1 %v4138_v27  ;;  %1294 = vmatpush.bf16.msrb.mxu3 %v4114_v6 }
 0x48a   :  { %1310 = vmatpush.bf16.msrb.mxu0 %v4166_v23  ;;  %1275 = vmatpush.bf16.msra.mxu2 %v4110_v0 }
 0x48b   :  { %1255 = vmatpush.bf16.msra.mxu1 %v4122_v40 }
 0x48e   :  { %1311 = vmatpush.bf16.msrb.mxu0 %v4150_v35 }
 0x48f   :  { %1256 = vmatpush.bf16.msra.mxu1 %v4106_v53 }
 0x492   :  { %1312 = vmatpush.bf16.msrb.mxu0 %v4134_v50 }
 0x496   :  { %1313 = vmatpush.bf16.msrb.mxu0 %v4118_v9 }
 0x4a0   :  { %v944_v34 = vpop.xlane.xlu2 %943 }
 0x4a1   :  { %v5892_v36 = vmul.f32 0.0078125, %v944_v34 }
 0x4a2   :  { %v960_v39 = vpop.xlane.xlu0 %959 }
 0x4a3   :  { %v971_v44 = vmul.f32 %v5892_v36, %v5892_v36  ;;  %v967_v45 = vmul.f32 0.0078125, %v960_v39  ;;  %v979_v28 = vsub.f32 %v5869_v8, %v5892_v36 }
 0x4a5   :  { %v975_v59 = vsub.f32 %v967_v45, %v971_v44 }
 0x4a7   :  { %v983_v4 = vadd.f32 1e-12, %v975_v59 }
 0x4a8   :  { %v946_v32 = vpop.xlane.xlu1 %945 }
 0x4a9   :  { %5192 = vrsqrt.f32 %v983_v4  ;;  %v952_v7 = vmul.f32 0.0078125, %v946_v32  ;;  %vm993_vm4 = vweird.f32 %v983_v4 }
 0x4aa   :  { %v962_v12 = vpop.xlane.xlu2 %961 }
 0x4ab   :  { %v972_v14 = vmul.f32 %v952_v7, %v952_v7  ;;  %v968_v47 = vmul.f32 0.0078125, %v962_v12  ;;  %v980_v33 = vsub.f32 %v5875_v10, %v952_v7 }
 0x4ad   :  { %v976_v16 = vsub.f32 %v968_v47, %v972_v14 }
 0x4af   :  { %v5193_v18 = vpop.eup %5192  ;;  %v984_v48 = vadd.f32 1e-12, %v976_v16 }
 0x4b0   :  { %v988_v21 = vmul.f32 %v5193_v18, %v983_v4  ;;  %vm994_vm3 = vweird.f32 %v5193_v18 }
 0x4b1   :  { %5194 = vrsqrt.f32 %v984_v48  ;;  %vm995_vm5 = vmor %vm993_vm4, %vm994_vm3  ;;  %vm1003_vm7 = vweird.f32 %v984_v48 }
 0x4b2   :  { %v989_v13 = vmul.f32 %v5193_v18, %v988_v21 }
 0x4b4   :  { %v990_v51 = vmul.f32 0.5, %v989_v13 }
 0x4b6   :  { %v991_v22 = vsub.f32 1.5, %v990_v51 }
 0x4b7   :  { %v5195_v23 = vpop.eup %5194 }
 0x4b8   :  { %v992_v24 = vmul.f32 %v5193_v18, %v991_v22  ;;  %v998_v25 = vmul.f32 %v5195_v23, %v984_v48  ;;  %vm1004_vm6 = vweird.f32 %v5195_v23  ;;  %v4996_v22 = vld [vmem:[#allocation6 + $0xf8] sm:$0xff] }
 0x4b9   :  { %vm1005_vm8 = vmor %vm1003_vm7, %vm1004_vm6  ;;  %1794 = vmatpush.bf16.msra.mxu0 %v4996_v22 }
 0x4ba   :  { %v999_v26 = vmul.f32 %v5195_v23, %v998_v25  ;;  %v996_v27 = vsel %vm995_vm5, %v5193_v18, %v992_v24  ;;  %v4980_v24 = vld [vmem:[#allocation6 + $0x78] sm:$0xff] }
 0x4bb   :  { %v1027_v52 = vmul.f32 %v996_v27, %v979_v28  ;;  %v4988_v25 = vld [vmem:[#allocation6 + $0xb8] sm:$0xff]  ;;  %1756 = vmatpush.bf16.msrb.mxu2 %v4980_v24  ;;  %v4994_v27 = vld [vmem:[#allocation6 + $0xe8] sm:$0xff]  ;;  %v4987_v28 = vld [vmem:[#allocation6 + $0xb0] sm:$0xff] }
 0x4bc   :  { %v1000_v20 = vmul.f32 0.5, %v999_v26  ;;  %1775 = vmatpush.bf16.msra.mxu3 %v4988_v25  ;;  %v4970_v26 = vld [vmem:[#allocation6 + $0x28] sm:$0xff] }
 0x4bd   :  { %v1034_v37 = vmul.f32 %v5147_v30, %v1027_v52  ;;  %v4993_v52 = vld [vmem:[#allocation6 + $0xe0] sm:$0xff] }
 0x4be   :  { %v1001_v54 = vsub.f32 1.5, %v1000_v20  ;;  %v4979_v20 = vld [vmem:[#allocation6 + $0x70] sm:$0xff] }
 0x4bf   :  { %v5905_v36 = vadd.f32 %v5148_v38, %v1034_v37  ;;  %1757 = vmatpush.bf16.msrb.mxu2 %v4979_v20  ;;  %v4985_v37 = vld [vmem:[#allocation6 + $0xa0] sm:$0xff] }
 0x4c0   :  { %v1002_v31 = vmul.f32 %v5195_v23, %v1001_v54  ;;  %1776 = vmatpush.bf16.msra.mxu3 %v4987_v28  ;;  %v4969_v54 = vld [vmem:[#allocation6 + $0x20] sm:$0xff] }
 0x4c2   :  { %v1006_v34 = vsel %vm1005_vm8, %v5195_v23, %v1002_v31  ;;  %v4995_v23 = vld [vmem:[#allocation6 + $0xf0] sm:$0xff]  ;;  %v4986_v31 = vld [vmem:[#allocation6 + $0xa8] sm:$0xff] }
 0x4c3   :  { %v1028_v35 = vmul.f32 %v1006_v34, %v980_v33  ;;  %1795 = vmatpush.bf16.msra.mxu0 %v4995_v23  ;;  %v4968_v33 = vld [vmem:[#allocation6 + $0x18] sm:$0xff] }
 0x4c4   :  { %1777 = vmatpush.bf16.msra.mxu3 %v4986_v31  ;;  %v4992_v34 = vld [vmem:[#allocation6 + $0xd8] sm:$0xff] }
 0x4c5   :  { %v1035_v8 = vmul.f32 %v5147_v30, %v1028_v35  ;;  %v4977_v35 = vld [vmem:[#allocation6 + $0x60] sm:$0xff] }
 0x4c7   :  { %v5907_v39 = vadd.f32 %v5148_v38, %v1035_v8  ;;  %1796 = vmatpush.bf16.msra.mxu0 %v4994_v27  ;;  %v4991_v8 = vld [vmem:[#allocation6 + $0xd0] sm:$0xff] }
 0x4c8   :  { %1778 = vmatpush.bf16.msra.mxu3 %v4985_v37 }
 0x4c9   :  { %v1045_v40 = vpack.c.bf16 %v5907_v39, %v5905_v36 }
 0x4cb   :  { %1257 = vmatmul.bf16.vlgmr.msra.gmra.mxu1 %v1045_v40  ;;  %1276 = vmatmul.bf16.vlgmr.msra.gmra.mxu2 %v1045_v40 }
 0x4cc   :  { %1295 = vmatmul.bf16.vlgmr.msrb.gmra.mxu3 %v1045_v40  ;;  %1314 = vmatmul.bf16.vlgmr.msrb.gmra.mxu0 %v1045_v40  ;;  %v1079_v40 = vld [vmem:[%s6582_s9] sm:$0xf] }
 0x4cd   :  { %1797 = vmatpush.bf16.msra.mxu0 %v4993_v52 }
 0x4d1   :  { %1798 = vmatpush.bf16.msra.mxu0 %v4992_v34 }
 0x4d5   :  { %1799 = vmatpush.bf16.msra.mxu0 %v4991_v8 }
 0x4e5   :  { %v948_v10 = vpop.xlane.xlu1 %947 }
 0x4e6   :  { %v953_v41 = vmul.f32 0.0078125, %v948_v10  ;;  %v4976_v10 = vld [vmem:[#allocation6 + $0x58] sm:$0xff] }
 0x4e7   :  { %v964_v42 = vpop.xlane.xlu2 %963 }
 0x4e8   :  { %v973_v43 = vmul.f32 %v953_v41, %v953_v41  ;;  %v969_v44 = vmul.f32 0.0078125, %v964_v42  ;;  %v981_v9 = vsub.f32 %v5881_v15, %v953_v41  ;;  %v4972_v15 = vld [vmem:[#allocation6 + $0x38] sm:$0xff]  ;;  %v4966_v42 = vld [vmem:[#allocation6 + $0x8] sm:$0xff] }
 0x4e9   :  { %1737 = vmatpush.bf16.msrb.mxu1 %v4972_v15  ;;  %v4984_v41 = vld [vmem:[#allocation6 + $0x98] sm:$0xff] }
 0x4ea   :  { %v977_v45 = vsub.f32 %v969_v44, %v973_v43  ;;  %1779 = vmatpush.bf16.msra.mxu3 %v4984_v41  ;;  %v4990_v43 = vld [vmem:[#allocation6 + $0xc8] sm:$0xff]  ;;  %v5922_v44 = vperm.slane %v1079_v40, 0 }
 0x4eb   :  { %1800 = vmatpush.bf16.msra.mxu0 %v4990_v43 }
 0x4ec   :  { %v985_v46 = vadd.f32 1e-12, %v977_v45  ;;  %v5924_v45 = vperm.slane %v1079_v40, 3 }
 0x4ed   :  { %v950_v49 = vpop.xlane.xlu0 %949 }
 0x4ee   :  { %5196 = vrsqrt.f32 %v985_v46  ;;  %v954_v55 = vmul.f32 0.0078125, %v950_v49  ;;  %vm1013_vm10 = vweird.f32 %v985_v46  ;;  %v4983_v49 = vld [vmem:[#allocation6 + $0x90] sm:$0xff] }
 0x4ef   :  { %v966_v56 = vpop.xlane.xlu1 %965  ;;  %1780 = vmatpush.bf16.msra.mxu3 %v4983_v49 }
 0x4f0   :  { %v974_v57 = vmul.f32 %v954_v55, %v954_v55  ;;  %v970_v29 = vmul.f32 0.0078125, %v966_v56  ;;  %v982_v14 = vsub.f32 %v5887_v19, %v954_v55  ;;  %v4971_v19 = vld [vmem:[#allocation6 + $0x30] sm:$0xff]  ;;  %v4965_v55 = vld [vmem:[#allocation6] sm:$0xff] }
 0x4f1   :  { %1738 = vmatpush.bf16.msrb.mxu1 %v4971_v19  ;;  %v4989_v56 = vld [vmem:[#allocation6 + $0xc0] sm:$0xff] }
 0x4f2   :  { %v978_v58 = vsub.f32 %v970_v29, %v974_v57  ;;  %v4974_v29 = vld [vmem:[#allocation6 + $0x48] sm:$0xff]  ;;  %1801 = vmatpush.bf16.msra.mxu0 %v4989_v56 }
 0x4f4   :  { %v5197_v59 = vpop.eup %5196  ;;  %v986_v50 = vadd.f32 1e-12, %v978_v58  ;;  %v4982_v58 = vld [vmem:[#allocation6 + $0x88] sm:$0xff] }
 0x4f5   :  { %v1008_v53 = vmul.f32 %v5197_v59, %v985_v46  ;;  %vm1014_vm9 = vweird.f32 %v5197_v59  ;;  %1739 = vmatpush.bf16.msrb.mxu1 %v4970_v26  ;;  %v4975_v46 = vld [vmem:[#allocation6 + $0x50] sm:$0xff]  ;;  %1781 = vmatpush.bf16.msra.mxu3 %v4982_v58 }
 0x4f6   :  { %5198 = vrsqrt.f32 %v986_v50  ;;  %vm1015_vm11 = vmor %vm1013_vm10, %vm1014_vm9  ;;  %vm1023_vm13 = vweird.f32 %v986_v50 }
 0x4f7   :  { %v1009_v60 = vmul.f32 %v5197_v59, %v1008_v53 }
 0x4f9   :  { %v1010_v62 = vmul.f32 0.5, %v1009_v60  ;;  %1740 = vmatpush.bf16.msrb.mxu1 %v4969_v54 }
 0x4fb   :  { %v1011_v63 = vsub.f32 1.5, %v1010_v62  ;;  %v5934_v62 = vperm.slane %v1079_v40, 1 }
 0x4fc   :  { %v5199_v0 = vpop.eup %5198 }
 0x4fd   :  { %v1012_v1 = vmul.f32 %v5197_v59, %v1011_v63  ;;  %v1018_v2 = vmul.f32 %v5199_v0, %v986_v50  ;;  %vm1024_vm12 = vweird.f32 %v5199_v0  ;;  %1741 = vmatpush.bf16.msrb.mxu1 %v4968_v33 }
 0x4fe   :  { %vm1025_vm14 = vmor %vm1023_vm13, %vm1024_vm12 }
 0x4ff   :  { %v1019_v3 = vmul.f32 %v5199_v0, %v1018_v2  ;;  %v1016_v4 = vsel %vm1015_vm11, %v5197_v59, %v1012_v1  ;;  %v4973_v2 = vld [vmem:[#allocation6 + $0x40] sm:$0xff] }
 0x500   :  { %v1029_v7 = vmul.f32 %v1016_v4, %v981_v9 }
 0x501   :  { %v1020_v6 = vmul.f32 0.5, %v1019_v3  ;;  %v4981_v3 = vld [vmem:[#allocation6 + $0x80] sm:$0xff] }
 0x502   :  { %v1036_v18 = vmul.f32 %v5147_v30, %v1029_v7  ;;  %1782 = vmatpush.bf16.msra.mxu3 %v4981_v3 }
 0x503   :  { %v1021_v32 = vsub.f32 1.5, %v1020_v6 }
 0x504   :  { %v5913_v21 = vadd.f32 %v5148_v38, %v1036_v18 }
 0x505   :  { %v1022_v12 = vmul.f32 %v5199_v0, %v1021_v32 }
 0x507   :  { %v1026_v47 = vsel %vm1025_vm14, %v5199_v0, %v1022_v12  ;;  %v5938_v0 = vperm.slane %v1079_v40, 2 }
 0x508   :  { %v1030_v16 = vmul.f32 %v1026_v47, %v982_v14 }
 0x50a   :  { %v1037_v48 = vmul.f32 %v5147_v30, %v1030_v16  ;;  %v4978_v30 = vld [vmem:[#allocation6 + $0x68] sm:$0xff] }
 0x50b   :  { %1758 = vmatpush.bf16.msrb.mxu2 %v4978_v30 }
 0x50c   :  { %v5915_v13 = vadd.f32 %v5148_v38, %v1037_v48  ;;  %v4967_v38 = vld [vmem:[#allocation6 + $0x10] sm:$0xff] }
 0x50d   :  { %1742 = vmatpush.bf16.msrb.mxu1 %v4967_v38 }
 0x50e   :  { %v1046_v51 = vpack.c.bf16 %v5915_v13, %v5913_v21 }
 0x50f   :  { %1759 = vmatpush.bf16.msrb.mxu2 %v4977_v35 }
 0x510   :  { %1262 = vmatmul.bf16.gmra.mxu1 %v1046_v51  ;;  %1281 = vmatmul.bf16.gmra.mxu2 %v1046_v51 }
 0x511   :  { %1300 = vmatmul.bf16.gmra.mxu3 %v1046_v51  ;;  %1319 = vmatmul.bf16.gmra.mxu0 %v1046_v51 }
 0x512   :  { %1743 = vmatpush.bf16.msrb.mxu1 %v4966_v42 }
 0x513   :  { %1760 = vmatpush.bf16.msrb.mxu2 %v4976_v10 }
 0x516   :  { %1744 = vmatpush.bf16.msrb.mxu1 %v4965_v55 }
 0x517   :  { %1761 = vmatpush.bf16.msrb.mxu2 %v4975_v46 }
 0x51b   :  { %1762 = vmatpush.bf16.msrb.mxu2 %v4974_v29 }
 0x51f   :  { %1763 = vmatpush.bf16.msrb.mxu2 %v4973_v2 }
 0x548   :  { %v1258_v57 = vpop.f32.mrf.mxu1 }
 0x549   :  { %v5927_v59 = vadd.f32 %v1258_v57, %v5922_v44  ;;  %v1315_v50 = vpop.f32.mrf.mxu0 }
 0x54a   :  { %v5930_v53 = vadd.f32 %v1315_v50, %v5924_v45 }
 0x54b   :  { %v1325_v60 = vmul.f32 %v5927_v59, %v5927_v59 }
 0x54c   :  { %v1328_v63 = vmul.f32 %v5930_v53, %v5930_v53 }
 0x54d   :  { %v1341_v1 = vmul.f32 %v1325_v60, %v5927_v59 }
 0x54e   :  { %v1344_v4 = vmul.f32 %v1328_v63, %v5930_v53  ;;  %v1277_v6 = vpop.f32.mrf.mxu2 }
 0x54f   :  { %v1357_v9 = vmul.f32 0.044715, %v1341_v1  ;;  %v5943_v32 = vadd.f32 %v1277_v6, %v5934_v62  ;;  %v1296_v7 = vpop.f32.mrf.mxu3 }
 0x550   :  { %v1360_v12 = vmul.f32 0.044715, %v1344_v4  ;;  %v5946_v14 = vadd.f32 %v1296_v7, %v5938_v0  ;;  %v1260_v47 = vpop.f32.mrf.mxu1 }
 0x551   :  { %v1373_v16 = vadd.f32 %v1357_v9, %v5927_v59  ;;  %v1326_v18 = vmul.f32 %v5943_v32, %v5943_v32  ;;  %v5952_v48 = vadd.f32 %v1260_v47, %v5922_v44  ;;  %v1317_v51 = vpop.f32.mrf.mxu0 }
 0x552   :  { %v1376_v15 = vadd.f32 %v1360_v12, %v5930_v53  ;;  %v1327_v22 = vmul.f32 %v5946_v14, %v5946_v14  ;;  %v5958_v19 = vadd.f32 %v1317_v51, %v5924_v45 }
 0x553   :  { %v1389_v23 = vmul.f32 0.7978846, %v1373_v16  ;;  %v1342_v24 = vmul.f32 %v1326_v18, %v5943_v32  ;;  %v1329_v25 = vmul.f32 %v5952_v48, %v5952_v48 }
 0x554   :  { %v1392_v26 = vmul.f32 0.7978846, %v1376_v15  ;;  %v1343_v27 = vmul.f32 %v1327_v22, %v5946_v14  ;;  %v1332_v20 = vmul.f32 %v5958_v19, %v5958_v19 }
 0x555   :  { %v1358_v28 = vmul.f32 0.044715, %v1342_v24  ;;  %v1345_v54 = vmul.f32 %v1329_v25, %v5952_v48  ;;  %5200 = vtanh.f32 %v1389_v23 }
 0x556   :  { %v1359_v52 = vmul.f32 0.044715, %v1343_v27  ;;  %v1348_v30 = vmul.f32 %v1332_v20, %v5958_v19  ;;  %v1279_v31 = vpop.f32.mrf.mxu2  ;;  %5202 = vtanh.f32 %v1392_v26 }
 0x557   :  { %v1374_v33 = vadd.f32 %v1358_v28, %v5943_v32  ;;  %v1361_v34 = vmul.f32 0.044715, %v1345_v54  ;;  %v1280_v35 = vadd.f32 %v1279_v31, %v5934_v62  ;;  %v1298_v37 = vpop.f32.mrf.mxu3 }
 0x558   :  { %v1375_v38 = vadd.f32 %v1359_v52, %v5946_v14  ;;  %v1364_v8 = vmul.f32 0.044715, %v1348_v30  ;;  %v1299_v40 = vadd.f32 %v1298_v37, %v5938_v0 }
 0x559   :  { %v1390_v10 = vmul.f32 0.7978846, %v1374_v33  ;;  %v1377_v41 = vadd.f32 %v1361_v34, %v5952_v48  ;;  %v1330_v42 = vmul.f32 %v1280_v35, %v1280_v35 }
 0x55a   :  { %v1391_v43 = vmul.f32 0.7978846, %v1375_v38  ;;  %v1380_v46 = vadd.f32 %v1364_v8, %v5958_v19  ;;  %v1331_v49 = vmul.f32 %v1299_v40, %v1299_v40 }
 0x55b   :  { %5204 = vtanh.f32 %v1390_v10  ;;  %v1393_v55 = vmul.f32 0.7978846, %v1377_v41  ;;  %v1346_v56 = vmul.f32 %v1330_v42, %v1280_v35  ;;  %v5201_v58 = vpop.eup %5200 }
 0x55c   :  { %5206 = vtanh.f32 %v1391_v43  ;;  %v1396_v57 = vmul.f32 0.7978846, %v1380_v46  ;;  %v1347_v29 = vmul.f32 %v1331_v49, %v1299_v40  ;;  %v5203_v60 = vpop.eup %5202  ;;  %v1421_v2 = vadd.f32 1.0, %v5201_v58 }
 0x55d   :  { %5208 = vtanh.f32 %v1393_v55  ;;  %v1362_v50 = vmul.f32 0.044715, %v1346_v56  ;;  %v1424_v6 = vadd.f32 1.0, %v5203_v60 }
 0x55e   :  { %5210 = vtanh.f32 %v1396_v57  ;;  %v1363_v63 = vmul.f32 0.044715, %v1347_v29  ;;  %v1437_v18 = vmul.f32 0.5, %v1421_v2 }
 0x55f   :  { %v1378_v1 = vadd.f32 %v1362_v50, %v1280_v35  ;;  %v1440_v15 = vmul.f32 0.5, %v1424_v6 }
 0x560   :  { %v1379_v3 = vadd.f32 %v1363_v63, %v1299_v40  ;;  %v1453_v27 = vmul.f32 %v1437_v18, %v5927_v59 }
 0x561   :  { %v5205_v4 = vpop.eup %5204  ;;  %v1394_v9 = vmul.f32 0.7978846, %v1378_v1  ;;  %v1456_v54 = vmul.f32 %v1440_v15, %v5930_v53 }
 0x562   :  { %v5207_v7 = vpop.eup %5206  ;;  %v1395_v12 = vmul.f32 0.7978846, %v1379_v3  ;;  %v1422_v23 = vadd.f32 1.0, %v5205_v4 }
 0x563   :  { %v5209_v47 = vpop.eup %5208  ;;  %5212 = vtanh.f32 %v1394_v9  ;;  %v1423_v25 = vadd.f32 1.0, %v5207_v7 }
 0x564   :  { %v5211_v16 = vpop.eup %5210  ;;  %5214 = vtanh.f32 %v1395_v12  ;;  %v1425_v51 = vadd.f32 1.0, %v5209_v47  ;;  %v1438_v31 = vmul.f32 0.5, %v1422_v23 }
 0x565   :  { %v1428_v22 = vadd.f32 1.0, %v5211_v16  ;;  %v1439_v37 = vmul.f32 0.5, %v1423_v25 }
 0x566   :  { %v1441_v24 = vmul.f32 0.5, %v1425_v51  ;;  %v1454_v59 = vmul.f32 %v1438_v31, %v5943_v32 }
 0x567   :  { %v1444_v26 = vmul.f32 0.5, %v1428_v22 }
 0x568   :  { %v1457_v20 = vmul.f32 %v1441_v24, %v5952_v48  ;;  %v1455_v48 = vmul.f32 %v1439_v37, %v5946_v14 }
 0x569   :  { %v5213_v28 = vpop.eup %5212  ;;  %v1460_v52 = vmul.f32 %v1444_v26, %v5958_v19 }
 0x56a   :  { %v5215_v30 = vpop.eup %5214  ;;  %v1469_v33 = vpack.c.bf16 %v1457_v20, %v1453_v27  ;;  %v1426_v34 = vadd.f32 1.0, %v5213_v28 }
 0x56b   :  { %v1472_v38 = vpack.c.bf16 %v1460_v52, %v1456_v54  ;;  %v1427_v8 = vadd.f32 1.0, %v5215_v30 }
 0x56c   :  { %1745 = vmatmul.bf16.vlgmr.msrb.gmra.mxu1 %v1469_v33  ;;  %v1442_v10 = vmul.f32 0.5, %v1426_v34 }
 0x56d   :  { %1802 = vmatmul.bf16.vlgmr.msra.gmra.mxu0 %v1472_v38  ;;  %v1443_v41 = vmul.f32 0.5, %v1427_v8 }
 0x56e   :  { %v1458_v42 = vmul.f32 %v1442_v10, %v1280_v35 }
 0x56f   :  { %v1459_v43 = vmul.f32 %v1443_v41, %v1299_v40 }
 0x570   :  { %v1470_v53 = vpack.c.bf16 %v1458_v42, %v1454_v59 }
 0x571   :  { %v1471_v46 = vpack.c.bf16 %v1459_v43, %v1455_v48 }
 0x572   :  { %1764 = vmatmul.bf16.vlgmr.msrb.gmra.mxu2 %v1470_v53 }
 0x573   :  { %1783 = vmatmul.bf16.vlgmr.msra.gmra.mxu3 %v1471_v46 }
 0x58d   :  { %v1263_v19 = vpop.f32.mrf.mxu1 }
 0x58e   :  { %v5981_v49 = vadd.f32 %v1263_v19, %v5922_v44  ;;  %v1320_v55 = vpop.f32.mrf.mxu0 }
 0x58f   :  { %v5984_v56 = vadd.f32 %v1320_v55, %v5924_v45 }
 0x590   :  { %v1333_v57 = vmul.f32 %v5981_v49, %v5981_v49 }
 0x591   :  { %v1336_v32 = vmul.f32 %v5984_v56, %v5984_v56 }
 0x592   :  { %v1349_v14 = vmul.f32 %v1333_v57, %v5981_v49 }
 0x593   :  { %v1352_v35 = vmul.f32 %v1336_v32, %v5984_v56  ;;  %v1282_v40 = vpop.f32.mrf.mxu2 }
 0x594   :  { %v1365_v29 = vmul.f32 0.044715, %v1349_v14  ;;  %v5993_v58 = vadd.f32 %v1282_v40, %v5934_v62  ;;  %v1301_v50 = vpop.f32.mrf.mxu3 }
 0x595   :  { %v1368_v60 = vmul.f32 0.044715, %v1352_v35  ;;  %v5996_v63 = vadd.f32 %v1301_v50, %v5938_v0  ;;  %v1265_v1 = vpop.f32.mrf.mxu1 }
 0x596   :  { %v1381_v2 = vadd.f32 %v1365_v29, %v5981_v49  ;;  %v1334_v3 = vmul.f32 %v5993_v58, %v5993_v58  ;;  %v6002_v4 = vadd.f32 %v1265_v1, %v5922_v44  ;;  %v1322_v6 = vpop.f32.mrf.mxu0 }
 0x597   :  { %v1384_v9 = vadd.f32 %v1368_v60, %v5984_v56  ;;  %v1335_v7 = vmul.f32 %v5996_v63, %v5996_v63  ;;  %v6008_v12 = vadd.f32 %v1322_v6, %v5924_v45 }
 0x598   :  { %v1350_v47 = vmul.f32 %v1334_v3, %v5993_v58  ;;  %v1337_v16 = vmul.f32 %v6002_v4, %v6002_v4  ;;  %v1397_v18 = vmul.f32 0.7978846, %v1381_v2 }
 0x599   :  { %v1351_v51 = vmul.f32 %v1335_v7, %v5996_v63  ;;  %v1340_v44 = vmul.f32 %v6008_v12, %v6008_v12  ;;  %v1400_v15 = vmul.f32 0.7978846, %v1384_v9 }
 0x59a   :  { %v1366_v22 = vmul.f32 0.044715, %v1350_v47  ;;  %v1353_v23 = vmul.f32 %v1337_v16, %v6002_v4  ;;  %5216 = vtanh.f32 %v1397_v18 }
 0x59b   :  { %v1367_v24 = vmul.f32 0.044715, %v1351_v51  ;;  %v1356_v25 = vmul.f32 %v1340_v44, %v6008_v12  ;;  %v1284_v45 = vpop.f32.mrf.mxu2  ;;  %5218 = vtanh.f32 %v1400_v15 }
 0x59c   :  { %v1382_v26 = vadd.f32 %v1366_v22, %v5993_v58  ;;  %v1369_v27 = vmul.f32 0.044715, %v1353_v23  ;;  %v1285_v20 = vadd.f32 %v1284_v45, %v5934_v62  ;;  %v1303_v28 = vpop.f32.mrf.mxu3 }
 0x59d   :  { %v1383_v54 = vadd.f32 %v1367_v24, %v5996_v63  ;;  %v1372_v52 = vmul.f32 0.044715, %v1356_v25  ;;  %v1304_v30 = vadd.f32 %v1303_v28, %v5938_v0 }
 0x59e   :  { %v1338_v31 = vmul.f32 %v1285_v20, %v1285_v20  ;;  %v1385_v33 = vadd.f32 %v1369_v27, %v6002_v4  ;;  %v1398_v34 = vmul.f32 0.7978846, %v1382_v26 }
 0x59f   :  { %v1339_v37 = vmul.f32 %v1304_v30, %v1304_v30  ;;  %v1388_v38 = vadd.f32 %v1372_v52, %v6008_v12  ;;  %v1399_v8 = vmul.f32 0.7978846, %v1383_v54 }
 0x5a0   :  { %v1354_v10 = vmul.f32 %v1338_v31, %v1285_v20  ;;  %v1401_v41 = vmul.f32 0.7978846, %v1385_v33  ;;  %5220 = vtanh.f32 %v1398_v34  ;;  %v5217_v42 = vpop.eup %5216  ;;  %v5149_v33 = vld [vmem:[%s6584_s11] ss:$0 sm:$0xff] }
 0x5a1   :  { %v1355_v62 = vmul.f32 %v1339_v37, %v1304_v30  ;;  %v1404_v59 = vmul.f32 0.7978846, %v1388_v38  ;;  %5222 = vtanh.f32 %v1399_v8  ;;  %v5219_v43 = vpop.eup %5218  ;;  %v1429_v46 = vadd.f32 1.0, %v5217_v42 }
 0x5a2   :  { %v1370_v48 = vmul.f32 0.044715, %v1354_v10  ;;  %5224 = vtanh.f32 %v1401_v41  ;;  %v1432_v57 = vadd.f32 1.0, %v5219_v43 }
 0x5a3   :  { %v1371_v0 = vmul.f32 0.044715, %v1355_v62  ;;  %5226 = vtanh.f32 %v1404_v59  ;;  %v1445_v60 = vmul.f32 0.5, %v1429_v46 }
 0x5a4   :  { %v1386_v53 = vadd.f32 %v1370_v48, %v1285_v20  ;;  %v1448_v2 = vmul.f32 0.5, %v1432_v57 }
 0x5a5   :  { %v1387_v19 = vadd.f32 %v1371_v0, %v1304_v30  ;;  %v1461_v47 = vmul.f32 %v1445_v60, %v5981_v49 }
 0x5a6   :  { %v5221_v55 = vpop.eup %5220  ;;  %v1402_v32 = vmul.f32 0.7978846, %v1386_v53  ;;  %v1464_v51 = vmul.f32 %v1448_v2, %v5984_v56 }
 0x5a7   :  { %v5223_v14 = vpop.eup %5222  ;;  %v1403_v35 = vmul.f32 0.7978846, %v1387_v19  ;;  %v1430_v6 = vadd.f32 1.0, %v5221_v55 }
 0x5a8   :  { %v5225_v40 = vpop.eup %5224  ;;  %5228 = vtanh.f32 %v1402_v32  ;;  %v1431_v7 = vadd.f32 1.0, %v5223_v14 }
 0x5a9   :  { %v5227_v29 = vpop.eup %5226  ;;  %v1433_v50 = vadd.f32 1.0, %v5225_v40  ;;  %5230 = vtanh.f32 %v1403_v35  ;;  %v1446_v24 = vmul.f32 0.5, %v1430_v6 }
 0x5aa   :  { %v1436_v1 = vadd.f32 1.0, %v5227_v29  ;;  %v1447_v26 = vmul.f32 0.5, %v1431_v7 }
 0x5ab   :  { %v1449_v3 = vmul.f32 0.5, %v1433_v50  ;;  %v1462_v49 = vmul.f32 %v1446_v24, %v5993_v58 }
 0x5ac   :  { %v1452_v9 = vmul.f32 0.5, %v1436_v1 }
 0x5ad   :  { %v1465_v16 = vmul.f32 %v1449_v3, %v6002_v4  ;;  %v1463_v4 = vmul.f32 %v1447_v26, %v5996_v63  ;;  %v5016_v26 = vld [vmem:[%s6600_s17 + $0x158] sm:$0xf0] }
 0x5ae   :  { %v5229_v18 = vpop.eup %5228  ;;  %v1468_v44 = vmul.f32 %v1452_v9, %v6008_v12 }
 0x5af   :  { %v5231_v15 = vpop.eup %5230  ;;  %v1473_v22 = vpack.c.bf16 %v1465_v16, %v1461_v47  ;;  %v1434_v23 = vadd.f32 1.0, %v5229_v18  ;;  %v4478_v18 = vld [vmem:[%s6600_s17 + $0x168] sm:$0xf] }
 0x5b0   :  { %v1476_v25 = vpack.c.bf16 %v1468_v44, %v1464_v51  ;;  %v1435_v45 = vadd.f32 1.0, %v5231_v15  ;;  %v5019_v51 = vld [vmem:[%s6600_s17 + $0x170] sm:$0xf0]  ;;  %v5018_v44 = vld [vmem:[%s6600_s17 + $0x16c] sm:$0xf] }
 0x5b1   :  { %1750 = vmatmul.bf16.gmra.mxu1 %v1473_v22  ;;  %v1450_v27 = vmul.f32 0.5, %v1434_v23  ;;  %v4480_v15 = vld [vmem:[%s6600_s17 + $0x174] sm:$0xf0]  ;;  %v4486_v22 = vld [vmem:[%s6600_s17 + $0x170] sm:$0xf] }
 0x5b2   :  { %1807 = vmatmul.bf16.gmra.mxu0 %v1476_v25  ;;  %v1451_v28 = vmul.f32 0.5, %v1435_v45  ;;  %v5020_v23 = vld [vmem:[%s6600_s17 + $0x178] sm:$0xf0]  ;;  %v4483_v24 = vor.u32 %v5018_v44, %v4480_v15  ;;  %v4466_v45 = vld [vmem:[%s6600_s17 + $0x150] sm:$0xf] }
 0x5b3   :  { %v1466_v54 = vmul.f32 %v1450_v27, %v1285_v20  ;;  %v4487_v25 = vor.u32 %v5020_v23, %v4486_v22  ;;  %v5015_v27 = vld [vmem:[%s6600_s17 + $0x154] sm:$0xf]  ;;  %v5001_v44 = vld [vmem:[%s6600_s17 + $0xe0] sm:$0xf0] }
 0x5b4   :  { %v1467_v52 = vmul.f32 %v1451_v28, %v1304_v30  ;;  %2112 = vmatpush.bf16.msra.mxu2 %v4483_v24  ;;  %v4467_v28 = vor.u32 %v5016_v26, %v4466_v45  ;;  %v4408_v24 = vld [vmem:[%s6600_s17 + $0xe4] sm:$0xf0]  ;;  %v5002_v26 = vld [vmem:[%s6600_s17 + $0xe8] sm:$0xf0] }
 0x5b5   :  { %v1474_v56 = vpack.c.bf16 %v1466_v54, %v1462_v49  ;;  %2131 = vmatpush.bf16.msrb.mxu3 %v4487_v25  ;;  %v4468_v49 = vld [vmem:[%s6600_s17 + $0x15c] sm:$0xf0]  ;;  %v4474_v54 = vld [vmem:[%s6600_s17 + $0x158] sm:$0xf] }
 0x5b6   :  { %v1475_v31 = vpack.c.bf16 %v1467_v52, %v1463_v4  ;;  %v5017_v4 = vld [vmem:[%s6600_s17 + $0x160] sm:$0xf0]  ;;  %v4471_v52 = vor.u32 %v5015_v27, %v4468_v49  ;;  %v4414_v25 = vld [vmem:[%s6600_s17 + $0xe0] sm:$0xf] }
 0x5b7   :  { %1769 = vmatmul.bf16.gmra.mxu2 %v1474_v56  ;;  %v4475_v56 = vor.u32 %v5017_v4, %v4474_v54  ;;  %v4394_v27 = vld [vmem:[%s6600_s17 + $0xc0] sm:$0xf]  ;;  %v4415_v54 = vor.u32 %v5002_v26, %v4414_v25 }
 0x5b8   :  { %1788 = vmatmul.bf16.gmra.mxu3 %v1475_v31  ;;  %2113 = vmatpush.bf16.msra.mxu2 %v4471_v52  ;;  %v4454_v31 = vld [vmem:[%s6600_s17 + $0x138] sm:$0xf]  ;;  %v4997_v52 = vld [vmem:[%s6600_s17 + $0xc4] sm:$0xf] }
 0x5b9   :  { %2132 = vmatpush.bf16.msrb.mxu3 %v4475_v56  ;;  %v4396_v56 = vld [vmem:[%s6600_s17 + $0xcc] sm:$0xf0] }
 0x5e9   :  { %v1746_v12 = vpop.f32.mrf.mxu1 }
 0x5ea   :  { %v1747_v34 = vadd.f32 %v5149_v33, %v1746_v12  ;;  %v1803_v10 = vpop.f32.mrf.mxu0  ;;  %v5013_v12 = vld [vmem:[%s6600_s17 + $0x140] sm:$0xf0] }
 0x5f1   :  { %v1748_v58 = vpop.f32.mrf.mxu1 }
 0x5f2   :  { %v1749_v62 = vadd.f32 %v5149_v33, %v1748_v58  ;;  %v1805_v0 = vpop.f32.mrf.mxu0  ;;  %v4442_v58 = vld [vmem:[%s6600_s17 + $0x120] sm:$0xf] }
 0x5f5   :  { %v1765_v37 = vpop.f32.mrf.mxu2 }
 0x5f6   :  { %v1766_v38 = vadd.f32 %v1765_v37, %v1747_v34  ;;  %v1784_v8 = vpop.f32.mrf.mxu3  ;;  %v4455_v34 = vor.u32 %v5013_v12, %v4454_v31  ;;  %v4456_v37 = vld [vmem:[%s6600_s17 + $0x144] sm:$0xf0]  ;;  %v4399_v12 = vor.u32 %v4997_v52, %v4396_v56 }
 0x5f7   :  { %v4402_v31 = vld [vmem:[%s6600_s17 + $0xc8] sm:$0xf] }
 0x5f8   :  { %v1785_v41 = vadd.f32 %v1784_v8, %v1766_v38  ;;  %v4462_v38 = vld [vmem:[%s6600_s17 + $0x140] sm:$0xf]  ;;  %v5014_v8 = vld [vmem:[%s6600_s17 + $0x148] sm:$0xf0] }
 0x5fa   :  { %v1804_v20 = vadd.f32 %v1803_v10, %v1785_v41  ;;  %v4463_v41 = vor.u32 %v5014_v8, %v4462_v38 }
 0x5fc   :  { %v6034_v63 = vadd.f32 %v1804_v20, %v5905_v36  ;;  %2133 = vmatpush.bf16.msrb.mxu3 %v4463_v41  ;;  %v5010_v20 = vld [vmem:[%s6600_s17 + $0x128] sm:$0xf0] }
 0x5fd   :  { %v1767_v30 = vpop.f32.mrf.mxu2 }
 0x5fe   :  { %v1768_v59 = vadd.f32 %v1767_v30, %v1749_v62  ;;  %1819 = vadd.xlane.f32.xlu0 %v6034_v63  ;;  %v1831_v42 = vmul.f32 %v6034_v63, %v6034_v63  ;;  %v1786_v48 = vpop.f32.mrf.mxu3  ;;  %v5009_v62 = vld [vmem:[%s6600_s17 + $0x124] sm:$0xf]  ;;  %v4443_v30 = vor.u32 %v5010_v20, %v4442_v58 }
 0x600   :  { %v1787_v43 = vadd.f32 %v1786_v48, %v1768_v59  ;;  %1835 = vadd.xlane.f32.xlu1 %v1831_v42  ;;  %v4444_v59 = vld [vmem:[%s6600_s17 + $0x12c] sm:$0xf0]  ;;  %v4450_v42 = vld [vmem:[%s6600_s17 + $0x128] sm:$0xf]  ;;  %v5011_v48 = vld [vmem:[%s6600_s17 + $0x130] sm:$0xf0] }
 0x602   :  { %v1806_v53 = vadd.f32 %v1805_v0, %v1787_v43  ;;  %v4447_v43 = vor.u32 %v5009_v62, %v4444_v59  ;;  %v4451_v0 = vor.u32 %v5011_v48, %v4450_v42 }
 0x604   :  { %v6040_v46 = vadd.f32 %v1806_v53, %v5907_v39  ;;  %2134 = vmatpush.bf16.msrb.mxu3 %v4451_v0  ;;  %v4430_v53 = vld [vmem:[%s6600_s17 + $0x108] sm:$0xf] }
 0x606   :  { %1821 = vadd.xlane.f32.xlu2 %v6040_v46  ;;  %v1832_v36 = vmul.f32 %v6040_v46, %v6040_v46 }
 0x608   :  { %1837 = vadd.xlane.f32.xlu0 %v1832_v36  ;;  %v5007_v36 = vld [vmem:[%s6600_s17 + $0x110] sm:$0xf0] }
 0x62e   :  { %v1751_v19 = vpop.f32.mrf.mxu1 }
 0x62f   :  { %v1752_v55 = vadd.f32 %v5149_v33, %v1751_v19  ;;  %v1808_v35 = vpop.f32.mrf.mxu0  ;;  %v5006_v19 = vld [vmem:[%s6600_s17 + $0x10c] sm:$0xf] }
 0x636   :  { %v1753_v29 = vpop.f32.mrf.mxu1 }
 0x637   :  { %v1754_v60 = vadd.f32 %v5149_v33, %v1753_v29  ;;  %v1810_v7 = vpop.f32.mrf.mxu0  ;;  %v5012_v33 = vld [vmem:[%s6600_s17 + $0x13c] sm:$0xf]  ;;  %v4418_v29 = vld [vmem:[%s6600_s17 + $0xf0] sm:$0xf] }
 0x638   :  { %v4459_v10 = vor.u32 %v5012_v33, %v4456_v37  ;;  %v4999_v33 = vld [vmem:[%s6600_s17 + $0xd0] sm:$0xf0] }
 0x639   :  { %v4403_v37 = vor.u32 %v4999_v33, %v4402_v31 }
 0x63a   :  { %v1770_v57 = vpop.f32.mrf.mxu2  ;;  %2114 = vmatpush.bf16.msra.mxu2 %v4459_v10 }
 0x63b   :  { %v1771_v32 = vadd.f32 %v1770_v57, %v1752_v55  ;;  %v1789_v14 = vpop.f32.mrf.mxu3  ;;  %v4431_v55 = vor.u32 %v5007_v36, %v4430_v53  ;;  %v4432_v57 = vld [vmem:[%s6600_s17 + $0x114] sm:$0xf0] }
 0x63d   :  { %v1790_v40 = vadd.f32 %v1789_v14, %v1771_v32  ;;  %v4438_v32 = vld [vmem:[%s6600_s17 + $0x110] sm:$0xf]  ;;  %v5008_v14 = vld [vmem:[%s6600_s17 + $0x118] sm:$0xf0] }
 0x63e   :  { %2115 = vmatpush.bf16.msra.mxu2 %v4447_v43 }
 0x63f   :  { %v1809_v50 = vadd.f32 %v1808_v35, %v1790_v40  ;;  %v4435_v35 = vor.u32 %v5006_v19, %v4432_v57  ;;  %v4439_v40 = vor.u32 %v5008_v14, %v4438_v32 }
 0x641   :  { %v6046_v1 = vadd.f32 %v1809_v50, %v5913_v21  ;;  %2135 = vmatpush.bf16.msrb.mxu3 %v4439_v40  ;;  %v5004_v50 = vld [vmem:[%s6600_s17 + $0xf8] sm:$0xf0]  ;;  %v5150_v40 = vld [vmem:[%s6585_s12] ss:$0 sm:$0xff] }
 0x642   :  { %v1772_v39 = vpop.f32.mrf.mxu2  ;;  %2116 = vmatpush.bf16.msra.mxu2 %v4435_v35 }
 0x643   :  { %v1773_v2 = vadd.f32 %v1772_v39, %v1754_v60  ;;  %1823 = vadd.xlane.f32.xlu2 %v6046_v1  ;;  %v1833_v3 = vmul.f32 %v6046_v1, %v6046_v1  ;;  %v1791_v6 = vpop.f32.mrf.mxu3  ;;  %v5003_v60 = vld [vmem:[%s6600_s17 + $0xf4] sm:$0xf]  ;;  %v4419_v39 = vor.u32 %v5004_v50, %v4418_v29 }
 0x645   :  { %v1792_v9 = vadd.f32 %v1791_v6, %v1773_v2  ;;  %1839 = vadd.xlane.f32.xlu0 %v1833_v3  ;;  %v4420_v2 = vld [vmem:[%s6600_s17 + $0xfc] sm:$0xf0]  ;;  %v4426_v3 = vld [vmem:[%s6600_s17 + $0xf8] sm:$0xf]  ;;  %v5005_v6 = vld [vmem:[%s6600_s17 + $0x100] sm:$0xf0] }
 0x647   :  { %v1811_v47 = vadd.f32 %v1810_v7, %v1792_v9  ;;  %v4423_v7 = vor.u32 %v5003_v60, %v4420_v2 }
 0x649   :  { %v6052_v16 = vadd.f32 %v1811_v47, %v5915_v13  ;;  %v4479_v13 = vor.u32 %v5019_v51, %v4478_v18  ;;  %v4427_v47 = vor.u32 %v5005_v6, %v4426_v3  ;;  %2117 = vmatpush.bf16.msra.mxu2 %v4423_v7  ;;  %v4406_v51 = vld [vmem:[%s6600_s17 + $0xd8] sm:$0xf]  ;;  %v5151_v3 = vld [vmem:[%s6586_s13] ss:$0 sm:$0xff] }
 0x64a   :  { %v4407_v23 = vor.u32 %v5001_v44, %v4406_v51 }
 0x64b   :  { %1825 = vadd.xlane.f32.xlu1 %v6052_v16  ;;  %v1834_v21 = vmul.f32 %v6052_v16, %v6052_v16  ;;  %2093 = vmatpush.bf16.msra.mxu1 %v4479_v13  ;;  %v5000_v13 = vld [vmem:[%s6600_s17 + $0xdc] sm:$0xf] }
 0x64c   :  { %2136 = vmatpush.bf16.msrb.mxu3 %v4427_v47  ;;  %v4411_v45 = vor.u32 %v5000_v13, %v4408_v24 }
 0x64d   :  { %1841 = vadd.xlane.f32.xlu2 %v1834_v21 }
 0x64e   :  { %2118 = vmatpush.bf16.msra.mxu2 %v4411_v45 }
 0x64f   :  { %2094 = vmatpush.bf16.msra.mxu1 %v4467_v28  ;;  %v4998_v28 = vld [vmem:[%s6600_s17 + $0xc8] sm:$0xf0] }
 0x650   :  { %v4395_v4 = vor.u32 %v4998_v28, %v4394_v27  ;;  %2137 = vmatpush.bf16.msrb.mxu3 %v4415_v54 }
 0x652   :  { %2119 = vmatpush.bf16.msra.mxu2 %v4399_v12 }
 0x653   :  { %2095 = vmatpush.bf16.msra.mxu1 %v4455_v34 }
 0x654   :  { %2138 = vmatpush.bf16.msrb.mxu3 %v4403_v37 }
 0x657   :  { %2096 = vmatpush.bf16.msra.mxu1 %v4443_v30 }
 0x65b   :  { %2097 = vmatpush.bf16.msra.mxu1 %v4431_v55 }
 0x65f   :  { %2098 = vmatpush.bf16.msra.mxu1 %v4419_v39 }
 0x663   :  { %2099 = vmatpush.bf16.msra.mxu1 %v4407_v23 }
 0x667   :  { %2100 = vmatpush.bf16.msra.mxu1 %v4395_v4 }
 0x671   :  { %v1820_v9 = vpop.xlane.xlu0 %1819 }
 0x672   :  { %v1827_v21 = vmul.f32 0.0078125, %v1820_v9 }
 0x673   :  { %v1836_v18 = vpop.xlane.xlu1 %1835 }
 0x674   :  { %v1847_v15 = vmul.f32 %v1827_v21, %v1827_v21  ;;  %v1843_v22 = vmul.f32 0.0078125, %v1836_v18  ;;  %v1855_v32 = vsub.f32 %v6034_v63, %v1827_v21 }
 0x676   :  { %v1851_v49 = vsub.f32 %v1843_v22, %v1847_v15 }
 0x678   :  { %v1859_v34 = vadd.f32 1e-12, %v1851_v49 }
 0x679   :  { %v1822_v38 = vpop.xlane.xlu2 %1821 }
 0x67a   :  { %5232 = vrsqrt.f32 %v1859_v34  ;;  %v1828_v8 = vmul.f32 0.0078125, %v1822_v38  ;;  %vm1869_vm3 = vweird.f32 %v1859_v34 }
 0x67b   :  { %v1838_v10 = vpop.xlane.xlu0 %1837 }
 0x67c   :  { %v1848_v41 = vmul.f32 %v1828_v8, %v1828_v8  ;;  %v1844_v58 = vmul.f32 0.0078125, %v1838_v10  ;;  %v1856_v50 = vsub.f32 %v6040_v46, %v1828_v8 }
 0x67e   :  { %v1852_v20 = vsub.f32 %v1844_v58, %v1848_v41 }
 0x680   :  { %v5233_v62 = vpop.eup %5232  ;;  %v1860_v30 = vadd.f32 1e-12, %v1852_v20 }
 0x681   :  { %v1864_v59 = vmul.f32 %v5233_v62, %v1859_v34  ;;  %vm1870_vm15 = vweird.f32 %v5233_v62 }
 0x682   :  { %5234 = vrsqrt.f32 %v1860_v30  ;;  %vm1871_vm4 = vmor %vm1869_vm3, %vm1870_vm15  ;;  %vm1879_vm6 = vweird.f32 %v1860_v30 }
 0x683   :  { %v1865_v42 = vmul.f32 %v5233_v62, %v1864_v59 }
 0x685   :  { %v1866_v48 = vmul.f32 0.5, %v1865_v42 }
 0x687   :  { %v1867_v43 = vsub.f32 1.5, %v1866_v48 }
 0x688   :  { %v5235_v0 = vpop.eup %5234 }
 0x689   :  { %v1868_v53 = vmul.f32 %v5233_v62, %v1867_v43  ;;  %v1874_v36 = vmul.f32 %v5235_v0, %v1860_v30  ;;  %vm1880_vm5 = vweird.f32 %v5235_v0 }
 0x68a   :  { %vm1881_vm7 = vmor %vm1879_vm6, %vm1880_vm5 }
 0x68b   :  { %v1875_v19 = vmul.f32 %v5235_v0, %v1874_v36  ;;  %v1872_v55 = vsel %vm1871_vm4, %v5233_v62, %v1868_v53 }
 0x68c   :  { %v1903_v35 = vmul.f32 %v1872_v55, %v1855_v32 }
 0x68d   :  { %v1876_v57 = vmul.f32 0.5, %v1875_v19 }
 0x68e   :  { %v1910_v2 = vmul.f32 %v5150_v40, %v1903_v35 }
 0x68f   :  { %v1877_v14 = vsub.f32 1.5, %v1876_v57 }
 0x690   :  { %v6209_v6 = vadd.f32 %v5151_v3, %v1910_v2 }
 0x691   :  { %v1878_v29 = vmul.f32 %v5235_v0, %v1877_v14 }
 0x693   :  { %v1882_v60 = vsel %vm1881_vm7, %v5235_v0, %v1878_v29 }
 0x694   :  { %v1904_v39 = vmul.f32 %v1882_v60, %v1856_v50 }
 0x696   :  { %v1911_v63 = vmul.f32 %v5150_v40, %v1904_v39 }
 0x698   :  { %v6211_v9 = vadd.f32 %v5151_v3, %v1911_v63 }
 0x69a   :  { %v1921_v7 = vpack.c.bf16 %v6211_v9, %v6209_v6 }
 0x69c   :  { %2101 = vmatmul.bf16.vlgmr.msra.gmra.mxu1 %v1921_v7  ;;  %2120 = vmatmul.bf16.vlgmr.msra.gmra.mxu2 %v1921_v7 }
 0x69d   :  { %2139 = vmatmul.bf16.vlgmr.msrb.gmra.mxu3 %v1921_v7 }
 0x6b6   :  { %v1824_v46 = vpop.xlane.xlu2 %1823 }
 0x6b7   :  { %v1829_v47 = vmul.f32 0.0078125, %v1824_v46 }
 0x6b8   :  { %v1840_v21 = vpop.xlane.xlu0 %1839 }
 0x6b9   :  { %v1849_v18 = vmul.f32 %v1829_v47, %v1829_v47  ;;  %v1845_v51 = vmul.f32 0.0078125, %v1840_v21  ;;  %v1857_v37 = vsub.f32 %v6046_v1, %v1829_v47  ;;  %v4391_v1 = vld [vmem:[%s6602_s28 + $0x3] sm:$0x7] }
 0x6ba   :  { %v1959_v43 = vperm.slane %v4391_v1, 0  ;;  %v1960_v0 = vperm.slane %v4391_v1, 1 }
 0x6bb   :  { %v1853_v44 = vsub.f32 %v1845_v51, %v1849_v18 }
 0x6bd   :  { %v1861_v13 = vadd.f32 1e-12, %v1853_v44 }
 0x6be   :  { %v1826_v15 = vpop.xlane.xlu1 %1825 }
 0x6bf   :  { %5236 = vrsqrt.f32 %v1861_v13  ;;  %v1830_v22 = vmul.f32 0.0078125, %v1826_v15  ;;  %vm1889_vm9 = vweird.f32 %v1861_v13 }
 0x6c0   :  { %v1842_v23 = vpop.xlane.xlu2 %1841 }
 0x6c1   :  { %v1850_v24 = vmul.f32 %v1830_v22, %v1830_v22  ;;  %v1846_v25 = vmul.f32 0.0078125, %v1842_v23  ;;  %v1858_v41 = vsub.f32 %v6052_v16, %v1830_v22 }
 0x6c3   :  { %v1854_v45 = vsub.f32 %v1846_v25, %v1850_v24  ;;  %v1961_v25 = vperm.slane %v4391_v1, 2 }
 0x6c5   :  { %v5237_v26 = vpop.eup %5236  ;;  %v1862_v27 = vadd.f32 1e-12, %v1854_v45 }
 0x6c6   :  { %v1884_v28 = vmul.f32 %v5237_v26, %v1861_v13  ;;  %vm1890_vm8 = vweird.f32 %v5237_v26 }
 0x6c7   :  { %5238 = vrsqrt.f32 %v1862_v27  ;;  %vm1891_vm10 = vmor %vm1889_vm9, %vm1890_vm8  ;;  %vm1899_vm12 = vweird.f32 %v1862_v27 }
 0x6c8   :  { %v1885_v49 = vmul.f32 %v5237_v26, %v1884_v28 }
 0x6ca   :  { %v1886_v54 = vmul.f32 0.5, %v1885_v49 }
 0x6cc   :  { %v1887_v4 = vsub.f32 1.5, %v1886_v54 }
 0x6cd   :  { %v5239_v52 = vpop.eup %5238 }
 0x6ce   :  { %v1888_v56 = vmul.f32 %v5237_v26, %v1887_v4  ;;  %v1894_v31 = vmul.f32 %v5239_v52, %v1862_v27  ;;  %vm1900_vm11 = vweird.f32 %v5239_v52 }
 0x6cf   :  { %vm1901_vm13 = vmor %vm1899_vm12, %vm1900_vm11 }
 0x6d0   :  { %v1895_v12 = vmul.f32 %v5239_v52, %v1894_v31  ;;  %v1892_v33 = vsel %vm1891_vm10, %v5237_v26, %v1888_v56 }
 0x6d1   :  { %v1905_v8 = vmul.f32 %v1892_v33, %v1857_v37 }
 0x6d2   :  { %v1896_v34 = vmul.f32 0.5, %v1895_v12 }
 0x6d3   :  { %v1912_v62 = vmul.f32 %v5150_v40, %v1905_v8 }
 0x6d4   :  { %v1897_v38 = vsub.f32 1.5, %v1896_v34 }
 0x6d5   :  { %v6217_v59 = vadd.f32 %v5151_v3, %v1912_v62 }
 0x6d6   :  { %v1898_v10 = vmul.f32 %v5239_v52, %v1897_v38 }
 0x6d8   :  { %v1902_v58 = vsel %vm1901_vm13, %v5239_v52, %v1898_v10 }
 0x6d9   :  { %v1906_v20 = vmul.f32 %v1902_v58, %v1858_v41 }
 0x6db   :  { %v1913_v30 = vmul.f32 %v5150_v40, %v1906_v20 }
 0x6dd   :  { %v6219_v42 = vadd.f32 %v5151_v3, %v1913_v30 }
 0x6df   :  { %v1922_v48 = vpack.c.bf16 %v6219_v42, %v6217_v59 }
 0x6e1   :  { %2106 = vmatmul.bf16.gmra.mxu1 %v1922_v48  ;;  %2125 = vmatmul.bf16.gmra.mxu2 %v1922_v48 }
 0x6e2   :  { %2144 = vmatmul.bf16.gmra.mxu3 %v1922_v48 }
 0x719   :  { %v2102_v16 = vpop.f32.mrf.mxu1 }
 0x71a   :  { %v2103_v36 = vadd.f32 %v2102_v16, %v1959_v43 }
 0x71f   :  { %v2121_v53 = vpop.f32.mrf.mxu2 }
 0x720   :  { %v2122_v19 = vadd.f32 %v2121_v53, %v1960_v0  ;;  %v2140_v24 = vpop.f32.mrf.mxu3 }
 0x721   :  { %v2104_v32 = vpop.f32.mrf.mxu1  ;;  %v2141_v45 = vadd.f32 %v2140_v24, %v1961_v25 }
 0x722   :  { %v2150_v55 = vpack.c.bf16 %v2122_v19, %v2103_v36  ;;  %v2105_v40 = vadd.f32 %v2104_v32, %v1959_v43 }
 0x723   :  { %v6238_v26 = vpack.c.bf16 %v2141_v45, %v2141_v45 }
 0x724   :  { %2162 = vrot.lane.b32.xlu1 %v2150_v55, %s5450_s8  ;;  %v2170_v57 = vrot.slane %v2150_v55, 4 }
 0x725   :  { %v2442_v4 = vsel %vm678_vm2, %v6238_v26, 0 }
 0x726   :  { %v2194_v14 = vsel %vm425_vm0, %v2170_v57, 0 }
 0x727   :  { %v2123_v35 = vpop.f32.mrf.mxu2  ;;  %2203 = vmatpush.bf16.xpose.msrb.mxu0 %v2194_v14 }
 0x728   :  { %v2124_v29 = vadd.f32 %v2123_v35, %v1960_v0  ;;  %v2142_v28 = vpop.f32.mrf.mxu3 }
 0x729   :  { %v2143_v52 = vadd.f32 %v2142_v28, %v1961_v25 }
 0x72a   :  { %v2152_v50 = vpack.c.bf16 %v2124_v29, %v2105_v40 }
 0x72b   :  { %v6243_v56 = vpack.c.bf16 %v2143_v52, %v2143_v52 }
 0x72c   :  { %2164 = vrot.lane.b32.xlu0 %v2152_v50, %s5450_s8  ;;  %v2171_v60 = vrot.slane %v2152_v50, 4 }
 0x72d   :  { %v2461_v34 = vsel %vm678_vm2, %v6243_v56, 0 }
 0x72e   :  { %4488 = vmatmul.msk.bf16.vlgmr.msrb.gmra.mxu0 %vm425_vm0, %v2150_v55  ;;  %v2213_v39 = vsel %vm425_vm0, %v2171_v60, 0 }
 0x72f   :  { %2222 = vmatpush.bf16.xpose.msrb.mxu1 %v2213_v39 }
 0x736   :  { %4489 = vmatmul.msk.bf16.vlgmr.msrb.gmra.mxu1 %vm425_vm0, %v2152_v50 }
 0x75e   :  { %v2107_v2 = vpop.f32.mrf.mxu1 }
 0x75f   :  { %v2108_v63 = vadd.f32 %v2107_v2, %v1959_v43 }
 0x764   :  { %v2126_v3 = vpop.f32.mrf.mxu2 }
 0x765   :  { %v2127_v7 = vadd.f32 %v2126_v3, %v1960_v0  ;;  %v2145_v30 = vpop.f32.mrf.mxu3 }
 0x766   :  { %v2109_v21 = vpop.f32.mrf.mxu1  ;;  %v2146_v48 = vadd.f32 %v2145_v30, %v1961_v25 }
 0x767   :  { %v2154_v46 = vpack.c.bf16 %v2127_v7, %v2108_v63  ;;  %v2110_v44 = vadd.f32 %v2109_v21, %v1959_v43 }
 0x768   :  { %v6257_v1 = vpack.c.bf16 %v2146_v48, %v2146_v48 }
 0x769   :  { %2166 = vrot.lane.b32.xlu2 %v2154_v46, %s5450_s8  ;;  %v2172_v47 = vrot.slane %v2154_v46, 4 }
 0x76a   :  { %v2480_v53 = vsel %vm678_vm2, %v6257_v1, 0 }
 0x76b   :  { %v2232_v18 = vsel %vm425_vm0, %v2172_v47, 0 }
 0x76c   :  { %v2128_v51 = vpop.f32.mrf.mxu2  ;;  %2241 = vmatpush.bf16.xpose.msrb.mxu2 %v2232_v18 }
 0x76d   :  { %v2129_v13 = vadd.f32 %v2128_v51, %v1960_v0  ;;  %v2147_v36 = vpop.f32.mrf.mxu3 }
 0x76e   :  { %v2148_v19 = vadd.f32 %v2147_v36, %v1961_v25 }
 0x76f   :  { %v2156_v15 = vpack.c.bf16 %v2129_v13, %v2110_v44 }
 0x770   :  { %v6263_v55 = vpack.c.bf16 %v2148_v19, %v2148_v19 }
 0x771   :  { %2168 = vrot.lane.b32.xlu0 %v2156_v15, %s5450_s8  ;;  %v2173_v22 = vrot.slane %v2156_v15, 4 }
 0x772   :  { %v2499_v35 = vsel %vm678_vm2, %v6263_v55, 0 }
 0x773   :  { %4490 = vmatmul.msk.bf16.vlgmr.msrb.gmra.mxu2 %vm425_vm0, %v2154_v46  ;;  %v2251_v23 = vsel %vm425_vm0, %v2173_v22, 0 }
 0x774   :  { %2260 = vmatpush.bf16.xpose.msra.mxu3 %v2251_v23 }
 0x77b   :  { %4491 = vmatmul.msk.bf16.vlgmr.msra.gmra.mxu3 %vm425_vm0, %v2156_v15 }
 0x796   :  { %v2163_v27 = vpop.permute.xlu1 %2162 }
 0x797   :  { %v2174_v49 = vrot.slane %v2163_v27, 4 }
 0x799   :  { %v2270_v54 = vsel %vm425_vm0, %v2174_v49, 0 }
 0x79a   :  { %2279 = vmatpush.bf16.xpose.msra.mxu0 %v2270_v54 }
 0x79e   :  { %v2165_v31 = vpop.permute.xlu0 %2164 }
 0x79f   :  { %v2175_v12 = vrot.slane %v2165_v31, 4 }
 0x7a1   :  { %4492 = vmatmul.msk.bf16.vlgmr.msra.gmra.mxu0 %vm425_vm0, %v2163_v27  ;;  %v2289_v33 = vsel %vm425_vm0, %v2175_v12, 0 }
 0x7a2   :  { %2451 = vmatpush.bf16.msrb.mxu0 %v2442_v4  ;;  %2298 = vmatpush.bf16.xpose.msra.mxu1 %v2289_v33 }
 0x7a9   :  { %4493 = vmatmul.msk.bf16.vlgmr.msra.gmra.mxu1 %vm425_vm0, %v2165_v31 }
 0x7aa   :  { %2470 = vmatpush.bf16.msrb.mxu1 %v2461_v34 }
 0x7ab   :  { %v2205_v37 = vpop.f32.mrf.mxu0 }
 0x7ac   :  { %v6251_v38 = vadd.f32 %v2205_v37, %v5783_v61 }
 0x7ae   :  { %v2342_v8 = vsel %vm578_vm1, %v6251_v38, -inf }
 0x7af   :  { %2343 = vmax.xlane.f32.xlu1 %v2342_v8 }
 0x7b3   :  { %v2207_v10 = vpop.f32.mrf.mxu0  ;;  %v2224_v41 = vpop.f32.mrf.mxu1 }
 0x7b4   :  { %v2225_v58 = vadd.f32 %v2224_v41, %v5790_v5 }
 0x7b6   :  { %v2345_v20 = vsel %vm578_vm1, %v2225_v58, -inf }
 0x7b7   :  { %2346 = vmax.xlane.f32.xlu2 %v2345_v20 }
 0x7bb   :  { %v2226_v62 = vpop.f32.mrf.mxu1 }
 0x7c3   :  { %v2167_v16 = vpop.permute.xlu2 %2166 }
 0x7c4   :  { %v2176_v43 = vrot.slane %v2167_v16, 4 }
 0x7c6   :  { %v2308_v0 = vsel %vm425_vm0, %v2176_v43, 0 }
 0x7c7   :  { %2317 = vmatpush.bf16.xpose.msra.mxu2 %v2308_v0 }
 0x7ce   :  { %4494 = vmatmul.msk.bf16.vlgmr.msra.gmra.mxu2 %vm425_vm0, %v2167_v16 }
 0x7cf   :  { %2489 = vmatpush.bf16.msrb.mxu2 %v2480_v53 }
 0x7e3   :  { %v2169_v57 = vpop.permute.xlu0 %2168 }
 0x7e4   :  { %v2177_v32 = vrot.slane %v2169_v57, 4 }
 0x7e6   :  { %v2327_v14 = vsel %vm425_vm0, %v2177_v32, 0 }
 0x7e7   :  { %2336 = vmatpush.bf16.xpose.msrb.mxu3 %v2327_v14 }
 0x7ee   :  { %4495 = vmatmul.msk.bf16.vlgmr.msrb.gmra.mxu3 %vm425_vm0, %v2169_v57 }
 0x7ef   :  { %2508 = vmatpush.bf16.msra.mxu3 %v2499_v35 }
 0x7f6   :  { %v2243_v40 = vpop.f32.mrf.mxu2 }
 0x7f7   :  { %v2244_v29 = vadd.f32 %v2243_v40, %v5797_v11 }
 0x7f9   :  { %v2348_v50 = vsel %vm578_vm1, %v2244_v29, -inf }
 0x7fa   :  { %2349 = vmax.xlane.f32.xlu0 %v2348_v50 }
 0x7fe   :  { %v2245_v60 = vpop.f32.mrf.mxu2  ;;  %v2262_v39 = vpop.f32.mrf.mxu3 }
 0x7ff   :  { %v2263_v2 = vadd.f32 %v2262_v39, %v5804_v17 }
 0x801   :  { %v2351_v3 = vsel %vm578_vm1, %v2263_v2, -inf }
 0x802   :  { %2352 = vmax.xlane.f32.xlu1 %v2351_v3 }
 0x806   :  { %v2264_v63 = vpop.f32.mrf.mxu3 }
 0x81e   :  { %v2281_v7 = vpop.f32.mrf.mxu0 }
 0x81f   :  { %v2282_v46 = vadd.f32 %v2281_v7, %v5783_v61 }
 0x821   :  { %v2354_v47 = vsel %vm578_vm1, %v2282_v46, -inf }
 0x822   :  { %2355 = vmax.xlane.f32.xlu2 %v2354_v47  ;;  %v2344_v27 = vpop.xlane.xlu1 %2343 }
 0x823   :  { %v2366_v28 = vsub.f32 %v6251_v38, %v2344_v27 }
 0x825   :  { %v2374_v54 = vmul.f32 1.442695, %v2366_v28 }
 0x826   :  { %v2283_v21 = vpop.f32.mrf.mxu0  ;;  %v2300_v18 = vpop.f32.mrf.mxu1 }
 0x827   :  { %v2301_v51 = vadd.f32 %v2300_v18, %v5790_v5 }
 0x829   :  { %v2357_v44 = vsel %vm578_vm1, %v2301_v51, -inf }
 0x82a   :  { %v2347_v13 = vpop.xlane.xlu2 %2346  ;;  %2358 = vmax.xlane.f32.xlu0 %v2357_v44 }
 0x82b   :  { %v2367_v15 = vsub.f32 %v2225_v58, %v2347_v13 }
 0x82d   :  { %v2376_v22 = vmul.f32 1.442695, %v2367_v15 }
 0x82e   :  { %v2302_v23 = vpop.f32.mrf.mxu1 }
 0x82f   :  { %5240 = vpow2.f32 %v2376_v22 }
 0x830   :  { %5242 = vpow2.f32 %v2374_v54 }
 0x835   :  { %v5241_v24 = vpop.eup %5240 }
 0x836   :  { %v2393_v25 = vsel %vm578_vm1, %v5241_v24, 0.0  ;;  %v5243_v4 = vpop.eup %5242 }
 0x837   :  { %2394 = vadd.xlane.f32.xlu1 %v2393_v25  ;;  %v2390_v52 = vsel %vm578_vm1, %v5243_v4, 0.0 }
 0x83e   :  { %2182 = vrot.lane.b32.xlu0 %v6238_v26, %s5450_s8 }
 0x851   :  { %v2319_v61 = vpop.f32.mrf.mxu2 }
 0x852   :  { %v2320_v45 = vadd.f32 %v2319_v61, %v5797_v11 }
 0x854   :  { %v2360_v5 = vsel %vm578_vm1, %v2320_v45, -inf }
 0x855   :  { %2361 = vmax.xlane.f32.xlu1 %v2360_v5 }
 0x859   :  { %v2321_v49 = vpop.f32.mrf.mxu2 }
 0x868   :  { %2391 = vadd.xlane.f32.xlu0 %v2390_v52 }
 0x86d   :  { %v2350_v31 = vpop.xlane.xlu0 %2349 }
 0x86e   :  { %v2368_v12 = vsub.f32 %v2244_v29, %v2350_v31 }
 0x870   :  { %v2378_v33 = vmul.f32 1.442695, %v2368_v12 }
 0x871   :  { %v2338_v26 = vpop.f32.mrf.mxu3 }
 0x872   :  { %v2339_v34 = vadd.f32 %v2338_v26, %v5804_v17  ;;  %5244 = vpow2.f32 %v2378_v33 }
 0x874   :  { %v2363_v11 = vsel %vm578_vm1, %v2339_v34, -inf }
 0x875   :  { %2364 = vmax.xlane.f32.xlu2 %v2363_v11  ;;  %v2353_v37 = vpop.xlane.xlu1 %2352 }
 0x876   :  { %v2369_v8 = vsub.f32 %v2263_v2, %v2353_v37 }
 0x878   :  { %v2380_v38 = vmul.f32 1.442695, %v2369_v8  ;;  %v5245_v10 = vpop.eup %5244 }
 0x879   :  { %v2340_v41 = vpop.f32.mrf.mxu3  ;;  %v2396_v58 = vsel %vm578_vm1, %v5245_v10, 0.0 }
 0x87a   :  { %5246 = vpow2.f32 %v2380_v38 }
 0x87d   :  { %2397 = vadd.xlane.f32.xlu2 %v2396_v58 }
 0x880   :  { %v5247_v20 = vpop.eup %5246 }
 0x881   :  { %v2399_v62 = vsel %vm578_vm1, %v5247_v20, 0.0 }
 0x882   :  { %2400 = vadd.xlane.f32.xlu0 %v2399_v62 }
 0x895   :  { %v2356_v30 = vpop.xlane.xlu2 %2355 }
 0x896   :  { %v2370_v48 = vsub.f32 %v2282_v46, %v2356_v30  ;;  %2186 = vrot.lane.b32.xlu0 %v6257_v1, %s5450_s8 }
 0x898   :  { %v2382_v17 = vmul.f32 1.442695, %v2370_v48 }
 0x89a   :  { %5248 = vpow2.f32 %v2382_v17 }
 0x89d   :  { %v2359_v16 = vpop.xlane.xlu0 %2358 }
 0x89e   :  { %v2371_v43 = vsub.f32 %v2301_v51, %v2359_v16 }
 0x8a0   :  { %v5249_v0 = vpop.eup %5248  ;;  %v2384_v53 = vmul.f32 1.442695, %v2371_v43 }
 0x8a1   :  { %v2402_v36 = vsel %vm578_vm1, %v5249_v0, 0.0 }
 0x8a2   :  { %5250 = vpow2.f32 %v2384_v53  ;;  %2403 = vadd.xlane.f32.xlu1 %v2402_v36 }
 0x8a8   :  { %v5251_v19 = vpop.eup %5250 }
 0x8a9   :  { %v2405_v57 = vsel %vm578_vm1, %v5251_v19, 0.0 }
 0x8aa   :  { %2406 = vadd.xlane.f32.xlu2 %v2405_v57  ;;  %v2395_v32 = vpop.xlane.xlu1 %2394 }
 0x8ab   :  { %5252 = vrcp.f32 %v2395_v32 }
 0x8b0   :  { %v2183_v14 = vpop.permute.xlu0 %2182 }
 0x8b1   :  { %v5253_v35 = vpop.eup %5252  ;;  %v2518_v1 = vsel %vm678_vm2, %v2183_v14, 0 }
 0x8b2   :  { %v2423_v40 = vmul.f32 %v5253_v35, %v5241_v24  ;;  %2527 = vmatpush.bf16.msra.mxu0 %v2518_v1 }
 0x8b4   :  { %v2431_v29 = vpack.c.bf16 %v2423_v40, %v2423_v40 }
 0x8b6   :  { %4497 = vmatmul.msk.bf16.vlgmr.msrb.gmra.mxu1 %vm578_vm1, %v2431_v29  ;;  %v5028_v29 = vld [vmem:[#allocation2 + $0x78] sm:$0xff] }
 0x8bb   :  { %2184 = vrot.lane.b32.xlu1 %v6243_v56, %s5450_s8 }
 0x8c8   :  { %v2362_v50 = vpop.xlane.xlu1 %2361 }
 0x8c9   :  { %v2372_v60 = vsub.f32 %v2320_v45, %v2362_v50  ;;  %v5027_v50 = vld [vmem:[#allocation2 + $0x70] sm:$0xff] }
 0x8cb   :  { %v2386_v39 = vmul.f32 1.442695, %v2372_v60  ;;  %v5026_v60 = vld [vmem:[#allocation2 + $0x68] sm:$0xff] }
 0x8cd   :  { %5254 = vpow2.f32 %v2386_v39  ;;  %v5025_v39 = vld [vmem:[#allocation2 + $0x60] sm:$0xff] }
 0x8d3   :  { %v5255_v2 = vpop.eup %5254 }
 0x8d4   :  { %v2408_v3 = vsel %vm578_vm1, %v5255_v2, 0.0 }
 0x8d5   :  { %2409 = vadd.xlane.f32.xlu2 %v2408_v3  ;;  %v5023_v3 = vld [vmem:[#allocation2 + $0x50] sm:$0xff] }
 0x8db   :  { %v2392_v63 = vpop.xlane.xlu0 %2391 }
 0x8dc   :  { %5256 = vrcp.f32 %v2392_v63  ;;  %v5022_v63 = vld [vmem:[#allocation2 + $0x48] sm:$0xff] }
 0x8e2   :  { %v5257_v7 = vpop.eup %5256 }
 0x8e3   :  { %v2422_v46 = vmul.f32 %v5257_v7, %v5243_v4 }
 0x8e5   :  { %v2430_v47 = vpack.c.bf16 %v2422_v46, %v2422_v46 }
 0x8e7   :  { %4496 = vmatmul.msk.bf16.vlgmr.msrb.gmra.mxu0 %vm578_vm1, %v2430_v47 }
 0x8e8   :  { %v2365_v21 = vpop.xlane.xlu2 %2364  ;;  %2682 = vmatpush.bf16.msrb.mxu0 %v5028_v29  ;;  %v4622_v29 = vld [vmem:[#allocation4 + $0x1a0] sm:$0xf] }
 0x8e9   :  { %v2373_v18 = vsub.f32 %v2339_v34, %v2365_v21  ;;  %v5021_v21 = vld [vmem:[#allocation2 + $0x40] sm:$0xff] }
 0x8eb   :  { %v2388_v51 = vmul.f32 1.442695, %v2373_v18 }
 0x8ec   :  { %2683 = vmatpush.bf16.msrb.mxu0 %v5027_v50  ;;  %v5051_v50 = vld [vmem:[#allocation4 + $0x1ac] sm:$0xf0] }
 0x8ed   :  { %5258 = vpow2.f32 %v2388_v51 }
 0x8f0   :  { %v2398_v56 = vpop.xlane.xlu2 %2397  ;;  %2684 = vmatpush.bf16.msrb.mxu0 %v5026_v60  ;;  %v5049_v60 = vld [vmem:[#allocation4 + $0x1a4] sm:$0xf] }
 0x8f1   :  { %5260 = vrcp.f32 %v2398_v56 }
 0x8f3   :  { %v5259_v44 = vpop.eup %5258 }
 0x8f4   :  { %v2411_v13 = vsel %vm578_vm1, %v5259_v44, 0.0  ;;  %2685 = vmatpush.bf16.msrb.mxu0 %v5025_v39  ;;  %v4623_v39 = vor.u32 %v5051_v50, %v4622_v29  ;;  %v5036_v29 = vld [vmem:[#allocation4 + $0x134] sm:$0xf0]  ;;  %v5034_v50 = vld [vmem:[#allocation4 + $0x12c] sm:$0xf] }
 0x8f5   :  { %v2401_v15 = vpop.xlane.xlu0 %2400  ;;  %2412 = vadd.xlane.f32.xlu2 %v2411_v13 }
 0x8f6   :  { %5262 = vrcp.f32 %v2401_v15 }
 0x8f7   :  { %v5261_v22 = vpop.eup %5260 }
 0x8f8   :  { %v2424_v23 = vmul.f32 %v5261_v22, %v5245_v10 }
 0x8fa   :  { %v2432_v24 = vpack.c.bf16 %v2424_v23, %v2424_v23 }
 0x8fc   :  { %v5263_v25 = vpop.eup %5262  ;;  %4498 = vmatmul.msk.bf16.vlgmr.msrb.gmra.mxu2 %vm578_vm1, %v2432_v24 }
 0x8fd   :  { %v2425_v61 = vmul.f32 %v5263_v25, %v5247_v20 }
 0x8ff   :  { %v2433_v45 = vpack.c.bf16 %v2425_v61, %v2425_v61 }
 0x901   :  { %4499 = vmatmul.msk.bf16.vlgmr.msra.gmra.mxu3 %vm578_vm1, %v2433_v45 }
 0x908   :  { %v2187_v27 = vpop.permute.xlu0 %2186 }
 0x909   :  { %v2556_v5 = vsel %vm678_vm2, %v2187_v27, 0  ;;  %v5152_v27 = vld [vmem:[%s6578_s5 + $0x1] ss:$0 sm:$0xff] }
 0x90a   :  { %2565 = vmatpush.bf16.msra.mxu2 %v2556_v5 }
 0x90d   :  { %2188 = vrot.lane.b32.xlu2 %v6263_v55, %s5450_s8 }
 0x915   :  { %v2404_v28 = vpop.xlane.xlu1 %2403 }
 0x916   :  { %5264 = vrcp.f32 %v2404_v28 }
 0x91c   :  { %v5265_v49 = vpop.eup %5264 }
 0x91d   :  { %v2426_v54 = vmul.f32 %v5265_v49, %v5249_v0  ;;  %v2407_v52 = vpop.xlane.xlu2 %2406 }
 0x91e   :  { %5266 = vrcp.f32 %v2407_v52 }
 0x91f   :  { %v2434_v4 = vpack.c.bf16 %v2426_v54, %v2426_v54 }
 0x921   :  { %4500 = vmatmul.msk.bf16.vlgmr.msra.gmra.mxu0 %vm578_vm1, %v2434_v4 }
 0x924   :  { %v5267_v31 = vpop.eup %5266 }
 0x925   :  { %v2427_v12 = vmul.f32 %v5267_v31, %v5251_v19 }
 0x927   :  { %v2435_v34 = vpack.c.bf16 %v2427_v12, %v2427_v12 }
 0x92d   :  { %v2185_v33 = vpop.permute.xlu1 %2184 }
 0x92e   :  { %v2537_v26 = vsel %vm678_vm2, %v2185_v33, 0 }
 0x92f   :  { %2546 = vmatpush.bf16.msra.mxu1 %v2537_v26 }
 0x932   :  { %4501 = vmatmul.msk.bf16.vlgmr.msra.gmra.mxu1 %vm578_vm1, %v2435_v34 }
 0x933   :  { %v2472_v11 = vpop.f32.mrf.mxu1 }
 0x93b   :  { %v2474_v55 = vpop.f32.mrf.mxu1 }
 0x948   :  { %v2410_v37 = vpop.xlane.xlu2 %2409 }
 0x949   :  { %5268 = vrcp.f32 %v2410_v37 }
 0x94f   :  { %v5269_v8 = vpop.eup %5268 }
 0x950   :  { %v2428_v38 = vmul.f32 %v5269_v8, %v5255_v2  ;;  %v5024_v2 = vld [vmem:[#allocation2 + $0x58] sm:$0xff]  ;;  %v4654_v8 = vld [vmem:[#allocation4 + $0x1e0] sm:$0xf] }
 0x951   :  { %2686 = vmatpush.bf16.msrb.mxu0 %v5024_v2  ;;  %v4624_v2 = vld [vmem:[#allocation4 + $0x1b0] sm:$0xf0] }
 0x952   :  { %v2436_v10 = vpack.c.bf16 %v2428_v38, %v2428_v38  ;;  %v5057_v38 = vld [vmem:[#allocation4 + $0x1e4] sm:$0xf] }
 0x954   :  { %4502 = vmatmul.msk.bf16.vlgmr.msra.gmra.mxu2 %vm578_vm1, %v2436_v10 }
 0x955   :  { %2687 = vmatpush.bf16.msrb.mxu0 %v5023_v3  ;;  %v4630_v3 = vld [vmem:[#allocation4 + $0x1a8] sm:$0xf] }
 0x959   :  { %2688 = vmatpush.bf16.msrb.mxu0 %v5022_v63  ;;  %v5052_v63 = vld [vmem:[#allocation4 + $0x1b4] sm:$0xf0] }
 0x95d   :  { %2689 = vmatpush.bf16.msrb.mxu0 %v5021_v21  ;;  %v4632_v21 = vld [vmem:[#allocation4 + $0x1b8] sm:$0xf0] }
 0x964   :  { %v2453_v41 = vpop.f32.mrf.mxu0 }
 0x968   :  { %v2413_v58 = vpop.xlane.xlu2 %2412 }
 0x969   :  { %5270 = vrcp.f32 %v2413_v58  ;;  %v4662_v58 = vld [vmem:[#allocation4 + $0x1e8] sm:$0xf] }
 0x96c   :  { %v2455_v20 = vpop.f32.mrf.mxu0 }
 0x96d   :  { %v5060_v20 = vld [vmem:[#allocation4 + $0x1f4] sm:$0xf0] }
 0x96f   :  { %v5271_v62 = vpop.eup %5270 }
 0x970   :  { %v2429_v30 = vmul.f32 %v5271_v62, %v5259_v44  ;;  %v2189_v48 = vpop.permute.xlu2 %2188 }
 0x971   :  { %v2575_v17 = vsel %vm678_vm2, %v2189_v48, 0  ;;  %v5058_v48 = vld [vmem:[#allocation4 + $0x1ec] sm:$0xf] }
 0x972   :  { %v2437_v16 = vpack.c.bf16 %v2429_v30, %v2429_v30  ;;  %2584 = vmatpush.bf16.msrb.mxu3 %v2575_v17  ;;  %v4663_v30 = vor.u32 %v5060_v20, %v4662_v58  ;;  %v4664_v17 = vld [vmem:[#allocation4 + $0x1f8] sm:$0xf0]  ;;  %v4582_v58 = vld [vmem:[#allocation4 + $0x148] sm:$0xf]  ;;  %v5040_v20 = vld [vmem:[#allocation4 + $0x154] sm:$0xf0] }
 0x975   :  { %4503 = vmatmul.msk.bf16.vlgmr.msrb.gmra.mxu3 %vm578_vm1, %v2437_v16  ;;  %v4638_v16 = vld [vmem:[#allocation4 + $0x1c0] sm:$0xf] }
 0x976   :  { %3055 = vmatpush.bf16.msra.mxu3 %v4663_v30 }
 0x97f   :  { %v2491_v43 = vpop.f32.mrf.mxu2 }
 0x984   :  { %v2510_v0 = vpop.f32.mrf.mxu3 }
 0x987   :  { %v2493_v53 = vpop.f32.mrf.mxu2 }
 0x98c   :  { %v2512_v36 = vpop.f32.mrf.mxu3 }
 0x98d   :  { %v4640_v36 = vld [vmem:[#allocation4 + $0x1d0] sm:$0xf0] }
 0x99e   :  { %v2529_v19 = vpop.f32.mrf.mxu0 }
 0x9a6   :  { %v2531_v57 = vpop.f32.mrf.mxu0 }
 0x9a7   :  { %v5056_v57 = vld [vmem:[#allocation4 + $0x1d4] sm:$0xf0] }
 0x9af   :  { %v2548_v32 = vpop.f32.mrf.mxu1 }
 0x9b0   :  { %v5136_v14 = vpack.i.bf16 %v2548_v32, %v2529_v19  ;;  %v4646_v19 = vld [vmem:[#allocation4 + $0x1c8] sm:$0xf] }
 0x9b2   :  { %5137 = vrot.lane.b32.xlu1 %v5136_v14, %s5450_s8  ;;  %v4647_v14 = vor.u32 %v5056_v57, %v4646_v19  ;;  %v5033_v19 = vld [vmem:[#allocation4 + $0x124] sm:$0xf] }
 0x9b4   :  { %3056 = vmatpush.bf16.msra.mxu3 %v4647_v14 }
 0x9b7   :  { %v2550_v35 = vpop.f32.mrf.mxu1 }
 0x9b8   :  { %v5054_v35 = vld [vmem:[#allocation4 + $0x1cc] sm:$0xf] }
 0x9d7   :  { %v2567_v1 = vpop.f32.mrf.mxu2 }
 0x9df   :  { %v2569_v40 = vpop.f32.mrf.mxu2 }
 0x9f8   :  { %v2586_v7 = vpop.f32.mrf.mxu3 }
 0x9f9   :  { %v5141_v46 = vpack.i.bf16 %v2586_v7, %v2567_v1  ;;  %v4648_v1 = vld [vmem:[#allocation4 + $0x1d8] sm:$0xf0]  ;;  %v4627_v7 = vor.u32 %v5049_v60, %v4624_v2 }
 0x9fa   :  { %v4651_v40 = vor.u32 %v5054_v35, %v4648_v1  ;;  %v4560_v35 = vld [vmem:[#allocation4 + $0x130] sm:$0xf0]  ;;  %v4566_v1 = vld [vmem:[#allocation4 + $0x128] sm:$0xf]  ;;  %v4568_v60 = vld [vmem:[#allocation4 + $0x138] sm:$0xf0] }
 0x9fb   :  { %5142 = vrot.lane.b32.xlu0 %v5141_v46, %s5450_s8  ;;  %v4631_v46 = vor.u32 %v5052_v63, %v4630_v3  ;;  %v4567_v2 = vor.u32 %v5036_v29, %v4566_v1  ;;  %v4571_v3 = vor.u32 %v5034_v50, %v4568_v60  ;;  %v4542_v63 = vld [vmem:[#allocation4 + $0x100] sm:$0xf] }
 0x9fd   :  { %3057 = vmatpush.bf16.msra.mxu3 %v4631_v46  ;;  %v5029_v46 = vld [vmem:[#allocation4 + $0x104] sm:$0xf] }
 0xa00   :  { %v2588_v47 = vpop.f32.mrf.mxu3 }
 0xa01   :  { %v5050_v47 = vld [vmem:[#allocation4 + $0x1ac] sm:$0xf] }
 0xa24   :  { %v5138_v18 = vpop.permute.xlu1 %5137 }
 0xa25   :  { %v5140_v51 = vunpack.i.h.bf16 %v5138_v18  ;;  %v5139_v56 = vunpack.i.l.bf16 %v5138_v18  ;;  %v4635_v18 = vor.u32 %v5050_v47, %v4632_v21  ;;  %v4544_v21 = vld [vmem:[#allocation4 + $0x110] sm:$0xf0] }
 0xa27   :  { %v2607_v44 = vsel %vm425_vm0, %v2472_v11, %v5140_v51  ;;  %v2606_v13 = vsel %vm425_vm0, %v2453_v41, %v5139_v56  ;;  %v4656_v41 = vld [vmem:[#allocation4 + $0x1f0] sm:$0xf0]  ;;  %v4606_v51 = vld [vmem:[#allocation4 + $0x180] sm:$0xf]  ;;  %v5047_v56 = vld [vmem:[#allocation4 + $0x18c] sm:$0xf0] }
 0xa28   :  { %v2610_v15 = vpack.c.bf16 %v2607_v44, %v2606_v13  ;;  %v4659_v62 = vor.u32 %v5057_v38, %v4656_v41  ;;  %v5045_v44 = vld [vmem:[#allocation4 + $0x184] sm:$0xf]  ;;  %v4607_v13 = vor.u32 %v5047_v56, %v4606_v51  ;;  %v4576_v41 = vld [vmem:[#allocation4 + $0x150] sm:$0xf0]  ;;  %v5032_v51 = vld [vmem:[#allocation4 + $0x114] sm:$0xf0] }
 0xa29   :  { %v5037_v38 = vld [vmem:[#allocation4 + $0x144] sm:$0xf] }
 0xa2a   :  { %2690 = vmatmul.bf16.vlgmr.msrb.gmra.mxu0 %v2610_v15  ;;  %3036 = vmatpush.bf16.msrb.mxu2 %v4659_v62  ;;  %v4608_v15 = vld [vmem:[#allocation4 + $0x190] sm:$0xf0]  ;;  %v4579_v30 = vor.u32 %v5037_v38, %v4576_v41 }
 0xa6d   :  { %v5143_v22 = vpop.permute.xlu0 %5142 }
 0xa6e   :  { %v5145_v23 = vunpack.i.h.bf16 %v5143_v22  ;;  %v5144_v24 = vunpack.i.l.bf16 %v5143_v22  ;;  %v4614_v22 = vld [vmem:[#allocation4 + $0x188] sm:$0xf] }
 0xa70   :  { %v2608_v25 = vsel %vm425_vm0, %v2491_v43, %v5144_v24  ;;  %v2609_v61 = vsel %vm425_vm0, %v2510_v0, %v5145_v23  ;;  %v5055_v43 = vld [vmem:[#allocation4 + $0x1cc] sm:$0xf0]  ;;  %v5053_v0 = vld [vmem:[#allocation4 + $0x1c4] sm:$0xf]  ;;  %v5048_v23 = vld [vmem:[#allocation4 + $0x194] sm:$0xf0]  ;;  %v4611_v24 = vor.u32 %v5045_v44, %v4608_v15  ;;  %v4547_v44 = vor.u32 %v5029_v46, %v4544_v21 }
 0xa71   :  { %v2611_v45 = vpack.c.bf16 %v2609_v61, %v2608_v25  ;;  %v4639_v53 = vor.u32 %v5055_v43, %v4638_v16  ;;  %v4643_v32 = vor.u32 %v5053_v0, %v4640_v36  ;;  %v4615_v25 = vor.u32 %v5048_v23, %v4614_v22  ;;  %v5046_v61 = vld [vmem:[#allocation4 + $0x18c] sm:$0xf]  ;;  %v5035_v36 = vld [vmem:[#allocation4 + $0x12c] sm:$0xf0]  ;;  %v4552_v22 = vld [vmem:[#allocation4 + $0x118] sm:$0xf0] }
 0xa72   :  { %v5030_v15 = vld [vmem:[#allocation4 + $0x10c] sm:$0xf] }
 0xa73   :  { %2695 = vmatmul.bf16.gmra.mxu0 %v2611_v45  ;;  %3037 = vmatpush.bf16.msrb.mxu2 %v4643_v32  ;;  %v4616_v45 = vld [vmem:[#allocation4 + $0x198] sm:$0xf0] }
 0xa74   :  { %3058 = vmatpush.bf16.msra.mxu3 %v4615_v25 }
 0xa77   :  { %3038 = vmatpush.bf16.msrb.mxu2 %v4627_v7  ;;  %v5031_v7 = vld [vmem:[#allocation4 + $0x10c] sm:$0xf0] }
 0xa78   :  { %v4543_v47 = vor.u32 %v5031_v7, %v4542_v63 }
 0xa7b   :  { %3039 = vmatpush.bf16.msrb.mxu2 %v4611_v24  ;;  %v4555_v24 = vor.u32 %v5030_v15, %v4552_v22 }
 0xaa7   :  { %v2691_v5 = vpop.f32.mrf.mxu0 }
 0xaa8   :  { %v2692_v28 = vadd.f32 %v5152_v27, %v2691_v5  ;;  %v4590_v5 = vld [vmem:[#allocation4 + $0x160] sm:$0xf] }
 0xaaa   :  { %v6320_v49 = vadd.f32 %v2692_v28, %v6209_v6  ;;  %v5043_v28 = vld [vmem:[#allocation4 + $0x16c] sm:$0xf0] }
 0xaac   :  { %2709 = vadd.xlane.f32.xlu1 %v6320_v49  ;;  %v2721_v54 = vmul.f32 %v6320_v49, %v6320_v49 }
 0xaae   :  { %2725 = vadd.xlane.f32.xlu2 %v2721_v54  ;;  %v5041_v54 = vld [vmem:[#allocation4 + $0x164] sm:$0xf] }
 0xaaf   :  { %v2693_v4 = vpop.f32.mrf.mxu0 }
 0xab0   :  { %v2694_v52 = vadd.f32 %v5152_v27, %v2693_v4  ;;  %v4591_v4 = vor.u32 %v5043_v28, %v4590_v5 }
 0xab2   :  { %v6326_v31 = vadd.f32 %v2694_v52, %v6211_v9  ;;  %v4592_v52 = vld [vmem:[#allocation4 + $0x170] sm:$0xf0] }
 0xab4   :  { %2711 = vadd.xlane.f32.xlu0 %v6326_v31  ;;  %v2722_v12 = vmul.f32 %v6326_v31, %v6326_v31 }
 0xab6   :  { %2727 = vadd.xlane.f32.xlu1 %v2722_v12  ;;  %v4598_v12 = vld [vmem:[#allocation4 + $0x168] sm:$0xf] }
 0xaf0   :  { %v2696_v33 = vpop.f32.mrf.mxu0 }
 0xaf1   :  { %v2697_v6 = vadd.f32 %v5152_v27, %v2696_v33  ;;  %v5044_v33 = vld [vmem:[#allocation4 + $0x174] sm:$0xf0] }
 0xaf3   :  { %v6332_v26 = vadd.f32 %v2697_v6, %v6217_v59  ;;  %v5059_v59 = vld [vmem:[#allocation4 + $0x1ec] sm:$0xf0]  ;;  %v4595_v6 = vor.u32 %v5041_v54, %v4592_v52 }
 0xaf4   :  { %v4655_v10 = vor.u32 %v5059_v59, %v4654_v8  ;;  %v4574_v8 = vld [vmem:[#allocation4 + $0x140] sm:$0xf]  ;;  %v5039_v59 = vld [vmem:[#allocation4 + $0x14c] sm:$0xf0] }
 0xaf5   :  { %2713 = vadd.xlane.f32.xlu0 %v6332_v26  ;;  %v2723_v34 = vmul.f32 %v6332_v26, %v6332_v26  ;;  %3040 = vmatpush.bf16.msrb.mxu2 %v4595_v6 }
 0xaf6   :  { %3017 = vmatpush.bf16.msrb.mxu1 %v4655_v10  ;;  %v4575_v10 = vor.u32 %v5039_v59, %v4574_v8 }
 0xaf7   :  { %2729 = vadd.xlane.f32.xlu2 %v2723_v34  ;;  %v4599_v34 = vor.u32 %v5044_v33, %v4598_v12 }
 0xaf8   :  { %v2698_v11 = vpop.f32.mrf.mxu0 }
 0xaf9   :  { %v2699_v9 = vadd.f32 %v5152_v27, %v2698_v11  ;;  %v4619_v27 = vor.u32 %v5046_v61, %v4616_v45  ;;  %v5042_v11 = vld [vmem:[#allocation4 + $0x16c] sm:$0xf]  ;;  %3059 = vmatpush.bf16.msra.mxu3 %v4599_v34  ;;  %3041 = vmatpush.bf16.msrb.mxu2 %v4579_v30 }
 0xafa   :  { %3018 = vmatpush.bf16.msrb.mxu1 %v4639_v53  ;;  %v4558_v53 = vld [vmem:[#allocation4 + $0x120] sm:$0xf] }
 0xafb   :  { %v6338_v55 = vadd.f32 %v2699_v9, %v6219_v42  ;;  %v4667_v42 = vor.u32 %v5058_v48, %v4664_v17  ;;  %v4600_v9 = vld [vmem:[#allocation4 + $0x178] sm:$0xf0]  ;;  %v4583_v48 = vor.u32 %v5040_v20, %v4582_v58  ;;  %v5038_v17 = vld [vmem:[#allocation4 + $0x14c] sm:$0xf]  ;;  %v4559_v14 = vor.u32 %v5035_v36, %v4558_v53 }
 0xafd   :  { %2715 = vadd.xlane.f32.xlu1 %v6338_v55  ;;  %v2724_v37 = vmul.f32 %v6338_v55, %v6338_v55  ;;  %3074 = vmatpush.bf16.msra.mxu0 %v4667_v42  ;;  %v4584_v42 = vld [vmem:[#allocation4 + $0x158] sm:$0xf0] }
 0xafe   :  { %3019 = vmatpush.bf16.msrb.mxu1 %v4623_v39  ;;  %v4587_v43 = vor.u32 %v5038_v17, %v4584_v42  ;;  %3060 = vmatpush.bf16.msra.mxu3 %v4583_v48  ;;  %v5154_v17 = vld [vmem:[%s6580_s7 + $0x1] ss:$0 sm:$0xff] }
 0xaff   :  { %2731 = vadd.xlane.f32.xlu0 %v2724_v37  ;;  %v4603_v37 = vor.u32 %v5042_v11, %v4600_v9 }
 0xb01   :  { %3075 = vmatpush.bf16.msra.mxu0 %v4651_v40  ;;  %v4563_v40 = vor.u32 %v5033_v19, %v4560_v35 }
 0xb02   :  { %3020 = vmatpush.bf16.msrb.mxu1 %v4607_v13  ;;  %3061 = vmatpush.bf16.msra.mxu3 %v4567_v2 }
 0xb03   :  { %3042 = vmatpush.bf16.msrb.mxu2 %v4563_v40 }
 0xb05   :  { %3076 = vmatpush.bf16.msra.mxu0 %v4635_v18  ;;  %v4550_v18 = vld [vmem:[#allocation4 + $0x108] sm:$0xf] }
 0xb06   :  { %3021 = vmatpush.bf16.msrb.mxu1 %v4591_v4  ;;  %v4551_v13 = vor.u32 %v5032_v51, %v4550_v18 }
 0xb07   :  { %3043 = vmatpush.bf16.msrb.mxu2 %v4547_v44 }
 0xb08   :  { %3062 = vmatpush.bf16.msra.mxu3 %v4551_v13 }
 0xb09   :  { %3077 = vmatpush.bf16.msra.mxu0 %v4619_v27 }
 0xb0a   :  { %3022 = vmatpush.bf16.msrb.mxu1 %v4575_v10  ;;  %v5153_v10 = vld [vmem:[%s6579_s6 + $0x1] ss:$0 sm:$0xff] }
 0xb0d   :  { %3078 = vmatpush.bf16.msra.mxu0 %v4603_v37 }
 0xb0e   :  { %3023 = vmatpush.bf16.msrb.mxu1 %v4559_v14 }
 0xb11   :  { %3079 = vmatpush.bf16.msra.mxu0 %v4587_v43 }
 0xb12   :  { %3024 = vmatpush.bf16.msrb.mxu1 %v4543_v47 }
 0xb15   :  { %3080 = vmatpush.bf16.msra.mxu0 %v4571_v3 }
 0xb19   :  { %3081 = vmatpush.bf16.msra.mxu0 %v4555_v24 }
 0xb1f   :  { %v2710_v62 = vpop.xlane.xlu1 %2709 }
 0xb20   :  { %v6343_v16 = vmul.f32 0.0078125, %v2710_v62 }
 0xb21   :  { %v2726_v0 = vpop.xlane.xlu2 %2725 }
 0xb22   :  { %v2737_v57 = vmul.f32 %v6343_v16, %v6343_v16  ;;  %v2733_v32 = vmul.f32 0.0078125, %v2726_v0  ;;  %v2745_v59 = vsub.f32 %v6320_v49, %v6343_v16 }
 0xb24   :  { %v2741_v39 = vsub.f32 %v2733_v32, %v2737_v57 }
 0xb26   :  { %v2749_v56 = vadd.f32 1e-12, %v2741_v39 }
 0xb27   :  { %v2712_v23 = vpop.xlane.xlu0 %2711 }
 0xb28   :  { %5272 = vrsqrt.f32 %v2749_v56  ;;  %v2718_v25 = vmul.f32 0.0078125, %v2712_v23  ;;  %vm2759_vm1 = vweird.f32 %v2749_v56 }
 0xb29   :  { %v2728_v61 = vpop.xlane.xlu1 %2727 }
 0xb2a   :  { %v2738_v45 = vmul.f32 %v2718_v25, %v2718_v25  ;;  %v2734_v27 = vmul.f32 0.0078125, %v2728_v61  ;;  %v2746_v20 = vsub.f32 %v6326_v31, %v2718_v25 }
 0xb2c   :  { %v2742_v5 = vsub.f32 %v2734_v27, %v2738_v45 }
 0xb2e   :  { %v5273_v28 = vpop.eup %5272  ;;  %v2750_v54 = vadd.f32 1e-12, %v2742_v5 }
 0xb2f   :  { %v2754_v4 = vmul.f32 %v5273_v28, %v2749_v56  ;;  %vm2760_vm0 = vweird.f32 %v5273_v28 }
 0xb30   :  { %5274 = vrsqrt.f32 %v2750_v54  ;;  %vm2761_vm2 = vmor %vm2759_vm1, %vm2760_vm0  ;;  %vm2769_vm15 = vweird.f32 %v2750_v54 }
 0xb31   :  { %v2755_v52 = vmul.f32 %v5273_v28, %v2754_v4  ;;  %v5091_v4 = vld [vmem:[#allocation6 + $0x1f0] sm:$0xff] }
 0xb33   :  { %v2756_v12 = vmul.f32 0.5, %v2755_v52  ;;  %v5076_v52 = vld [vmem:[#allocation6 + $0x178] sm:$0xff] }
 0xb34   :  { %3526 = vmatpush.bf16.msra.mxu2 %v5076_v52 }
 0xb35   :  { %v2757_v33 = vsub.f32 1.5, %v2756_v12  ;;  %v5084_v12 = vld [vmem:[#allocation6 + $0x1b8] sm:$0xff] }
 0xb36   :  { %v5275_v6 = vpop.eup %5274  ;;  %3545 = vmatpush.bf16.msrb.mxu3 %v5084_v12 }
 0xb37   :  { %v2758_v34 = vmul.f32 %v5273_v28, %v2757_v33  ;;  %v2764_v11 = vmul.f32 %v5275_v6, %v2750_v54  ;;  %vm2770_vm14 = vweird.f32 %v5275_v6  ;;  %v5092_v54 = vld [vmem:[#allocation6 + $0x1f8] sm:$0xff]  ;;  %v5066_v33 = vld [vmem:[#allocation6 + $0x128] sm:$0xff] }
 0xb38   :  { %vm2771_vm3 = vmor %vm2769_vm15, %vm2770_vm14  ;;  %3564 = vmatpush.bf16.msrb.mxu0 %v5092_v54  ;;  %vm3699_vm14 = vcmask 1041408  }
 0xb39   :  { %v2765_v9 = vmul.f32 %v5275_v6, %v2764_v11  ;;  %v2762_v37 = vsel %vm2761_vm2, %v5273_v28, %v2758_v34  ;;  %v5075_v34 = vld [vmem:[#allocation6 + $0x170] sm:$0xff]  ;;  %vm3696_vm2 = vcmask 1041409   ;;  %vm6549_vm15 = vmpackc.low %vm3699_vm14, %vm3699_vm14 }
 0xb3a   :  { %v2793_v41 = vmul.f32 %v2762_v37, %v2745_v59  ;;  %v5083_v11 = vld [vmem:[#allocation6 + $0x1b0] sm:$0xff]  ;;  %3527 = vmatpush.bf16.msra.mxu2 %v5075_v34  ;;  %v5089_v37 = vld [vmem:[#allocation6 + $0x1e0] sm:$0xff]  ;;  %v5082_v59 = vld [vmem:[#allocation6 + $0x1a8] sm:$0xff] }
 0xb3b   :  { %v2766_v8 = vmul.f32 0.5, %v2765_v9  ;;  %3546 = vmatpush.bf16.msrb.mxu3 %v5083_v11  ;;  %v5065_v9 = vld [vmem:[#allocation6 + $0x120] sm:$0xff] }
 0xb3c   :  { %v2800_v30 = vmul.f32 %v5153_v10, %v2793_v41  ;;  %3565 = vmatpush.bf16.msrb.mxu0 %v5091_v4  ;;  %v5073_v41 = vld [vmem:[#allocation6 + $0x160] sm:$0xff] }
 0xb3d   :  { %v2767_v38 = vsub.f32 1.5, %v2766_v8  ;;  %v5074_v8 = vld [vmem:[#allocation6 + $0x168] sm:$0xff] }
 0xb3e   :  { %v6356_v42 = vadd.f32 %v5154_v17, %v2800_v30  ;;  %3528 = vmatpush.bf16.msra.mxu2 %v5074_v8  ;;  %v4539_v30 = vld [vmem:[%s6582_s9 + $0x4] sm:$0xf] }
 0xb3f   :  { %v2768_v58 = vmul.f32 %v5275_v6, %v2767_v38  ;;  %3547 = vmatpush.bf16.msrb.mxu3 %v5082_v59  ;;  %v5064_v38 = vld [vmem:[#allocation6 + $0x118] sm:$0xff] }
 0xb41   :  { %v2772_v62 = vsel %vm2771_vm3, %v5275_v6, %v2768_v58  ;;  %v5090_v6 = vld [vmem:[#allocation6 + $0x1e8] sm:$0xff]  ;;  %v5081_v58 = vld [vmem:[#allocation6 + $0x1a0] sm:$0xff] }
 0xb42   :  { %v2794_v48 = vmul.f32 %v2772_v62, %v2746_v20  ;;  %3566 = vmatpush.bf16.msrb.mxu0 %v5090_v6  ;;  %3529 = vmatpush.bf16.msra.mxu2 %v5073_v41  ;;  %v5063_v20 = vld [vmem:[#allocation6 + $0x110] sm:$0xff] }
 0xb43   :  { %3548 = vmatpush.bf16.msrb.mxu3 %v5081_v58  ;;  %v5087_v62 = vld [vmem:[#allocation6 + $0x1d0] sm:$0xff] }
 0xb44   :  { %v2801_v49 = vmul.f32 %v5153_v10, %v2794_v48  ;;  %v5072_v48 = vld [vmem:[#allocation6 + $0x158] sm:$0xff] }
 0xb46   :  { %v6358_v16 = vadd.f32 %v5154_v17, %v2801_v49  ;;  %3567 = vmatpush.bf16.msrb.mxu0 %v5089_v37  ;;  %3530 = vmatpush.bf16.msra.mxu2 %v5072_v48  ;;  %v5062_v49 = vld [vmem:[#allocation6 + $0x108] sm:$0xff] }
 0xb48   :  { %v2811_v43 = vpack.c.bf16 %v6358_v16, %v6356_v42 }
 0xb4a   :  { %3025 = vmatmul.bf16.vlgmr.msrb.gmra.mxu1 %v2811_v43  ;;  %3044 = vmatmul.bf16.vlgmr.msrb.gmra.mxu2 %v2811_v43 }
 0xb4b   :  { %3063 = vmatmul.bf16.vlgmr.msra.gmra.mxu3 %v2811_v43  ;;  %3082 = vmatmul.bf16.vlgmr.msra.gmra.mxu0 %v2811_v43  ;;  %v5086_v43 = vld [vmem:[#allocation6 + $0x1c8] sm:$0xff] }
 0xb68   :  { %v2714_v31 = vpop.xlane.xlu0 %2713 }
 0xb69   :  { %v2719_v0 = vmul.f32 0.0078125, %v2714_v31  ;;  %v6373_v31 = vperm.slane %v4539_v30, 0 }
 0xb6a   :  { %v2730_v53 = vpop.xlane.xlu2 %2729 }
 0xb6b   :  { %v2739_v36 = vmul.f32 %v2719_v0, %v2719_v0  ;;  %v2735_v19 = vmul.f32 0.0078125, %v2730_v53  ;;  %v2747_v44 = vsub.f32 %v6332_v26, %v2719_v0  ;;  %v5068_v26 = vld [vmem:[#allocation6 + $0x138] sm:$0xff]  ;;  %v6375_v0 = vperm.slane %v4539_v30, 3  ;;  %v5071_v53 = vld [vmem:[#allocation6 + $0x150] sm:$0xff] }
 0xb6c   :  { %3507 = vmatpush.bf16.msra.mxu1 %v5068_v26  ;;  %3531 = vmatpush.bf16.msra.mxu2 %v5071_v53 }
 0xb6d   :  { %v2743_v57 = vsub.f32 %v2735_v19, %v2739_v36  ;;  %v5079_v36 = vld [vmem:[#allocation6 + $0x190] sm:$0xff] }
 0xb6f   :  { %v2751_v32 = vadd.f32 1e-12, %v2743_v57  ;;  %v5061_v57 = vld [vmem:[#allocation6 + $0x100] sm:$0xff] }
 0xb70   :  { %v2716_v14 = vpop.xlane.xlu1 %2715 }
 0xb71   :  { %5276 = vrsqrt.f32 %v2751_v32  ;;  %v2720_v35 = vmul.f32 0.0078125, %v2716_v14  ;;  %vm2779_vm5 = vweird.f32 %v2751_v32 }
 0xb72   :  { %v2732_v1 = vpop.xlane.xlu0 %2731 }
 0xb73   :  { %v2740_v40 = vmul.f32 %v2720_v35, %v2720_v35  ;;  %v2736_v29 = vmul.f32 0.0078125, %v2732_v1  ;;  %v2748_v23 = vsub.f32 %v6338_v55, %v2720_v35  ;;  %v5067_v55 = vld [vmem:[#allocation6 + $0x130] sm:$0xff] }
 0xb74   :  { %3508 = vmatpush.bf16.msra.mxu1 %v5067_v55 }
 0xb75   :  { %v2744_v50 = vsub.f32 %v2736_v29, %v2740_v40  ;;  %v5070_v40 = vld [vmem:[#allocation6 + $0x148] sm:$0xff] }
 0xb76   :  { %v5078_v29 = vld [vmem:[#allocation6 + $0x188] sm:$0xff]  ;;  %3532 = vmatpush.bf16.msra.mxu2 %v5070_v40 }
 0xb77   :  { %v5277_v60 = vpop.eup %5276  ;;  %v2752_v39 = vadd.f32 1e-12, %v2744_v50 }
 0xb78   :  { %v2774_v2 = vmul.f32 %v5277_v60, %v2751_v32  ;;  %vm2780_vm4 = vweird.f32 %v5277_v60  ;;  %3509 = vmatpush.bf16.msra.mxu1 %v5066_v33  ;;  %v5085_v32 = vld [vmem:[#allocation6 + $0x1c0] sm:$0xff] }
 0xb79   :  { %5278 = vrsqrt.f32 %v2752_v39  ;;  %vm2781_vm6 = vmor %vm2779_vm5, %vm2780_vm4  ;;  %vm2789_vm8 = vweird.f32 %v2752_v39 }
 0xb7a   :  { %v2775_v3 = vmul.f32 %v5277_v60, %v2774_v2  ;;  %v6389_v2 = vperm.slane %v4539_v30, 2 }
 0xb7c   :  { %v2776_v63 = vmul.f32 0.5, %v2775_v3  ;;  %3510 = vmatpush.bf16.msra.mxu1 %v5065_v9 }
 0xb7e   :  { %v2777_v7 = vsub.f32 1.5, %v2776_v63 }
 0xb7f   :  { %v5279_v46 = vpop.eup %5278 }
 0xb80   :  { %v2778_v47 = vmul.f32 %v5277_v60, %v2777_v7  ;;  %v2784_v21 = vmul.f32 %v5279_v46, %v2752_v39  ;;  %vm2790_vm7 = vweird.f32 %v5279_v46  ;;  %3511 = vmatpush.bf16.msra.mxu1 %v5064_v38 }
 0xb81   :  { %vm2791_vm9 = vmor %vm2789_vm8, %vm2790_vm7 }
 0xb82   :  { %v2785_v18 = vmul.f32 %v5279_v46, %v2784_v21  ;;  %v2782_v51 = vsel %vm2781_vm6, %v5277_v60, %v2778_v47  ;;  %v6385_v60 = vperm.slane %v4539_v30, 1  ;;  %v5077_v47 = vld [vmem:[#allocation6 + $0x180] sm:$0xff] }
 0xb83   :  { %v2795_v15 = vmul.f32 %v2782_v51, %v2747_v44 }
 0xb84   :  { %v2786_v56 = vmul.f32 0.5, %v2785_v18  ;;  %3512 = vmatpush.bf16.msra.mxu1 %v5063_v20 }
 0xb85   :  { %v2802_v61 = vmul.f32 %v5153_v10, %v2795_v15 }
 0xb86   :  { %v2787_v13 = vsub.f32 1.5, %v2786_v56 }
 0xb87   :  { %v6364_v27 = vadd.f32 %v5154_v17, %v2802_v61 }
 0xb88   :  { %v2788_v22 = vmul.f32 %v5279_v46, %v2787_v13  ;;  %3513 = vmatpush.bf16.msra.mxu1 %v5062_v49 }
 0xb8a   :  { %v2792_v24 = vsel %vm2791_vm9, %v5279_v46, %v2788_v22  ;;  %v5069_v46 = vld [vmem:[#allocation6 + $0x140] sm:$0xff] }
 0xb8b   :  { %v2796_v25 = vmul.f32 %v2792_v24, %v2748_v23  ;;  %3533 = vmatpush.bf16.msra.mxu2 %v5069_v46 }
 0xb8c   :  { %3514 = vmatpush.bf16.msra.mxu1 %v5061_v57 }
 0xb8d   :  { %v2803_v45 = vmul.f32 %v5153_v10, %v2796_v25  ;;  %v5088_v10 = vld [vmem:[#allocation6 + $0x1d8] sm:$0xff] }
 0xb8e   :  { %3568 = vmatpush.bf16.msrb.mxu0 %v5088_v10 }
 0xb8f   :  { %v6366_v5 = vadd.f32 %v5154_v17, %v2803_v45  ;;  %v5080_v17 = vld [vmem:[#allocation6 + $0x198] sm:$0xff] }
 0xb90   :  { %3549 = vmatpush.bf16.msrb.mxu3 %v5080_v17 }
 0xb91   :  { %v2812_v28 = vpack.c.bf16 %v6366_v5, %v6364_v27 }
 0xb92   :  { %3569 = vmatpush.bf16.msrb.mxu0 %v5087_v62 }
 0xb93   :  { %3030 = vmatmul.bf16.gmra.mxu1 %v2812_v28  ;;  %3049 = vmatmul.bf16.gmra.mxu2 %v2812_v28 }
 0xb94   :  { %3068 = vmatmul.bf16.gmra.mxu3 %v2812_v28  ;;  %3087 = vmatmul.bf16.gmra.mxu0 %v2812_v28 }
 0xb95   :  { %3550 = vmatpush.bf16.msrb.mxu3 %v5079_v36 }
 0xb96   :  { %3570 = vmatpush.bf16.msrb.mxu0 %v5086_v43 }
 0xb99   :  { %3551 = vmatpush.bf16.msrb.mxu3 %v5078_v29 }
 0xb9a   :  { %3571 = vmatpush.bf16.msrb.mxu0 %v5085_v32 }
 0xb9d   :  { %3552 = vmatpush.bf16.msrb.mxu3 %v5077_v47 }
 0xbc7   :  { %v3026_v19 = vpop.f32.mrf.mxu1 }
 0xbc8   :  { %v6378_v14 = vadd.f32 %v3026_v19, %v6373_v31  ;;  %v3083_v35 = vpop.f32.mrf.mxu0 }
 0xbc9   :  { %v6381_v1 = vadd.f32 %v3083_v35, %v6375_v0 }
 0xbca   :  { %v3093_v50 = vmul.f32 %v6378_v14, %v6378_v14 }
 0xbcb   :  { %v3096_v39 = vmul.f32 %v6381_v1, %v6381_v1 }
 0xbcc   :  { %v3109_v3 = vmul.f32 %v3093_v50, %v6378_v14 }
 0xbcd   :  { %v3112_v63 = vmul.f32 %v3096_v39, %v6381_v1  ;;  %v3045_v7 = vpop.f32.mrf.mxu2 }
 0xbce   :  { %v3125_v21 = vmul.f32 0.044715, %v3109_v3  ;;  %v6394_v18 = vadd.f32 %v3045_v7, %v6385_v60  ;;  %v3064_v51 = vpop.f32.mrf.mxu3 }
 0xbcf   :  { %v3128_v56 = vmul.f32 0.044715, %v3112_v63  ;;  %v6397_v44 = vadd.f32 %v3064_v51, %v6389_v2  ;;  %v3028_v13 = vpop.f32.mrf.mxu1 }
 0xbd0   :  { %v3141_v15 = vadd.f32 %v3125_v21, %v6378_v14  ;;  %v3094_v22 = vmul.f32 %v6394_v18, %v6394_v18  ;;  %v6403_v23 = vadd.f32 %v3028_v13, %v6373_v31  ;;  %v3085_v24 = vpop.f32.mrf.mxu0 }
 0xbd1   :  { %v3144_v25 = vadd.f32 %v3128_v56, %v6381_v1  ;;  %v3095_v61 = vmul.f32 %v6397_v44, %v6397_v44  ;;  %v6409_v45 = vadd.f32 %v3085_v24, %v6375_v0 }
 0xbd2   :  { %v3157_v28 = vmul.f32 0.7978846, %v3141_v15  ;;  %v3110_v26 = vmul.f32 %v3094_v22, %v6394_v18  ;;  %v3097_v54 = vmul.f32 %v6403_v23, %v6403_v23 }
 0xbd3   :  { %v3160_v55 = vmul.f32 0.7978846, %v3144_v25  ;;  %v3111_v4 = vmul.f32 %v3095_v61, %v6397_v44  ;;  %v3100_v52 = vmul.f32 %v6409_v45, %v6409_v45 }
 0xbd4   :  { %v3126_v12 = vmul.f32 0.044715, %v3110_v26  ;;  %v3113_v33 = vmul.f32 %v3097_v54, %v6403_v23  ;;  %5280 = vtanh.f32 %v3157_v28 }
 0xbd5   :  { %v3127_v6 = vmul.f32 0.044715, %v3111_v4  ;;  %v3116_v34 = vmul.f32 %v3100_v52, %v6409_v45  ;;  %v3047_v11 = vpop.f32.mrf.mxu2  ;;  %5282 = vtanh.f32 %v3160_v55 }
 0xbd6   :  { %v3142_v9 = vadd.f32 %v3126_v12, %v6394_v18  ;;  %v3129_v37 = vmul.f32 0.044715, %v3113_v33  ;;  %v3048_v8 = vadd.f32 %v3047_v11, %v6385_v60  ;;  %v3066_v59 = vpop.f32.mrf.mxu3 }
 0xbd7   :  { %v3143_v38 = vadd.f32 %v3127_v6, %v6397_v44  ;;  %v3132_v10 = vmul.f32 0.044715, %v3116_v34  ;;  %v3067_v41 = vadd.f32 %v3066_v59, %v6389_v2 }
 0xbd8   :  { %v3158_v58 = vmul.f32 0.7978846, %v3142_v9  ;;  %v3145_v20 = vadd.f32 %v3129_v37, %v6403_v23  ;;  %v3098_v62 = vmul.f32 %v3048_v8, %v3048_v8 }
 0xbd9   :  { %v3159_v30 = vmul.f32 0.7978846, %v3143_v38  ;;  %v3148_v48 = vadd.f32 %v3132_v10, %v6409_v45  ;;  %v3099_v17 = vmul.f32 %v3067_v41, %v3067_v41 }
 0xbda   :  { %5284 = vtanh.f32 %v3158_v58  ;;  %v3161_v49 = vmul.f32 0.7978846, %v3145_v20  ;;  %v3114_v43 = vmul.f32 %v3098_v62, %v3048_v8  ;;  %v5281_v19 = vpop.eup %5280 }
 0xbdb   :  { %5286 = vtanh.f32 %v3159_v30  ;;  %v3164_v53 = vmul.f32 0.7978846, %v3148_v48  ;;  %v3115_v36 = vmul.f32 %v3099_v17, %v3067_v41  ;;  %v5283_v32 = vpop.eup %5282  ;;  %v3189_v29 = vadd.f32 1.0, %v5281_v19 }
 0xbdc   :  { %5288 = vtanh.f32 %v3161_v49  ;;  %v3130_v57 = vmul.f32 0.044715, %v3114_v43  ;;  %v3192_v3 = vadd.f32 1.0, %v5283_v32 }
 0xbdd   :  { %5290 = vtanh.f32 %v3164_v53  ;;  %v3131_v35 = vmul.f32 0.044715, %v3115_v36  ;;  %v3205_v51 = vmul.f32 0.5, %v3189_v29 }
 0xbde   :  { %v3146_v40 = vadd.f32 %v3130_v57, %v3048_v8  ;;  %v3208_v13 = vmul.f32 0.5, %v3192_v3 }
 0xbdf   :  { %v3147_v50 = vadd.f32 %v3131_v35, %v3067_v41  ;;  %v3221_v28 = vmul.f32 %v3205_v51, %v6378_v14 }
 0xbe0   :  { %v5285_v39 = vpop.eup %5284  ;;  %v3162_v63 = vmul.f32 0.7978846, %v3146_v40  ;;  %v3224_v55 = vmul.f32 %v3208_v13, %v6381_v1 }
 0xbe1   :  { %v5287_v7 = vpop.eup %5286  ;;  %v3163_v46 = vmul.f32 0.7978846, %v3147_v50  ;;  %v3190_v22 = vadd.f32 1.0, %v5285_v39 }
 0xbe2   :  { %v5289_v47 = vpop.eup %5288  ;;  %5292 = vtanh.f32 %v3162_v63  ;;  %v3191_v25 = vadd.f32 1.0, %v5287_v7 }
 0xbe3   :  { %v5291_v21 = vpop.eup %5290  ;;  %v3193_v56 = vadd.f32 1.0, %v5289_v47  ;;  %5294 = vtanh.f32 %v3163_v46  ;;  %v3206_v12 = vmul.f32 0.5, %v3190_v22 }
 0xbe4   :  { %v3196_v15 = vadd.f32 1.0, %v5291_v21  ;;  %v3207_v34 = vmul.f32 0.5, %v3191_v25 }
 0xbe5   :  { %v3209_v24 = vmul.f32 0.5, %v3193_v56  ;;  %v3222_v14 = vmul.f32 %v3206_v12, %v6394_v18 }
 0xbe6   :  { %v3212_v61 = vmul.f32 0.5, %v3196_v15 }
 0xbe7   :  { %v3225_v26 = vmul.f32 %v3209_v24, %v6403_v23  ;;  %v3223_v23 = vmul.f32 %v3207_v34, %v6397_v44 }
 0xbe8   :  { %v5293_v54 = vpop.eup %5292  ;;  %v3228_v4 = vmul.f32 %v3212_v61, %v6409_v45 }
 0xbe9   :  { %v5295_v52 = vpop.eup %5294  ;;  %v3237_v33 = vpack.c.bf16 %v3225_v26, %v3221_v28  ;;  %v3194_v6 = vadd.f32 1.0, %v5293_v54 }
 0xbea   :  { %v3240_v11 = vpack.c.bf16 %v3228_v4, %v3224_v55  ;;  %v3195_v9 = vadd.f32 1.0, %v5295_v52 }
 0xbeb   :  { %v3210_v37 = vmul.f32 0.5, %v3194_v6  ;;  %3515 = vmatmul.bf16.vlgmr.msra.gmra.mxu1 %v3237_v33 }
 0xbec   :  { %v3211_v59 = vmul.f32 0.5, %v3195_v9  ;;  %3572 = vmatmul.bf16.vlgmr.msrb.gmra.mxu0 %v3240_v11 }
 0xbed   :  { %v3226_v38 = vmul.f32 %v3210_v37, %v3048_v8 }
 0xbee   :  { %v3227_v10 = vmul.f32 %v3211_v59, %v3067_v41 }
 0xbef   :  { %v3238_v1 = vpack.c.bf16 %v3226_v38, %v3222_v14 }
 0xbf0   :  { %v3239_v58 = vpack.c.bf16 %v3227_v10, %v3223_v23 }
 0xbf1   :  { %3534 = vmatmul.bf16.vlgmr.msra.gmra.mxu2 %v3238_v1 }
 0xbf2   :  { %3553 = vmatmul.bf16.vlgmr.msrb.gmra.mxu3 %v3239_v58 }
 0xc10   :  { %v3031_v45 = vpop.f32.mrf.mxu1 }
 0xc11   :  { %v6432_v20 = vadd.f32 %v3031_v45, %v6373_v31  ;;  %v3088_v62 = vpop.f32.mrf.mxu0 }
 0xc12   :  { %v6435_v30 = vadd.f32 %v3088_v62, %v6375_v0 }
 0xc13   :  { %v3101_v48 = vmul.f32 %v6432_v20, %v6432_v20 }
 0xc14   :  { %v3104_v18 = vmul.f32 %v6435_v30, %v6435_v30 }
 0xc15   :  { %v3117_v44 = vmul.f32 %v3101_v48, %v6432_v20 }
 0xc16   :  { %v3120_v8 = vmul.f32 %v3104_v18, %v6435_v30  ;;  %v3050_v41 = vpop.f32.mrf.mxu2 }
 0xc17   :  { %v3133_v17 = vmul.f32 0.044715, %v3117_v44  ;;  %v6444_v49 = vadd.f32 %v3050_v41, %v6385_v60  ;;  %v3069_v43 = vpop.f32.mrf.mxu3 }
 0xc18   :  { %v3136_v53 = vmul.f32 0.044715, %v3120_v8  ;;  %v6447_v36 = vadd.f32 %v3069_v43, %v6389_v2  ;;  %v3033_v19 = vpop.f32.mrf.mxu1 }
 0xc19   :  { %v3149_v57 = vadd.f32 %v3133_v17, %v6432_v20  ;;  %v3102_v32 = vmul.f32 %v6444_v49, %v6444_v49  ;;  %v6453_v35 = vadd.f32 %v3033_v19, %v6373_v31  ;;  %v3090_v40 = vpop.f32.mrf.mxu0 }
 0xc1a   :  { %v3152_v29 = vadd.f32 %v3136_v53, %v6435_v30  ;;  %v3103_v50 = vmul.f32 %v6447_v36, %v6447_v36  ;;  %v6459_v39 = vadd.f32 %v3090_v40, %v6375_v0 }
 0xc1b   :  { %v3165_v3 = vmul.f32 0.7978846, %v3149_v57  ;;  %v3118_v63 = vmul.f32 %v3102_v32, %v6444_v49  ;;  %v3105_v7 = vmul.f32 %v6453_v35, %v6453_v35 }
 0xc1c   :  { %v3168_v46 = vmul.f32 0.7978846, %v3152_v29  ;;  %v3119_v47 = vmul.f32 %v3103_v50, %v6447_v36  ;;  %v3108_v31 = vmul.f32 %v6459_v39, %v6459_v39 }
 0xc1d   :  { %v3134_v21 = vmul.f32 0.044715, %v3118_v63  ;;  %v3121_v51 = vmul.f32 %v3105_v7, %v6453_v35  ;;  %5296 = vtanh.f32 %v3165_v3 }
 0xc1e   :  { %v3135_v56 = vmul.f32 0.044715, %v3119_v47  ;;  %v3124_v13 = vmul.f32 %v3108_v31, %v6459_v39  ;;  %v3052_v0 = vpop.f32.mrf.mxu2  ;;  %5298 = vtanh.f32 %v3168_v46 }
 0xc1f   :  { %v3150_v15 = vadd.f32 %v3134_v21, %v6444_v49  ;;  %v3137_v22 = vmul.f32 0.044715, %v3121_v51  ;;  %v3053_v24 = vadd.f32 %v3052_v0, %v6385_v60  ;;  %v3071_v25 = vpop.f32.mrf.mxu3 }
 0xc20   :  { %v3151_v61 = vadd.f32 %v3135_v56, %v6447_v36  ;;  %v3140_v28 = vmul.f32 0.044715, %v3124_v13  ;;  %v3072_v26 = vadd.f32 %v3071_v25, %v6389_v2  ;;  %v5155_v25 = vld [vmem:[%s6584_s11 + $0x1] ss:$0 sm:$0xff] }
 0xc21   :  { %v3166_v54 = vmul.f32 0.7978846, %v3150_v15  ;;  %v3153_v55 = vadd.f32 %v3137_v22, %v6453_v35  ;;  %v3106_v4 = vmul.f32 %v3053_v24, %v3053_v24 }
 0xc22   :  { %v3167_v52 = vmul.f32 0.7978846, %v3151_v61  ;;  %v3156_v12 = vadd.f32 %v3140_v28, %v6459_v39  ;;  %v3107_v33 = vmul.f32 %v3072_v26, %v3072_v26 }
 0xc23   :  { %5300 = vtanh.f32 %v3166_v54  ;;  %v3169_v6 = vmul.f32 0.7978846, %v3153_v55  ;;  %v3122_v34 = vmul.f32 %v3106_v4, %v3053_v24  ;;  %v5297_v9 = vpop.eup %5296 }
 0xc24   :  { %5302 = vtanh.f32 %v3167_v52  ;;  %v3172_v60 = vmul.f32 0.7978846, %v3156_v12  ;;  %v3123_v11 = vmul.f32 %v3107_v33, %v3072_v26  ;;  %v5299_v59 = vpop.eup %5298  ;;  %v3197_v23 = vadd.f32 1.0, %v5297_v9 }
 0xc25   :  { %5304 = vtanh.f32 %v3169_v6  ;;  %v3138_v37 = vmul.f32 0.044715, %v3122_v34  ;;  %v3200_v58 = vadd.f32 1.0, %v5299_v59 }
 0xc26   :  { %5306 = vtanh.f32 %v3172_v60  ;;  %v3139_v2 = vmul.f32 0.044715, %v3123_v11  ;;  %v3213_v8 = vmul.f32 0.5, %v3197_v23 }
 0xc27   :  { %v3154_v14 = vadd.f32 %v3138_v37, %v3053_v24  ;;  %v3216_v17 = vmul.f32 0.5, %v3200_v58 }
 0xc28   :  { %v3155_v38 = vadd.f32 %v3139_v2, %v3072_v26  ;;  %v3229_v32 = vmul.f32 %v3213_v8, %v6432_v20 }
 0xc29   :  { %v5301_v10 = vpop.eup %5300  ;;  %v3170_v1 = vmul.f32 0.7978846, %v3154_v14  ;;  %v3232_v50 = vmul.f32 %v3216_v17, %v6435_v30 }
 0xc2a   :  { %v5303_v45 = vpop.eup %5302  ;;  %v3171_v62 = vmul.f32 0.7978846, %v3155_v38  ;;  %v3198_v53 = vadd.f32 1.0, %v5301_v10 }
 0xc2b   :  { %v5305_v48 = vpop.eup %5304  ;;  %5308 = vtanh.f32 %v3170_v1  ;;  %v3199_v57 = vadd.f32 1.0, %v5303_v45 }
 0xc2c   :  { %v5307_v18 = vpop.eup %5306  ;;  %5310 = vtanh.f32 %v3171_v62  ;;  %v3201_v44 = vadd.f32 1.0, %v5305_v48  ;;  %v3214_v47 = vmul.f32 0.5, %v3198_v53 }
 0xc2d   :  { %v3204_v41 = vadd.f32 1.0, %v5307_v18  ;;  %v3215_v51 = vmul.f32 0.5, %v3199_v57  ;;  %v5098_v57 = vld [vmem:[%s6587_s14 + $0x28] sm:$0xff] }
 0xc2e   :  { %v3217_v43 = vmul.f32 0.5, %v3201_v44  ;;  %v3230_v20 = vmul.f32 %v3214_v47, %v6444_v49 }
 0xc2f   :  { %v3220_v19 = vmul.f32 0.5, %v3204_v41 }
 0xc30   :  { %v3233_v40 = vmul.f32 %v3217_v43, %v6453_v35  ;;  %v3231_v35 = vmul.f32 %v3215_v51, %v6447_v36 }
 0xc31   :  { %v5309_v29 = vpop.eup %5308  ;;  %v3236_v3 = vmul.f32 %v3220_v19, %v6459_v39  ;;  %v5100_v19 = vld [vmem:[%s6587_s14 + $0x38] sm:$0xff] }
 0xc32   :  { %v5311_v63 = vpop.eup %5310  ;;  %v3241_v7 = vpack.c.bf16 %v3233_v40, %v3229_v32  ;;  %v3202_v46 = vadd.f32 1.0, %v5309_v29  ;;  %3850 = vmatpush.bf16.msrb.mxu2 %v5100_v19  ;;  %v5097_v32 = vld [vmem:[%s6587_s14 + $0x20] sm:$0xff]  ;;  %v5096_v29 = vld [vmem:[%s6587_s14 + $0x18] sm:$0xff] }
 0xc33   :  { %v3244_v31 = vpack.c.bf16 %v3236_v3, %v3232_v50  ;;  %v3203_v21 = vadd.f32 1.0, %v5311_v63 }
 0xc34   :  { %3520 = vmatmul.bf16.gmra.mxu1 %v3241_v7  ;;  %v3218_v56 = vmul.f32 0.5, %v3202_v46  ;;  %v5095_v46 = vld [vmem:[%s6587_s14 + $0x10] sm:$0xff] }
 0xc35   :  { %3577 = vmatmul.bf16.gmra.mxu0 %v3244_v31  ;;  %v3219_v13 = vmul.f32 0.5, %v3203_v21  ;;  %v5094_v21 = vld [vmem:[%s6587_s14 + $0x8] sm:$0xff] }
 0xc36   :  { %v3234_v0 = vmul.f32 %v3218_v56, %v3053_v24 }
 0xc37   :  { %v3235_v15 = vmul.f32 %v3219_v13, %v3072_v26 }
 0xc38   :  { %v3242_v30 = vpack.c.bf16 %v3234_v0, %v3230_v20  ;;  %v5093_v20 = vld [vmem:[%s6587_s14] sm:$0xff] }
 0xc39   :  { %v3243_v22 = vpack.c.bf16 %v3235_v15, %v3231_v35 }
 0xc3a   :  { %3539 = vmatmul.bf16.gmra.mxu2 %v3242_v30 }
 0xc3b   :  { %3558 = vmatmul.bf16.gmra.mxu3 %v3243_v22 }
 0xc68   :  { %v3516_v39 = vpop.f32.mrf.mxu1 }
 0xc69   :  { %v3517_v61 = vadd.f32 %v5155_v25, %v3516_v39  ;;  %v3573_v4 = vpop.f32.mrf.mxu0 }
 0xc70   :  { %v3518_v49 = vpop.f32.mrf.mxu1 }
 0xc71   :  { %v3519_v12 = vadd.f32 %v5155_v25, %v3518_v49  ;;  %v3575_v11 = vpop.f32.mrf.mxu0 }
 0xc74   :  { %v3535_v28 = vpop.f32.mrf.mxu2 }
 0xc75   :  { %v3536_v54 = vadd.f32 %v3535_v28, %v3517_v61  ;;  %v3554_v55 = vpop.f32.mrf.mxu3 }
 0xc77   :  { %v3555_v52 = vadd.f32 %v3554_v55, %v3536_v54 }
 0xc79   :  { %v3574_v24 = vadd.f32 %v3573_v4, %v3555_v52 }
 0xc7b   :  { %v6485_v36 = vadd.f32 %v3574_v24, %v6356_v42 }
 0xc7c   :  { %v3537_v26 = vpop.f32.mrf.mxu2 }
 0xc7d   :  { %v3538_v33 = vadd.f32 %v3537_v26, %v3519_v12  ;;  %3591 = vadd.xlane.f32.xlu2 %v6485_v36  ;;  %v3603_v6 = vmul.f32 %v6485_v36, %v6485_v36  ;;  %v3556_v34 = vpop.f32.mrf.mxu3 }
 0xc7f   :  { %v3557_v60 = vadd.f32 %v3556_v34, %v3538_v33  ;;  %3607 = vadd.xlane.f32.xlu1 %v3603_v6  ;;  %v6536_v6 = vld [vmem:[%s6585_s12 + $0x1] ss:$0 sm:$0xff] }
 0xc81   :  { %v3576_v9 = vadd.f32 %v3575_v11, %v3557_v60 }
 0xc83   :  { %v6491_v37 = vadd.f32 %v3576_v9, %v6358_v16 }
 0xc85   :  { %v3604_v59 = vmul.f32 %v6491_v37, %v6491_v37 }
 0xc87   :  { %3609 = vadd.xlane.f32.xlu0 %v3604_v59  ;;  %3593 = vadd.xlane.f32.xlu1 %v6491_v37  ;;  %v6542_v59 = vld [vmem:[%s6586_s13 + $0x1] ss:$0 sm:$0xff] }
 0xcb1   :  { %v3521_v42 = vpop.f32.mrf.mxu1 }
 0xcb2   :  { %v3522_v2 = vadd.f32 %v5155_v25, %v3521_v42  ;;  %v3578_v10 = vpop.f32.mrf.mxu0 }
 0xcb9   :  { %v3523_v58 = vpop.f32.mrf.mxu1 }
 0xcba   :  { %v3524_v62 = vadd.f32 %v5155_v25, %v3523_v58  ;;  %v3580_v41 = vpop.f32.mrf.mxu0  ;;  %v5107_v58 = vld [vmem:[#allocation7 + $0x30] sm:$0xff] }
 0xcbd   :  { %v3540_v14 = vpop.f32.mrf.mxu2 }
 0xcbe   :  { %v3541_v38 = vadd.f32 %v3540_v14, %v3522_v2  ;;  %v3559_v23 = vpop.f32.mrf.mxu3 }
 0xcc0   :  { %v3560_v1 = vadd.f32 %v3559_v23, %v3541_v38 }
 0xcc2   :  { %v3579_v45 = vadd.f32 %v3578_v10, %v3560_v1  ;;  %v5108_v1 = vld [vmem:[#allocation7 + $0x38] sm:$0xff] }
 0xcc3   :  { %3789 = vmatpush.bf16.msrb.mxu1 %v5108_v1  ;;  %v5159_v1 = vld [vmem:[%s6591_s18] ss:$0 sm:$0xff] }
 0xcc4   :  { %v6497_v48 = vadd.f32 %v3579_v45, %v6364_v27  ;;  %v5106_v45 = vld [vmem:[#allocation7 + $0x28] sm:$0xff] }
 0xcc5   :  { %v3542_v16 = vpop.f32.mrf.mxu2 }
 0xcc6   :  { %v3543_v18 = vadd.f32 %v3542_v16, %v3524_v62  ;;  %3595 = vadd.xlane.f32.xlu0 %v6497_v48  ;;  %v3561_v44 = vpop.f32.mrf.mxu3  ;;  %v3605_v27 = vmul.f32 %v6497_v48, %v6497_v48  ;;  %v5105_v62 = vld [vmem:[#allocation7 + $0x20] sm:$0xff]  ;;  %v5104_v16 = vld [vmem:[#allocation7 + $0x18] sm:$0xff] }
 0xcc7   :  { %3790 = vmatpush.bf16.msrb.mxu1 %v5107_v58 }
 0xcc8   :  { %v3562_v8 = vadd.f32 %v3561_v44, %v3543_v18  ;;  %v5103_v18 = vld [vmem:[#allocation7 + $0x10] sm:$0xff] }
 0xcca   :  { %v3581_v17 = vadd.f32 %v3580_v41, %v3562_v8 }
 0xccb   :  { %3791 = vmatpush.bf16.msrb.mxu1 %v5106_v45 }
 0xccc   :  { %v6501_v43 = vadd.f32 %v3581_v17, %v6366_v5  ;;  %v5099_v5 = vld [vmem:[%s6587_s14 + $0x30] sm:$0xff] }
 0xccd   :  { %3851 = vmatpush.bf16.msrb.mxu2 %v5099_v5 }
 0xcce   :  { %3597 = vadd.xlane.f32.xlu2 %v6501_v43  ;;  %v3606_v53 = vmul.f32 %v6501_v43, %v6501_v43 }
 0xccf   :  { %3792 = vmatpush.bf16.msrb.mxu1 %v5105_v62 }
 0xcd0   :  { %3613 = vadd.xlane.f32.xlu1 %v3606_v53  ;;  %v5102_v53 = vld [vmem:[#allocation7 + $0x8] sm:$0xff] }
 0xcd1   :  { %3852 = vmatpush.bf16.msrb.mxu2 %v5098_v57 }
 0xcd3   :  { %3793 = vmatpush.bf16.msrb.mxu1 %v5104_v16 }
 0xcd5   :  { %3853 = vmatpush.bf16.msrb.mxu2 %v5097_v32  ;;  %v5101_v32 = vld [vmem:[#allocation7] sm:$0xff] }
 0xcd6   :  { %3611 = vadd.xlane.f32.xlu2 %v3605_v27 }
 0xcd7   :  { %3794 = vmatpush.bf16.msrb.mxu1 %v5103_v18 }
 0xcd9   :  { %3854 = vmatpush.bf16.msrb.mxu2 %v5096_v29 }
 0xcdb   :  { %3795 = vmatpush.bf16.msrb.mxu1 %v5102_v53 }
 0xcdd   :  { %3855 = vmatpush.bf16.msrb.mxu2 %v5095_v46 }
 0xcdf   :  { %3796 = vmatpush.bf16.msrb.mxu1 %v5101_v32 }
 0xce1   :  { %3856 = vmatpush.bf16.msrb.mxu2 %v5094_v21 }
 0xce5   :  { %3857 = vmatpush.bf16.msrb.mxu2 %v5093_v20 }
 0xcf0   :  { %v3592_v40 = vpop.xlane.xlu2 %3591 }
 0xcf1   :  { %v3599_v50 = vmul.f32 0.0078125, %v3592_v40 }
 0xcf2   :  { %v3608_v3 = vpop.xlane.xlu1 %3607 }
 0xcf3   :  { %v3619_v63 = vmul.f32 %v3599_v50, %v3599_v50  ;;  %v3615_v7 = vmul.f32 0.0078125, %v3608_v3  ;;  %v3627_v26 = vsub.f32 %v6485_v36, %v3599_v50 }
 0xcf5   :  { %v3623_v47 = vsub.f32 %v3615_v7, %v3619_v63 }
 0xcf7   :  { %v3631_v31 = vadd.f32 1e-12, %v3623_v47 }
 0xcf9   :  { %5312 = vrsqrt.f32 %v3631_v31  ;;  %vm3641_vm11 = vweird.f32 %v3631_v31 }
 0xcfa   :  { %v3610_v51 = vpop.xlane.xlu0 %3609  ;;  %v3594_v56 = vpop.xlane.xlu1 %3593 }
 0xcfb   :  { %v3600_v13 = vmul.f32 0.0078125, %v3594_v56  ;;  %v3616_v0 = vmul.f32 0.0078125, %v3610_v51 }
 0xcfd   :  { %v3620_v35 = vmul.f32 %v3600_v13, %v3600_v13  ;;  %v3628_v60 = vsub.f32 %v6491_v37, %v3600_v13 }
 0xcff   :  { %v5313_v15 = vpop.eup %5312  ;;  %v3624_v30 = vsub.f32 %v3616_v0, %v3620_v35 }
 0xd00   :  { %v3636_v22 = vmul.f32 %v5313_v15, %v3631_v31  ;;  %vm3642_vm10 = vweird.f32 %v5313_v15 }
 0xd01   :  { %v3632_v39 = vadd.f32 1e-12, %v3624_v30  ;;  %vm3643_vm12 = vmor %vm3641_vm11, %vm3642_vm10 }
 0xd02   :  { %v3637_v25 = vmul.f32 %v5313_v15, %v3636_v22 }
 0xd03   :  { %5314 = vrsqrt.f32 %v3632_v39  ;;  %vm3651_vm0 = vweird.f32 %v3632_v39 }
 0xd04   :  { %v3638_v61 = vmul.f32 0.5, %v3637_v25 }
 0xd06   :  { %v3639_v28 = vsub.f32 1.5, %v3638_v61 }
 0xd08   :  { %v3640_v4 = vmul.f32 %v5313_v15, %v3639_v28 }
 0xd09   :  { %v5315_v54 = vpop.eup %5314 }
 0xd0a   :  { %v3646_v55 = vmul.f32 %v5315_v54, %v3632_v39  ;;  %v3644_v24 = vsel %vm3643_vm12, %v5313_v15, %v3640_v4  ;;  %vm3652_vm13 = vweird.f32 %v5315_v54 }
 0xd0b   :  { %v3675_v34 = vmul.f32 %v3644_v24, %v3627_v26  ;;  %vm3653_vm1 = vmor %vm3651_vm0, %vm3652_vm13  ;;  %v5116_v26 = vld [vmem:[#allocation9 + $0x38] sm:$0xff] }
 0xd0c   :  { %v3647_v52 = vmul.f32 %v5315_v54, %v3646_v55  ;;  %3938 = vmatpush.bf16.msra.mxu3 %v5116_v26 }
 0xd0d   :  { %v3682_v36 = vmul.f32 %v6536_v6, %v3675_v34  ;;  %v5113_v34 = vld [vmem:[#allocation9 + $0x20] sm:$0xff] }
 0xd0e   :  { %v3648_v49 = vmul.f32 0.5, %v3647_v52 }
 0xd0f   :  { %v3689_v14 = vadd.f32 %v6542_v59, %v3682_v36  ;;  %v5109_v36 = vld [vmem:[#allocation9] sm:$0xff] }
 0xd10   :  { %v3649_v12 = vsub.f32 1.5, %v3648_v49 }
 0xd12   :  { %v3650_v33 = vmul.f32 %v5315_v54, %v3649_v12 }
 0xd14   :  { %v3654_v11 = vsel %vm3653_vm1, %v5315_v54, %v3650_v33  ;;  %v5115_v33 = vld [vmem:[#allocation9 + $0x30] sm:$0xff] }
 0xd15   :  { %v3676_v9 = vmul.f32 %v3654_v11, %v3628_v60  ;;  %3939 = vmatpush.bf16.msra.mxu3 %v5115_v33  ;;  %v5112_v60 = vld [vmem:[#allocation9 + $0x18] sm:$0xff] }
 0xd17   :  { %v3683_v42 = vmul.f32 %v6536_v6, %v3676_v9 }
 0xd19   :  { %v3690_v2 = vadd.f32 %v6542_v59, %v3683_v42  ;;  %v5158_v42 = vld [vmem:[%s6589_s16] ss:$0 sm:$0xff] }
 0xd1b   :  { %v3695_v38 = vrot.slane %v3690_v2, 7 }
 0xd1d   :  { %v3697_v37 = vsel %vm3696_vm2, %v3695_v38, %v3689_v14 }
 0xd1e   :  { %v4867_v10 = vpack.c.bf16 %v3697_v37, %v3697_v37 }
 0xd20   :  { %4868 = vmatmul.msk.bf16.vlgmr.msrb.gmra.mxu2 %vm6549_vm15, %v4867_v10 }
 0xd39   :  { %v3596_v41 = vpop.xlane.xlu0 %3595 }
 0xd3a   :  { %v3601_v5 = vmul.f32 0.0078125, %v3596_v41 }
 0xd3c   :  { %v3621_v50 = vmul.f32 %v3601_v5, %v3601_v5  ;;  %v3629_v28 = vsub.f32 %v6497_v48, %v3601_v5  ;;  %v5114_v48 = vld [vmem:[#allocation9 + $0x28] sm:$0xff] }
 0xd3d   :  { %3940 = vmatpush.bf16.msra.mxu3 %v5114_v48 }
 0xd41   :  { %v3598_v44 = vpop.xlane.xlu2 %3597  ;;  %3941 = vmatpush.bf16.msra.mxu3 %v5113_v34 }
 0xd42   :  { %v3602_v8 = vmul.f32 0.0078125, %v3598_v44 }
 0xd43   :  { %v3614_v17 = vpop.xlane.xlu1 %3613 }
 0xd44   :  { %v3622_v27 = vmul.f32 %v3602_v8, %v3602_v8  ;;  %v3618_v19 = vmul.f32 0.0078125, %v3614_v17  ;;  %v3630_v35 = vsub.f32 %v6501_v43, %v3602_v8 }
 0xd45   :  { %3942 = vmatpush.bf16.msra.mxu3 %v5112_v60 }
 0xd46   :  { %v3626_v57 = vsub.f32 %v3618_v19, %v3622_v27 }
 0xd48   :  { %v3634_v40 = vadd.f32 1e-12, %v3626_v57 }
 0xd49   :  { %v3612_v29 = vpop.xlane.xlu2 %3611 }
 0xd4a   :  { %5316 = vrsqrt.f32 %v3634_v40  ;;  %v3617_v3 = vmul.f32 0.0078125, %v3612_v29  ;;  %vm3671_vm4 = vweird.f32 %v3634_v40 }
 0xd4c   :  { %v3625_v63 = vsub.f32 %v3617_v3, %v3621_v50 }
 0xd4e   :  { %v3633_v7 = vadd.f32 1e-12, %v3625_v63 }
 0xd50   :  { %v5317_v46 = vpop.eup %5316  ;;  %5318 = vrsqrt.f32 %v3633_v7  ;;  %vm3661_vm7 = vweird.f32 %v3633_v7 }
 0xd51   :  { %v3666_v47 = vmul.f32 %v5317_v46, %v3634_v40  ;;  %vm3672_vm3 = vweird.f32 %v5317_v46 }
 0xd52   :  { %vm3673_vm5 = vmor %vm3671_vm4, %vm3672_vm3 }
 0xd53   :  { %v3667_v31 = vmul.f32 %v5317_v46, %v3666_v47 }
 0xd55   :  { %v3668_v21 = vmul.f32 0.5, %v3667_v31 }
 0xd56   :  { %v5319_v51 = vpop.eup %5318 }
 0xd57   :  { %v3669_v56 = vsub.f32 1.5, %v3668_v21  ;;  %v3656_v13 = vmul.f32 %v5319_v51, %v3633_v7  ;;  %vm3662_vm6 = vweird.f32 %v5319_v51 }
 0xd58   :  { %vm3663_vm8 = vmor %vm3661_vm7, %vm3662_vm6 }
 0xd59   :  { %v3670_v20 = vmul.f32 %v5317_v46, %v3669_v56  ;;  %v3657_v0 = vmul.f32 %v5319_v51, %v3656_v13 }
 0xd5b   :  { %v3674_v15 = vsel %vm3673_vm5, %v5317_v46, %v3670_v20  ;;  %v3658_v30 = vmul.f32 0.5, %v3657_v0 }
 0xd5c   :  { %v3678_v22 = vmul.f32 %v3674_v15, %v3630_v35 }
 0xd5d   :  { %v3659_v39 = vsub.f32 1.5, %v3658_v30 }
 0xd5e   :  { %v3685_v25 = vmul.f32 %v6536_v6, %v3678_v22 }
 0xd5f   :  { %v3660_v61 = vmul.f32 %v5319_v51, %v3659_v39 }
 0xd60   :  { %v3692_v55 = vadd.f32 %v6542_v59, %v3685_v25 }
 0xd61   :  { %v3664_v54 = vsel %vm3663_vm8, %v5319_v51, %v3660_v61 }
 0xd62   :  { %v3677_v4 = vmul.f32 %v3664_v54, %v3629_v28  ;;  %v3704_v43 = vrot.slane %v3692_v55, 7 }
 0xd64   :  { %v3684_v52 = vmul.f32 %v6536_v6, %v3677_v4  ;;  %v5111_v6 = vld [vmem:[#allocation9 + $0x10] sm:$0xff] }
 0xd65   :  { %3943 = vmatpush.bf16.msra.mxu3 %v5111_v6 }
 0xd66   :  { %v3691_v49 = vadd.f32 %v6542_v59, %v3684_v52  ;;  %v5110_v59 = vld [vmem:[#allocation9 + $0x8] sm:$0xff] }
 0xd68   :  { %v3705_v24 = vsel %vm3696_vm2, %v3704_v43, %v3691_v49 }
 0xd69   :  { %v4832_v12 = vpack.c.bf16 %v3705_v24, %v3705_v24  ;;  %3944 = vmatpush.bf16.msra.mxu3 %v5110_v59 }
 0xd6b   :  { %4833 = vmatmul.msk.bf16.vlgmr.msrb.gmra.mxu1 %vm6549_vm15, %v4832_v12 }
 0xd6d   :  { %3945 = vmatpush.bf16.msra.mxu3 %v5109_v36 }
 0xda3   :  { %v3859_v11 = vpop.f32.mrf.mxu2 }
 0xdab   :  { %v3861_v9 = vpop.f32.mrf.mxu2 }
 0xde8   :  { %v3798_v2 = vpop.f32.mrf.mxu1 }
 0xde9   :  { %v3860_v14 = vadd.f32 %v3859_v11, %v3798_v2 }
 0xdeb   :  { %v3867_v38 = vadd.f32 %v5158_v42, %v3860_v14 }
 0xded   :  { %v3868_v37 = vmax.f32 %v3867_v38, 0.0 }
 0xdef   :  { %v3869_v23 = vpack.c.bf16 %v3868_v37, %v3868_v37 }
 0xdf0   :  { %v3800_v10 = vpop.f32.mrf.mxu1 }
 0xdf1   :  { %3946 = vmatmul.bf16.vlgmr.msra.gmra.mxu3 %v3869_v23 }
 0xe74   :  { %v3947_v58 = vpop.f32.mrf.mxu3 }
 0xe75   :  { %v3948_v45 = vadd.f32 %v5159_v1, %v3947_v58 }
 0xe77   :  { %3951 = vst [vmem:[%s6592_s19] sm:$0xff] %v3948_v45 }
 0xe7c   :  { %v3949_v62 = vpop.f32.mrf.mxu3 }
 0xe7d   :  { %3956 = vsyncpa [#allocation3], 1 }
 0xe7e   :  { %3957 = vsyncpa [#allocation5], 1 }
 0xe7f   :  { %3958 = vsyncpa [#allocation8], 1 }

</bundles_post_ra>
